<compile_context>
chip_gen: v7x
topology: tpu7x:2x2x1
jax: 0.10.0
libtpu: 0.0.40
codegen_flags: <defaults>
</compile_context>

<pallas_src>
import jax
import jax.numpy as jnp
from jax.experimental import pallas as pl
from jax.experimental.pallas import tpu as pltpu

EPS = 1e-5  # torch.nn.BatchNorm1d default eps


# --------------------------------- kernel ---------------------------------
def decoder_kernel(p_ref, bias0_ref, geff_ref, beff_ref, wp_ref,
                   fw_ref, fb_ref, wout_ref, bout_ref,
                   out_ref, net_ref):
    # net = fc_p(p) + (fc_p.bias + fc_z(z))   (fc_z folded into bias on host)
    net_ref[...] = (
        jnp.dot(p_ref[0], wp_ref[...], preferred_element_type=jnp.float32)
        + bias0_ref[0])                                    # (T_TILE, H)

    geff = geff_ref[0]   # (11, H)  gamma * rsqrt(running_var + eps)
    beff = beff_ref[0]   # (11, H)  beta  - geff * running_mean

    def cbn_relu(x, i):
        # eval-mode conditional batch norm folded into a per-channel affine
        return jnp.maximum(geff[i][None, :] * x + beff[i][None, :], 0.0)

    def fc(x, i):
        # bf16 MXU matmul, f32 accumulation; bias kept in f32
        return (jnp.dot(x.astype(jnp.bfloat16), fw_ref[i],
                        preferred_element_type=jnp.float32) + fb_ref[i])

    # 5 conditional resnet blocks; `net` is an in-place VMEM accumulator
    for blk in range(5):
        i0, i1 = 2 * blk, 2 * blk + 1
        h = fc(cbn_relu(net_ref[...], i0), i0)             # bn_0 -> relu -> fc_0
        net_ref[...] += fc(cbn_relu(h, i1), i1)            # bn_1 -> relu -> fc_1

    # final CBN -> ReLU -> fc_out (H -> 1), written as a lane-dense row
    h = cbn_relu(net_ref[...], 10)                         # (T_TILE, H)
    out_ref[0] = (jnp.dot(wout_ref[...], h.T, preferred_element_type=jnp.float32)
                  + bout_ref[...])                         # (1, T_TILE)


# ------------------------------ host wrapper ------------------------------
def _precompute(p, z, c, params):
    """T-independent work hoisted out of the kernel (runs once per call)."""
    # fc_z(z) folded into the per-batch fc_p bias
    net_z = z @ params["wz"] + params["bz"]                        # (B, H)
    bias0 = (params["bp"] + net_z)[:, None, :]                     # (B, 1, H)
    # all 11 CBN gamma/beta in one batched contraction
    gamma = jnp.einsum("bc,lch->blh", c, params["gw"]) + params["gb"][:, 0, :][None]
    beta = jnp.einsum("bc,lch->blh", c, params["bw"]) + params["bb"][:, 0, :][None]
    # fold eval-mode BN running statistics into a per-(b, layer, ch) affine
    inv_std = jax.lax.rsqrt(params["running_var"] + EPS)           # (11, H)
    geff = gamma * inv_std[None]                                   # (B, 11, H)
    beff = beta - geff * params["running_mean"][None]              # (B, 11, H)
    return bias0, geff, beff


def decoder_forward(p, z, c, params, *, t_tile=256, d_pad=8):
    """p: (B, T, dim), z: (B, z_dim), c: (B, c_dim) -> occupancy logits (B, T).

    t_tile: points per grid step (multiple of 128). For production shapes
    (H=256, T~1e5) use ~1024-2048 on v5e/v6e and roughly half that on v7x
    (64 MiB VMEM); weights stay resident either way.
    """
    B, T, D = p.shape
    H = params["wp"].shape[1]
    assert H % 128 == 0, "hidden size must be lane-dense (multiple of 128)"
    assert t_tile % 128 == 0 and D <= d_pad

    bias0, geff, beff = _precompute(p, z, c, params)

    # pad points: channel dim 3 -> 8, T up to a tile multiple (rows discarded)
    t_pad = pl.cdiv(T, t_tile) * t_tile
    p_pad = jnp.zeros((B, t_pad, d_pad), jnp.float32).at[:, :T, :D].set(p)
    wp_pad = jnp.zeros((d_pad, H), jnp.float32).at[:D].set(params["wp"])

    fw = params["fw"].astype(jnp.bfloat16)     # (10, H, H) MXU weights
    fb = params["fb"]                          # (10, 1, H) f32
    wout = params["wout"]                      # (1, H)
    bout = params["bout"]                      # (1, 1)

    grid = (B, t_pad // t_tile)
    out3 = pl.pallas_call(
        decoder_kernel,
        out_shape=jax.ShapeDtypeStruct((B, 1, t_pad), jnp.float32),
        grid_spec=pltpu.PrefetchScalarGridSpec(
            num_scalar_prefetch=0,
            grid=grid,
            in_specs=[
                pl.BlockSpec((1, t_tile, d_pad), lambda b, t: (b, t, 0)),  # p tile (pipelined)
                pl.BlockSpec((1, 1, H), lambda b, t: (b, 0, 0)),           # per-batch bias
                pl.BlockSpec((1, 11, H), lambda b, t: (b, 0, 0)),          # folded CBN scale
                pl.BlockSpec((1, 11, H), lambda b, t: (b, 0, 0)),          # folded CBN shift
                pl.BlockSpec((d_pad, H), lambda b, t: (0, 0)),             # fc_p weight (resident)
                pl.BlockSpec((10, H, H), lambda b, t: (0, 0, 0)),          # fc_0/fc_1 bf16 (resident)
                pl.BlockSpec((10, 1, H), lambda b, t: (0, 0, 0)),          # fc biases (resident)
                pl.BlockSpec((1, H), lambda b, t: (0, 0)),                 # fc_out weight
                pl.BlockSpec((1, 1), lambda b, t: (0, 0)),                 # fc_out bias
            ],
            out_specs=pl.BlockSpec((1, 1, t_tile), lambda b, t: (b, 0, t)),
            scratch_shapes=[pltpu.VMEM((t_tile, H), jnp.float32)],         # net accumulator
        ),
        compiler_params=pltpu.CompilerParams(
            dimension_semantics=("parallel", "parallel"),   # tiles independent (eval-mode BN)
            vmem_limit_bytes=48 * 1024 * 1024,              # fits v7x's 64 MiB VMEM
        ),
    )(p_pad, bias0, geff, beff, wp_pad, fw, fb, wout, bout)
    return out3[:, 0, :T]


# ------------------------- plain-JAX references ----------------------------
def decoder_reference(p, z, c, params, mm_dtype=jnp.bfloat16):
    """Module math (eval-mode BN). mm_dtype controls the fc matmul precision."""
    def cbn(x, i):
        gamma = c @ params["gw"][i] + params["gb"][i]                  # (B, H)
        beta = c @ params["bw"][i] + params["bb"][i]
        x_hat = (x - params["running_mean"][i]) * jax.lax.rsqrt(
            params["running_var"][i] + EPS)
        return gamma[:, None, :] * x_hat + beta[:, None, :]

    def fc(x, i):
        return jnp.einsum("bth,hk->btk", x.astype(mm_dtype),
                          params["fw"][i].astype(mm_dtype),
                          preferred_element_type=jnp.float32) + params["fb"][i][None]

    net = jnp.einsum("btd,dh->bth", p, params["wp"]) + params["bp"][None]
    net = net + (z @ params["wz"] + params["bz"])[:, None, :]
    for blk in range(5):
        i0, i1 = 2 * blk, 2 * blk + 1
        h = fc(jax.nn.relu(cbn(net, i0)), i0)
        net = net + fc(jax.nn.relu(cbn(h, i1)), i1)
    h = jax.nn.relu(cbn(net, 10))
    return jnp.einsum("bth,h->bt", h, params["wout"][0]) + params["bout"][0]


# ----------------------- deterministic parameter init ---------------------
def make_params(key, dim, z_dim, c_dim, hidden):
    ks = jax.random.split(key, 14)
    n = lambda k, shape, s=0.1: (s * jax.random.normal(k, shape)).astype(jnp.float32)
    return {
        "wp": n(ks[0], (dim, hidden)),          # fc_p weight (transposed 1x1 conv)
        "bp": n(ks[1], (1, hidden), 0.05),
        "wz": n(ks[2], (z_dim, hidden)),        # fc_z weight (transposed)
        "bz": n(ks[3], (1, hidden), 0.05),
        "gw": n(ks[4], (11, c_dim, hidden)),    # conv_gamma weights, 11 CBN layers
        "gb": n(ks[5], (11, 1, hidden), 0.05),
        "bw": n(ks[6], (11, c_dim, hidden)),    # conv_beta weights
        "bb": n(ks[7], (11, 1, hidden), 0.05),
        "fw": n(ks[8], (10, hidden, hidden)),   # fc_0 / fc_1 per block
        "fb": n(ks[9], (10, 1, hidden), 0.05),
        "wout": n(ks[10], (1, hidden)),         # fc_out weight
        "bout": n(ks[11], (1, 1), 0.05),        # fc_out bias
        # BatchNorm1d running statistics (eval-mode / inference path)
        "running_mean": n(ks[12], (11, hidden), 0.2),
        "running_var": 0.5 + jax.random.uniform(ks[13], (11, hidden),
                                                dtype=jnp.float32),
    }


if __name__ == "__main__":
    B, T = 2, 500                       # T intentionally not a tile multiple
    DIM, Z_DIM, C_DIM, HIDDEN = 3, 16, 16, 128
    T_TILE = 256

    key = jax.random.PRNGKey(0)
    kp, kz, kc, kw = jax.random.split(key, 4)
    p = jax.random.normal(kp, (B, T, DIM), dtype=jnp.float32)   # query points
    z = jax.random.normal(kz, (B, Z_DIM), dtype=jnp.float32)    # latent code
    c = jax.random.normal(kc, (B, C_DIM), dtype=jnp.float32)    # conditioning code
    params = make_params(kw, DIM, Z_DIM, C_DIM, HIDDEN)

    out = jax.block_until_ready(decoder_forward(p, z, c, params, t_tile=T_TILE))
    ref = jax.block_until_ready(decoder_reference(p, z, c, params,
                                                  mm_dtype=jnp.bfloat16))
    ref32 = jax.block_until_ready(decoder_reference(p, z, c, params,
                                                    mm_dtype=jnp.float32))

    assert out.shape == (B, T), out.shape
    err = float(jnp.max(jnp.abs(out - ref)))
    err32 = float(jnp.max(jnp.abs(out - ref32)))
    assert jnp.allclose(out, ref, atol=2e-3, rtol=2e-3), f"bf16-matched max err {err}"
    assert jnp.allclose(out, ref32, atol=1e-1, rtol=1e-1), f"f32 ref max err {err32}"
    print("KERNEL_OK")
</pallas_src>

<mosaic_0001>
module attributes {stable_mosaic.version = 11 : i64} {
  func.func @decoder_kernel(%arg0: i32, %arg1: i32, %arg2: memref<1x256x8xf32, #tpu.memory_space<vmem>>, %arg3: memref<1x1x128xf32, #tpu.memory_space<vmem>>, %arg4: memref<1x11x128xf32, #tpu.memory_space<vmem>>, %arg5: memref<1x11x128xf32, #tpu.memory_space<vmem>>, %arg6: memref<8x128xf32, #tpu.memory_space<vmem>>, %arg7: memref<10x128x128xbf16, #tpu.memory_space<vmem>>, %arg8: memref<10x1x128xf32, #tpu.memory_space<vmem>>, %arg9: memref<1x128xf32, #tpu.memory_space<vmem>>, %arg10: memref<1x1xf32, #tpu.memory_space<vmem>>, %arg11: memref<1x1x256xf32, #tpu.memory_space<vmem>>, %arg12: memref<256x128xf32, #tpu.memory_space<vmem>>) attributes {dimension_semantics = [#tpu.dimension_semantics<parallel>, #tpu.dimension_semantics<parallel>], iteration_bounds = array<i64: 2, 2>, scalar_prefetch = 0 : i64, scratch_operands = 1 : i64, tpu.core_type = #tpu.core_type<tc>, window_params = [{transform_indices = @transform_0, window_bounds = array<i64: 1, 256, 8>}, {transform_indices = @transform_1, window_bounds = array<i64: 1, 1, 128>}, {transform_indices = @transform_2, window_bounds = array<i64: 1, 11, 128>}, {transform_indices = @transform_3, window_bounds = array<i64: 1, 11, 128>}, {pipeline_mode = #tpu.pipeline_mode<synchronous>, transform_indices = @transform_4, window_bounds = array<i64: 8, 128>}, {pipeline_mode = #tpu.pipeline_mode<synchronous>, transform_indices = @transform_5, window_bounds = array<i64: 10, 128, 128>}, {pipeline_mode = #tpu.pipeline_mode<synchronous>, transform_indices = @transform_6, window_bounds = array<i64: 10, 1, 128>}, {pipeline_mode = #tpu.pipeline_mode<synchronous>, transform_indices = @transform_7, window_bounds = array<i64: 1, 128>}, {pipeline_mode = #tpu.pipeline_mode<synchronous>, transform_indices = @transform_8, window_bounds = array<i64: 1, 1>}, {transform_indices = @transform_9, window_bounds = array<i64: 1, 1, 256>}]} {
    %c0 = arith.constant 0 : index
    %c0_0 = arith.constant 0 : index
    %c0_1 = arith.constant 0 : index
    %0 = vector.load %arg2[%c0, %c0_0, %c0_1] : memref<1x256x8xf32, #tpu.memory_space<vmem>>, vector<1x256x8xf32>
    %1 = vector.shape_cast %0 : vector<1x256x8xf32> to vector<256x8xf32>
    %c0_2 = arith.constant 0 : index
    %c0_3 = arith.constant 0 : index
    %2 = vector.load %arg6[%c0_2, %c0_3] : memref<8x128xf32, #tpu.memory_space<vmem>>, vector<8x128xf32>
    %cst = arith.constant dense<0.000000e+00> : vector<256x128xf32>
    %3 = tpu.matmul %1, %2, %cst {dimension_numbers = #tpu.dot_dimension_numbers<[1], [0], [0], [1], [0, 0, 1, 1], [], []>} : vector<256x8xf32>, vector<8x128xf32>, vector<256x128xf32> -> vector<256x128xf32>
    %c0_4 = arith.constant 0 : index
    %c0_5 = arith.constant 0 : index
    %c0_6 = arith.constant 0 : index
    %4 = vector.load %arg3[%c0_4, %c0_5, %c0_6] : memref<1x1x128xf32, #tpu.memory_space<vmem>>, vector<1x1x128xf32>
    %5 = vector.shape_cast %4 : vector<1x1x128xf32> to vector<1x128xf32>
    %6 = vector.broadcast %5 : vector<1x128xf32> to vector<256x128xf32>
    %7 = arith.addf %3, %6 : vector<256x128xf32>
    %c0_7 = arith.constant 0 : index
    %c0_8 = arith.constant 0 : index
    %8 = vector.load %arg12[%c0_7, %c0_8] : memref<256x128xf32, #tpu.memory_space<vmem>>, vector<256x128xf32>
    tpu.vector_store %arg12[%c0_7, %c0_8], %7 {strides = array<i32>} : memref<256x128xf32, #tpu.memory_space<vmem>>, vector<256x128xf32>,
    %c0_9 = arith.constant 0 : index
    %c0_10 = arith.constant 0 : index
    %c0_11 = arith.constant 0 : index
    %9 = vector.load %arg4[%c0_9, %c0_10, %c0_11] : memref<1x11x128xf32, #tpu.memory_space<vmem>>, vector<1x11x128xf32>
    %10 = vector.shape_cast %9 : vector<1x11x128xf32> to vector<11x128xf32>
    %c0_12 = arith.constant 0 : index
    %c0_13 = arith.constant 0 : index
    %c0_14 = arith.constant 0 : index
    %11 = vector.load %arg5[%c0_12, %c0_13, %c0_14] : memref<1x11x128xf32, #tpu.memory_space<vmem>>, vector<1x11x128xf32>
    %12 = vector.shape_cast %11 : vector<1x11x128xf32> to vector<11x128xf32>
    %c0_15 = arith.constant 0 : index
    %c0_16 = arith.constant 0 : index
    %13 = vector.load %arg12[%c0_15, %c0_16] : memref<256x128xf32, #tpu.memory_space<vmem>>, vector<256x128xf32>
    %14 = vector.extract_strided_slice %10 {offsets = [0, 0], sizes = [1, 128], strides = [1, 1]} : vector<11x128xf32> to vector<1x128xf32>
    %15 = vector.shape_cast %14 : vector<1x128xf32> to vector<128xf32>
    %16 = vector.shape_cast %15 : vector<128xf32> to vector<1x128xf32>
    %17 = vector.broadcast %16 : vector<1x128xf32> to vector<256x128xf32>
    %18 = arith.mulf %17, %13 : vector<256x128xf32>
    %19 = vector.extract_strided_slice %12 {offsets = [0, 0], sizes = [1, 128], strides = [1, 1]} : vector<11x128xf32> to vector<1x128xf32>
    %20 = vector.shape_cast %19 : vector<1x128xf32> to vector<128xf32>
    %21 = vector.shape_cast %20 : vector<128xf32> to vector<1x128xf32>
    %22 = vector.broadcast %21 : vector<1x128xf32> to vector<256x128xf32>
    %23 = arith.addf %18, %22 : vector<256x128xf32>
    %cst_17 = arith.constant 0.000000e+00 : f32
    %24 = vector.broadcast %cst_17 : f32 to vector<256x128xf32>
    %25 = arith.maximumf %23, %24 : vector<256x128xf32>
    %26 = arith.truncf %25 : vector<256x128xf32> to vector<256x128xbf16>
    %c0_18 = arith.constant 0 : index
    %c0_19 = arith.constant 0 : index
    %c0_20 = arith.constant 0 : index
    %27 = vector.load %arg7[%c0_18, %c0_19, %c0_20] : memref<10x128x128xbf16, #tpu.memory_space<vmem>>, vector<1x128x128xbf16>
    %28 = vector.shape_cast %27 : vector<1x128x128xbf16> to vector<128x128xbf16>
    %cst_21 = arith.constant dense<0.000000e+00> : vector<256x128xf32>
    %29 = tpu.matmul %26, %28, %cst_21 {dimension_numbers = #tpu.dot_dimension_numbers<[1], [0], [0], [1], [0, 0, 1, 1], [], []>} : vector<256x128xbf16>, vector<128x128xbf16>, vector<256x128xf32> -> vector<256x128xf32>
    %c0_22 = arith.constant 0 : index
    %c0_23 = arith.constant 0 : index
    %c0_24 = arith.constant 0 : index
    %30 = vector.load %arg8[%c0_22, %c0_23, %c0_24] : memref<10x1x128xf32, #tpu.memory_space<vmem>>, vector<1x1x128xf32>
    %31 = vector.shape_cast %30 : vector<1x1x128xf32> to vector<1x128xf32>
    %32 = vector.broadcast %31 : vector<1x128xf32> to vector<256x128xf32>
    %33 = arith.addf %29, %32 : vector<256x128xf32>
    %c0_25 = arith.constant 0 : index
    %c0_26 = arith.constant 0 : index
    %34 = vector.load %arg12[%c0_25, %c0_26] : memref<256x128xf32, #tpu.memory_space<vmem>>, vector<256x128xf32>
    %35 = vector.extract_strided_slice %10 {offsets = [1, 0], sizes = [1, 128], strides = [1, 1]} : vector<11x128xf32> to vector<1x128xf32>
    %36 = vector.shape_cast %35 : vector<1x128xf32> to vector<128xf32>
    %37 = vector.shape_cast %36 : vector<128xf32> to vector<1x128xf32>
    %38 = vector.broadcast %37 : vector<1x128xf32> to vector<256x128xf32>
    %39 = arith.mulf %38, %33 : vector<256x128xf32>
    %40 = vector.extract_strided_slice %12 {offsets = [1, 0], sizes = [1, 128], strides = [1, 1]} : vector<11x128xf32> to vector<1x128xf32>
    %41 = vector.shape_cast %40 : vector<1x128xf32> to vector<128xf32>
    %42 = vector.shape_cast %41 : vector<128xf32> to vector<1x128xf32>
    %43 = vector.broadcast %42 : vector<1x128xf32> to vector<256x128xf32>
    %44 = arith.addf %39, %43 : vector<256x128xf32>
    %cst_27 = arith.constant 0.000000e+00 : f32
    %45 = vector.broadcast %cst_27 : f32 to vector<256x128xf32>
    %46 = arith.maximumf %44, %45 : vector<256x128xf32>
    %47 = arith.truncf %46 : vector<256x128xf32> to vector<256x128xbf16>
    %c1 = arith.constant 1 : index
    %c0_28 = arith.constant 0 : index
    %c0_29 = arith.constant 0 : index
    %48 = vector.load %arg7[%c1, %c0_28, %c0_29] : memref<10x128x128xbf16, #tpu.memory_space<vmem>>, vector<1x128x128xbf16>
    %49 = vector.shape_cast %48 : vector<1x128x128xbf16> to vector<128x128xbf16>
    %cst_30 = arith.constant dense<0.000000e+00> : vector<256x128xf32>
    %50 = tpu.matmul %47, %49, %cst_30 {dimension_numbers = #tpu.dot_dimension_numbers<[1], [0], [0], [1], [0, 0, 1, 1], [], []>} : vector<256x128xbf16>, vector<128x128xbf16>, vector<256x128xf32> -> vector<256x128xf32>
    %c1_31 = arith.constant 1 : index
    %c0_32 = arith.constant 0 : index
    %c0_33 = arith.constant 0 : index
    %51 = vector.load %arg8[%c1_31, %c0_32, %c0_33] : memref<10x1x128xf32, #tpu.memory_space<vmem>>, vector<1x1x128xf32>
    %52 = vector.shape_cast %51 : vector<1x1x128xf32> to vector<1x128xf32>
    %53 = vector.broadcast %52 : vector<1x128xf32> to vector<256x128xf32>
    %54 = arith.addf %50, %53 : vector<256x128xf32>
    %55 = arith.addf %34, %54 : vector<256x128xf32>
    %c0_34 = arith.constant 0 : index
    %c0_35 = arith.constant 0 : index
    %56 = vector.load %arg12[%c0_34, %c0_35] : memref<256x128xf32, #tpu.memory_space<vmem>>, vector<256x128xf32>
    tpu.vector_store %arg12[%c0_34, %c0_35], %55 {strides = array<i32>} : memref<256x128xf32, #tpu.memory_space<vmem>>, vector<256x128xf32>,
    %c0_36 = arith.constant 0 : index
    %c0_37 = arith.constant 0 : index
    %57 = vector.load %arg12[%c0_36, %c0_37] : memref<256x128xf32, #tpu.memory_space<vmem>>, vector<256x128xf32>
    %58 = vector.extract_strided_slice %10 {offsets = [2, 0], sizes = [1, 128], strides = [1, 1]} : vector<11x128xf32> to vector<1x128xf32>
    %59 = vector.shape_cast %58 : vector<1x128xf32> to vector<128xf32>
    %60 = vector.shape_cast %59 : vector<128xf32> to vector<1x128xf32>
    %61 = vector.broadcast %60 : vector<1x128xf32> to vector<256x128xf32>
    %62 = arith.mulf %61, %57 : vector<256x128xf32>
    %63 = vector.extract_strided_slice %12 {offsets = [2, 0], sizes = [1, 128], strides = [1, 1]} : vector<11x128xf32> to vector<1x128xf32>
    %64 = vector.shape_cast %63 : vector<1x128xf32> to vector<128xf32>
    %65 = vector.shape_cast %64 : vector<128xf32> to vector<1x128xf32>
    %66 = vector.broadcast %65 : vector<1x128xf32> to vector<256x128xf32>
    %67 = arith.addf %62, %66 : vector<256x128xf32>
    %cst_38 = arith.constant 0.000000e+00 : f32
    %68 = vector.broadcast %cst_38 : f32 to vector<256x128xf32>
    %69 = arith.maximumf %67, %68 : vector<256x128xf32>
    %70 = arith.truncf %69 : vector<256x128xf32> to vector<256x128xbf16>
    %c2 = arith.constant 2 : index
    %c0_39 = arith.constant 0 : index
    %c0_40 = arith.constant 0 : index
    %71 = vector.load %arg7[%c2, %c0_39, %c0_40] : memref<10x128x128xbf16, #tpu.memory_space<vmem>>, vector<1x128x128xbf16>
    %72 = vector.shape_cast %71 : vector<1x128x128xbf16> to vector<128x128xbf16>
    %cst_41 = arith.constant dense<0.000000e+00> : vector<256x128xf32>
    %73 = tpu.matmul %70, %72, %cst_41 {dimension_numbers = #tpu.dot_dimension_numbers<[1], [0], [0], [1], [0, 0, 1, 1], [], []>} : vector<256x128xbf16>, vector<128x128xbf16>, vector<256x128xf32> -> vector<256x128xf32>
    %c2_42 = arith.constant 2 : index
    %c0_43 = arith.constant 0 : index
    %c0_44 = arith.constant 0 : index
    %74 = vector.load %arg8[%c2_42, %c0_43, %c0_44] : memref<10x1x128xf32, #tpu.memory_space<vmem>>, vector<1x1x128xf32>
    %75 = vector.shape_cast %74 : vector<1x1x128xf32> to vector<1x128xf32>
    %76 = vector.broadcast %75 : vector<1x128xf32> to vector<256x128xf32>
    %77 = arith.addf %73, %76 : vector<256x128xf32>
    %c0_45 = arith.constant 0 : index
    %c0_46 = arith.constant 0 : index
    %78 = vector.load %arg12[%c0_45, %c0_46] : memref<256x128xf32, #tpu.memory_space<vmem>>, vector<256x128xf32>
    %79 = vector.extract_strided_slice %10 {offsets = [3, 0], sizes = [1, 128], strides = [1, 1]} : vector<11x128xf32> to vector<1x128xf32>
    %80 = vector.shape_cast %79 : vector<1x128xf32> to vector<128xf32>
    %81 = vector.shape_cast %80 : vector<128xf32> to vector<1x128xf32>
    %82 = vector.broadcast %81 : vector<1x128xf32> to vector<256x128xf32>
    %83 = arith.mulf %82, %77 : vector<256x128xf32>
    %84 = vector.extract_strided_slice %12 {offsets = [3, 0], sizes = [1, 128], strides = [1, 1]} : vector<11x128xf32> to vector<1x128xf32>
    %85 = vector.shape_cast %84 : vector<1x128xf32> to vector<128xf32>
    %86 = vector.shape_cast %85 : vector<128xf32> to vector<1x128xf32>
    %87 = vector.broadcast %86 : vector<1x128xf32> to vector<256x128xf32>
    %88 = arith.addf %83, %87 : vector<256x128xf32>
    %cst_47 = arith.constant 0.000000e+00 : f32
    %89 = vector.broadcast %cst_47 : f32 to vector<256x128xf32>
    %90 = arith.maximumf %88, %89 : vector<256x128xf32>
    %91 = arith.truncf %90 : vector<256x128xf32> to vector<256x128xbf16>
    %c3 = arith.constant 3 : index
    %c0_48 = arith.constant 0 : index
    %c0_49 = arith.constant 0 : index
    %92 = vector.load %arg7[%c3, %c0_48, %c0_49] : memref<10x128x128xbf16, #tpu.memory_space<vmem>>, vector<1x128x128xbf16>
    %93 = vector.shape_cast %92 : vector<1x128x128xbf16> to vector<128x128xbf16>
    %cst_50 = arith.constant dense<0.000000e+00> : vector<256x128xf32>
    %94 = tpu.matmul %91, %93, %cst_50 {dimension_numbers = #tpu.dot_dimension_numbers<[1], [0], [0], [1], [0, 0, 1, 1], [], []>} : vector<256x128xbf16>, vector<128x128xbf16>, vector<256x128xf32> -> vector<256x128xf32>
    %c3_51 = arith.constant 3 : index
    %c0_52 = arith.constant 0 : index
    %c0_53 = arith.constant 0 : index
    %95 = vector.load %arg8[%c3_51, %c0_52, %c0_53] : memref<10x1x128xf32, #tpu.memory_space<vmem>>, vector<1x1x128xf32>
    %96 = vector.shape_cast %95 : vector<1x1x128xf32> to vector<1x128xf32>
    %97 = vector.broadcast %96 : vector<1x128xf32> to vector<256x128xf32>
    %98 = arith.addf %94, %97 : vector<256x128xf32>
    %99 = arith.addf %78, %98 : vector<256x128xf32>
    %c0_54 = arith.constant 0 : index
    %c0_55 = arith.constant 0 : index
    %100 = vector.load %arg12[%c0_54, %c0_55] : memref<256x128xf32, #tpu.memory_space<vmem>>, vector<256x128xf32>
    tpu.vector_store %arg12[%c0_54, %c0_55], %99 {strides = array<i32>} : memref<256x128xf32, #tpu.memory_space<vmem>>, vector<256x128xf32>,
    %c0_56 = arith.constant 0 : index
    %c0_57 = arith.constant 0 : index
    %101 = vector.load %arg12[%c0_56, %c0_57] : memref<256x128xf32, #tpu.memory_space<vmem>>, vector<256x128xf32>
    %102 = vector.extract_strided_slice %10 {offsets = [4, 0], sizes = [1, 128], strides = [1, 1]} : vector<11x128xf32> to vector<1x128xf32>
    %103 = vector.shape_cast %102 : vector<1x128xf32> to vector<128xf32>
    %104 = vector.shape_cast %103 : vector<128xf32> to vector<1x128xf32>
    %105 = vector.broadcast %104 : vector<1x128xf32> to vector<256x128xf32>
    %106 = arith.mulf %105, %101 : vector<256x128xf32>
    %107 = vector.extract_strided_slice %12 {offsets = [4, 0], sizes = [1, 128], strides = [1, 1]} : vector<11x128xf32> to vector<1x128xf32>
    %108 = vector.shape_cast %107 : vector<1x128xf32> to vector<128xf32>
    %109 = vector.shape_cast %108 : vector<128xf32> to vector<1x128xf32>
    %110 = vector.broadcast %109 : vector<1x128xf32> to vector<256x128xf32>
    %111 = arith.addf %106, %110 : vector<256x128xf32>
    %cst_58 = arith.constant 0.000000e+00 : f32
    %112 = vector.broadcast %cst_58 : f32 to vector<256x128xf32>
    %113 = arith.maximumf %111, %112 : vector<256x128xf32>
    %114 = arith.truncf %113 : vector<256x128xf32> to vector<256x128xbf16>
    %c4 = arith.constant 4 : index
    %c0_59 = arith.constant 0 : index
    %c0_60 = arith.constant 0 : index
    %115 = vector.load %arg7[%c4, %c0_59, %c0_60] : memref<10x128x128xbf16, #tpu.memory_space<vmem>>, vector<1x128x128xbf16>
    %116 = vector.shape_cast %115 : vector<1x128x128xbf16> to vector<128x128xbf16>
    %cst_61 = arith.constant dense<0.000000e+00> : vector<256x128xf32>
    %117 = tpu.matmul %114, %116, %cst_61 {dimension_numbers = #tpu.dot_dimension_numbers<[1], [0], [0], [1], [0, 0, 1, 1], [], []>} : vector<256x128xbf16>, vector<128x128xbf16>, vector<256x128xf32> -> vector<256x128xf32>
    %c4_62 = arith.constant 4 : index
    %c0_63 = arith.constant 0 : index
    %c0_64 = arith.constant 0 : index
    %118 = vector.load %arg8[%c4_62, %c0_63, %c0_64] : memref<10x1x128xf32, #tpu.memory_space<vmem>>, vector<1x1x128xf32>
    %119 = vector.shape_cast %118 : vector<1x1x128xf32> to vector<1x128xf32>
    %120 = vector.broadcast %119 : vector<1x128xf32> to vector<256x128xf32>
    %121 = arith.addf %117, %120 : vector<256x128xf32>
    %c0_65 = arith.constant 0 : index
    %c0_66 = arith.constant 0 : index
    %122 = vector.load %arg12[%c0_65, %c0_66] : memref<256x128xf32, #tpu.memory_space<vmem>>, vector<256x128xf32>
    %123 = vector.extract_strided_slice %10 {offsets = [5, 0], sizes = [1, 128], strides = [1, 1]} : vector<11x128xf32> to vector<1x128xf32>
    %124 = vector.shape_cast %123 : vector<1x128xf32> to vector<128xf32>
    %125 = vector.shape_cast %124 : vector<128xf32> to vector<1x128xf32>
    %126 = vector.broadcast %125 : vector<1x128xf32> to vector<256x128xf32>
    %127 = arith.mulf %126, %121 : vector<256x128xf32>
    %128 = vector.extract_strided_slice %12 {offsets = [5, 0], sizes = [1, 128], strides = [1, 1]} : vector<11x128xf32> to vector<1x128xf32>
    %129 = vector.shape_cast %128 : vector<1x128xf32> to vector<128xf32>
    %130 = vector.shape_cast %129 : vector<128xf32> to vector<1x128xf32>
    %131 = vector.broadcast %130 : vector<1x128xf32> to vector<256x128xf32>
    %132 = arith.addf %127, %131 : vector<256x128xf32>
    %cst_67 = arith.constant 0.000000e+00 : f32
    %133 = vector.broadcast %cst_67 : f32 to vector<256x128xf32>
    %134 = arith.maximumf %132, %133 : vector<256x128xf32>
    %135 = arith.truncf %134 : vector<256x128xf32> to vector<256x128xbf16>
    %c5 = arith.constant 5 : index
    %c0_68 = arith.constant 0 : index
    %c0_69 = arith.constant 0 : index
    %136 = vector.load %arg7[%c5, %c0_68, %c0_69] : memref<10x128x128xbf16, #tpu.memory_space<vmem>>, vector<1x128x128xbf16>
    %137 = vector.shape_cast %136 : vector<1x128x128xbf16> to vector<128x128xbf16>
    %cst_70 = arith.constant dense<0.000000e+00> : vector<256x128xf32>
    %138 = tpu.matmul %135, %137, %cst_70 {dimension_numbers = #tpu.dot_dimension_numbers<[1], [0], [0], [1], [0, 0, 1, 1], [], []>} : vector<256x128xbf16>, vector<128x128xbf16>, vector<256x128xf32> -> vector<256x128xf32>
    %c5_71 = arith.constant 5 : index
    %c0_72 = arith.constant 0 : index
    %c0_73 = arith.constant 0 : index
    %139 = vector.load %arg8[%c5_71, %c0_72, %c0_73] : memref<10x1x128xf32, #tpu.memory_space<vmem>>, vector<1x1x128xf32>
    %140 = vector.shape_cast %139 : vector<1x1x128xf32> to vector<1x128xf32>
    %141 = vector.broadcast %140 : vector<1x128xf32> to vector<256x128xf32>
    %142 = arith.addf %138, %141 : vector<256x128xf32>
    %143 = arith.addf %122, %142 : vector<256x128xf32>
    %c0_74 = arith.constant 0 : index
    %c0_75 = arith.constant 0 : index
    %144 = vector.load %arg12[%c0_74, %c0_75] : memref<256x128xf32, #tpu.memory_space<vmem>>, vector<256x128xf32>
    tpu.vector_store %arg12[%c0_74, %c0_75], %143 {strides = array<i32>} : memref<256x128xf32, #tpu.memory_space<vmem>>, vector<256x128xf32>,
    %c0_76 = arith.constant 0 : index
    %c0_77 = arith.constant 0 : index
    %145 = vector.load %arg12[%c0_76, %c0_77] : memref<256x128xf32, #tpu.memory_space<vmem>>, vector<256x128xf32>
    %146 = vector.extract_strided_slice %10 {offsets = [6, 0], sizes = [1, 128], strides = [1, 1]} : vector<11x128xf32> to vector<1x128xf32>
    %147 = vector.shape_cast %146 : vector<1x128xf32> to vector<128xf32>
    %148 = vector.shape_cast %147 : vector<128xf32> to vector<1x128xf32>
    %149 = vector.broadcast %148 : vector<1x128xf32> to vector<256x128xf32>
    %150 = arith.mulf %149, %145 : vector<256x128xf32>
    %151 = vector.extract_strided_slice %12 {offsets = [6, 0], sizes = [1, 128], strides = [1, 1]} : vector<11x128xf32> to vector<1x128xf32>
    %152 = vector.shape_cast %151 : vector<1x128xf32> to vector<128xf32>
    %153 = vector.shape_cast %152 : vector<128xf32> to vector<1x128xf32>
    %154 = vector.broadcast %153 : vector<1x128xf32> to vector<256x128xf32>
    %155 = arith.addf %150, %154 : vector<256x128xf32>
    %cst_78 = arith.constant 0.000000e+00 : f32
    %156 = vector.broadcast %cst_78 : f32 to vector<256x128xf32>
    %157 = arith.maximumf %155, %156 : vector<256x128xf32>
    %158 = arith.truncf %157 : vector<256x128xf32> to vector<256x128xbf16>
    %c6 = arith.constant 6 : index
    %c0_79 = arith.constant 0 : index
    %c0_80 = arith.constant 0 : index
    %159 = vector.load %arg7[%c6, %c0_79, %c0_80] : memref<10x128x128xbf16, #tpu.memory_space<vmem>>, vector<1x128x128xbf16>
    %160 = vector.shape_cast %159 : vector<1x128x128xbf16> to vector<128x128xbf16>
    %cst_81 = arith.constant dense<0.000000e+00> : vector<256x128xf32>
    %161 = tpu.matmul %158, %160, %cst_81 {dimension_numbers = #tpu.dot_dimension_numbers<[1], [0], [0], [1], [0, 0, 1, 1], [], []>} : vector<256x128xbf16>, vector<128x128xbf16>, vector<256x128xf32> -> vector<256x128xf32>
    %c6_82 = arith.constant 6 : index
    %c0_83 = arith.constant 0 : index
    %c0_84 = arith.constant 0 : index
    %162 = vector.load %arg8[%c6_82, %c0_83, %c0_84] : memref<10x1x128xf32, #tpu.memory_space<vmem>>, vector<1x1x128xf32>
    %163 = vector.shape_cast %162 : vector<1x1x128xf32> to vector<1x128xf32>
    %164 = vector.broadcast %163 : vector<1x128xf32> to vector<256x128xf32>
    %165 = arith.addf %161, %164 : vector<256x128xf32>
    %c0_85 = arith.constant 0 : index
    %c0_86 = arith.constant 0 : index
    %166 = vector.load %arg12[%c0_85, %c0_86] : memref<256x128xf32, #tpu.memory_space<vmem>>, vector<256x128xf32>
    %167 = vector.extract_strided_slice %10 {offsets = [7, 0], sizes = [1, 128], strides = [1, 1]} : vector<11x128xf32> to vector<1x128xf32>
    %168 = vector.shape_cast %167 : vector<1x128xf32> to vector<128xf32>
    %169 = vector.shape_cast %168 : vector<128xf32> to vector<1x128xf32>
    %170 = vector.broadcast %169 : vector<1x128xf32> to vector<256x128xf32>
    %171 = arith.mulf %170, %165 : vector<256x128xf32>
    %172 = vector.extract_strided_slice %12 {offsets = [7, 0], sizes = [1, 128], strides = [1, 1]} : vector<11x128xf32> to vector<1x128xf32>
    %173 = vector.shape_cast %172 : vector<1x128xf32> to vector<128xf32>
    %174 = vector.shape_cast %173 : vector<128xf32> to vector<1x128xf32>
    %175 = vector.broadcast %174 : vector<1x128xf32> to vector<256x128xf32>
    %176 = arith.addf %171, %175 : vector<256x128xf32>
    %cst_87 = arith.constant 0.000000e+00 : f32
    %177 = vector.broadcast %cst_87 : f32 to vector<256x128xf32>
    %178 = arith.maximumf %176, %177 : vector<256x128xf32>
    %179 = arith.truncf %178 : vector<256x128xf32> to vector<256x128xbf16>
    %c7 = arith.constant 7 : index
    %c0_88 = arith.constant 0 : index
    %c0_89 = arith.constant 0 : index
    %180 = vector.load %arg7[%c7, %c0_88, %c0_89] : memref<10x128x128xbf16, #tpu.memory_space<vmem>>, vector<1x128x128xbf16>
    %181 = vector.shape_cast %180 : vector<1x128x128xbf16> to vector<128x128xbf16>
    %cst_90 = arith.constant dense<0.000000e+00> : vector<256x128xf32>
    %182 = tpu.matmul %179, %181, %cst_90 {dimension_numbers = #tpu.dot_dimension_numbers<[1], [0], [0], [1], [0, 0, 1, 1], [], []>} : vector<256x128xbf16>, vector<128x128xbf16>, vector<256x128xf32> -> vector<256x128xf32>
    %c7_91 = arith.constant 7 : index
    %c0_92 = arith.constant 0 : index
    %c0_93 = arith.constant 0 : index
    %183 = vector.load %arg8[%c7_91, %c0_92, %c0_93] : memref<10x1x128xf32, #tpu.memory_space<vmem>>, vector<1x1x128xf32>
    %184 = vector.shape_cast %183 : vector<1x1x128xf32> to vector<1x128xf32>
    %185 = vector.broadcast %184 : vector<1x128xf32> to vector<256x128xf32>
    %186 = arith.addf %182, %185 : vector<256x128xf32>
    %187 = arith.addf %166, %186 : vector<256x128xf32>
    %c0_94 = arith.constant 0 : index
    %c0_95 = arith.constant 0 : index
    %188 = vector.load %arg12[%c0_94, %c0_95] : memref<256x128xf32, #tpu.memory_space<vmem>>, vector<256x128xf32>
    tpu.vector_store %arg12[%c0_94, %c0_95], %187 {strides = array<i32>} : memref<256x128xf32, #tpu.memory_space<vmem>>, vector<256x128xf32>,
    %c0_96 = arith.constant 0 : index
    %c0_97 = arith.constant 0 : index
    %189 = vector.load %arg12[%c0_96, %c0_97] : memref<256x128xf32, #tpu.memory_space<vmem>>, vector<256x128xf32>
    %190 = vector.extract_strided_slice %10 {offsets = [8, 0], sizes = [1, 128], strides = [1, 1]} : vector<11x128xf32> to vector<1x128xf32>
    %191 = vector.shape_cast %190 : vector<1x128xf32> to vector<128xf32>
    %192 = vector.shape_cast %191 : vector<128xf32> to vector<1x128xf32>
    %193 = vector.broadcast %192 : vector<1x128xf32> to vector<256x128xf32>
    %194 = arith.mulf %193, %189 : vector<256x128xf32>
    %195 = vector.extract_strided_slice %12 {offsets = [8, 0], sizes = [1, 128], strides = [1, 1]} : vector<11x128xf32> to vector<1x128xf32>
    %196 = vector.shape_cast %195 : vector<1x128xf32> to vector<128xf32>
    %197 = vector.shape_cast %196 : vector<128xf32> to vector<1x128xf32>
    %198 = vector.broadcast %197 : vector<1x128xf32> to vector<256x128xf32>
    %199 = arith.addf %194, %198 : vector<256x128xf32>
    %cst_98 = arith.constant 0.000000e+00 : f32
    %200 = vector.broadcast %cst_98 : f32 to vector<256x128xf32>
    %201 = arith.maximumf %199, %200 : vector<256x128xf32>
    %202 = arith.truncf %201 : vector<256x128xf32> to vector<256x128xbf16>
    %c8 = arith.constant 8 : index
    %c0_99 = arith.constant 0 : index
    %c0_100 = arith.constant 0 : index
    %203 = vector.load %arg7[%c8, %c0_99, %c0_100] : memref<10x128x128xbf16, #tpu.memory_space<vmem>>, vector<1x128x128xbf16>
    %204 = vector.shape_cast %203 : vector<1x128x128xbf16> to vector<128x128xbf16>
    %cst_101 = arith.constant dense<0.000000e+00> : vector<256x128xf32>
    %205 = tpu.matmul %202, %204, %cst_101 {dimension_numbers = #tpu.dot_dimension_numbers<[1], [0], [0], [1], [0, 0, 1, 1], [], []>} : vector<256x128xbf16>, vector<128x128xbf16>, vector<256x128xf32> -> vector<256x128xf32>
    %c8_102 = arith.constant 8 : index
    %c0_103 = arith.constant 0 : index
    %c0_104 = arith.constant 0 : index
    %206 = vector.load %arg8[%c8_102, %c0_103, %c0_104] : memref<10x1x128xf32, #tpu.memory_space<vmem>>, vector<1x1x128xf32>
    %207 = vector.shape_cast %206 : vector<1x1x128xf32> to vector<1x128xf32>
    %208 = vector.broadcast %207 : vector<1x128xf32> to vector<256x128xf32>
    %209 = arith.addf %205, %208 : vector<256x128xf32>
    %c0_105 = arith.constant 0 : index
    %c0_106 = arith.constant 0 : index
    %210 = vector.load %arg12[%c0_105, %c0_106] : memref<256x128xf32, #tpu.memory_space<vmem>>, vector<256x128xf32>
    %211 = vector.extract_strided_slice %10 {offsets = [9, 0], sizes = [1, 128], strides = [1, 1]} : vector<11x128xf32> to vector<1x128xf32>
    %212 = vector.shape_cast %211 : vector<1x128xf32> to vector<128xf32>
    %213 = vector.shape_cast %212 : vector<128xf32> to vector<1x128xf32>
    %214 = vector.broadcast %213 : vector<1x128xf32> to vector<256x128xf32>
    %215 = arith.mulf %214, %209 : vector<256x128xf32>
    %216 = vector.extract_strided_slice %12 {offsets = [9, 0], sizes = [1, 128], strides = [1, 1]} : vector<11x128xf32> to vector<1x128xf32>
    %217 = vector.shape_cast %216 : vector<1x128xf32> to vector<128xf32>
    %218 = vector.shape_cast %217 : vector<128xf32> to vector<1x128xf32>
    %219 = vector.broadcast %218 : vector<1x128xf32> to vector<256x128xf32>
    %220 = arith.addf %215, %219 : vector<256x128xf32>
    %cst_107 = arith.constant 0.000000e+00 : f32
    %221 = vector.broadcast %cst_107 : f32 to vector<256x128xf32>
    %222 = arith.maximumf %220, %221 : vector<256x128xf32>
    %223 = arith.truncf %222 : vector<256x128xf32> to vector<256x128xbf16>
    %c9 = arith.constant 9 : index
    %c0_108 = arith.constant 0 : index
    %c0_109 = arith.constant 0 : index
    %224 = vector.load %arg7[%c9, %c0_108, %c0_109] : memref<10x128x128xbf16, #tpu.memory_space<vmem>>, vector<1x128x128xbf16>
    %225 = vector.shape_cast %224 : vector<1x128x128xbf16> to vector<128x128xbf16>
    %cst_110 = arith.constant dense<0.000000e+00> : vector<256x128xf32>
    %226 = tpu.matmul %223, %225, %cst_110 {dimension_numbers = #tpu.dot_dimension_numbers<[1], [0], [0], [1], [0, 0, 1, 1], [], []>} : vector<256x128xbf16>, vector<128x128xbf16>, vector<256x128xf32> -> vector<256x128xf32>
    %c9_111 = arith.constant 9 : index
    %c0_112 = arith.constant 0 : index
    %c0_113 = arith.constant 0 : index
    %227 = vector.load %arg8[%c9_111, %c0_112, %c0_113] : memref<10x1x128xf32, #tpu.memory_space<vmem>>, vector<1x1x128xf32>
    %228 = vector.shape_cast %227 : vector<1x1x128xf32> to vector<1x128xf32>
    %229 = vector.broadcast %228 : vector<1x128xf32> to vector<256x128xf32>
    %230 = arith.addf %226, %229 : vector<256x128xf32>
    %231 = arith.addf %210, %230 : vector<256x128xf32>
    %c0_114 = arith.constant 0 : index
    %c0_115 = arith.constant 0 : index
    %232 = vector.load %arg12[%c0_114, %c0_115] : memref<256x128xf32, #tpu.memory_space<vmem>>, vector<256x128xf32>
    tpu.vector_store %arg12[%c0_114, %c0_115], %231 {strides = array<i32>} : memref<256x128xf32, #tpu.memory_space<vmem>>, vector<256x128xf32>,
    %c0_116 = arith.constant 0 : index
    %c0_117 = arith.constant 0 : index
    %233 = vector.load %arg12[%c0_116, %c0_117] : memref<256x128xf32, #tpu.memory_space<vmem>>, vector<256x128xf32>
    %234 = vector.extract_strided_slice %10 {offsets = [10, 0], sizes = [1, 128], strides = [1, 1]} : vector<11x128xf32> to vector<1x128xf32>
    %235 = vector.shape_cast %234 : vector<1x128xf32> to vector<128xf32>
    %236 = vector.shape_cast %235 : vector<128xf32> to vector<1x128xf32>
    %237 = vector.broadcast %236 : vector<1x128xf32> to vector<256x128xf32>
    %238 = arith.mulf %237, %233 : vector<256x128xf32>
    %239 = vector.extract_strided_slice %12 {offsets = [10, 0], sizes = [1, 128], strides = [1, 1]} : vector<11x128xf32> to vector<1x128xf32>
    %240 = vector.shape_cast %239 : vector<1x128xf32> to vector<128xf32>
    %241 = vector.shape_cast %240 : vector<128xf32> to vector<1x128xf32>
    %242 = vector.broadcast %241 : vector<1x128xf32> to vector<256x128xf32>
    %243 = arith.addf %238, %242 : vector<256x128xf32>
    %cst_118 = arith.constant 0.000000e+00 : f32
    %244 = vector.broadcast %cst_118 : f32 to vector<256x128xf32>
    %245 = arith.maximumf %243, %244 : vector<256x128xf32>
    %c0_119 = arith.constant 0 : index
    %c0_120 = arith.constant 0 : index
    %246 = vector.load %arg9[%c0_119, %c0_120] : memref<1x128xf32, #tpu.memory_space<vmem>>, vector<1x128xf32>
    %247 = tpu.transpose %245, [1, 0] : vector<256x128xf32> -> vector<128x256xf32>
    %cst_121 = arith.constant dense<0.000000e+00> : vector<1x256xf32>
    %248 = tpu.matmul %246, %247, %cst_121 {dimension_numbers = #tpu.dot_dimension_numbers<[1], [0], [0], [1], [0, 0, 1, 1], [], []>} : vector<1x128xf32>, vector<128x256xf32>, vector<1x256xf32> -> vector<1x256xf32>
    %c0_122 = arith.constant 0 : index
    %c0_123 = arith.constant 0 : index
    %249 = vector.load %arg10[%c0_122, %c0_123] : memref<1x1xf32, #tpu.memory_space<vmem>>, vector<1x1xf32>
    %250 = vector.broadcast %249 : vector<1x1xf32> to vector<1x256xf32>
    %251 = arith.addf %248, %250 : vector<1x256xf32>
    %c0_124 = arith.constant 0 : index
    %c0_125 = arith.constant 0 : index
    %c0_126 = arith.constant 0 : index
    %252 = vector.load %arg11[%c0_124, %c0_125, %c0_126] : memref<1x1x256xf32, #tpu.memory_space<vmem>>, vector<1x1x256xf32>
    %253 = vector.shape_cast %252 : vector<1x1x256xf32> to vector<1x256xf32>
    %254 = vector.shape_cast %251 : vector<1x256xf32> to vector<1x1x256xf32>
    tpu.vector_store %arg11[%c0_124, %c0_125, %c0_126], %254 {strides = array<i32>} : memref<1x1x256xf32, #tpu.memory_space<vmem>>, vector<1x1x256xf32>,
    return
  }
  func.func @transform_0(%arg0: i32, %arg1: i32) -> (i32, i32, i32) {
    %c0_i32 = arith.constant 0 : i32
    %c0_i32_0 = arith.constant 0 : i32
    return %arg0, %arg1, %c0_i32 : i32, i32, i32
  }
  func.func @transform_1(%arg0: i32, %arg1: i32) -> (i32, i32, i32) {
    %c0_i32 = arith.constant 0 : i32
    %c0_i32_0 = arith.constant 0 : i32
    %c0_i32_1 = arith.constant 0 : i32
    return %arg0, %c0_i32, %c0_i32_0 : i32, i32, i32
  }
  func.func @transform_2(%arg0: i32, %arg1: i32) -> (i32, i32, i32) {
    %c0_i32 = arith.constant 0 : i32
    %c0_i32_0 = arith.constant 0 : i32
    %c0_i32_1 = arith.constant 0 : i32
    return %arg0, %c0_i32, %c0_i32_0 : i32, i32, i32
  }
  func.func @transform_3(%arg0: i32, %arg1: i32) -> (i32, i32, i32) {
    %c0_i32 = arith.constant 0 : i32
    %c0_i32_0 = arith.constant 0 : i32
    %c0_i32_1 = arith.constant 0 : i32
    return %arg0, %c0_i32, %c0_i32_0 : i32, i32, i32
  }
  func.func @transform_4(%arg0: i32, %arg1: i32) -> (i32, i32) {
    %c0_i32 = arith.constant 0 : i32
    %c0_i32_0 = arith.constant 0 : i32
    %c0_i32_1 = arith.constant 0 : i32
    return %c0_i32, %c0_i32_0 : i32, i32
  }
  func.func @transform_5(%arg0: i32, %arg1: i32) -> (i32, i32, i32) {
    %c0_i32 = arith.constant 0 : i32
    %c0_i32_0 = arith.constant 0 : i32
    %c0_i32_1 = arith.constant 0 : i32
    %c0_i32_2 = arith.constant 0 : i32
    return %c0_i32, %c0_i32_0, %c0_i32_1 : i32, i32, i32
  }
  func.func @transform_6(%arg0: i32, %arg1: i32) -> (i32, i32, i32) {
    %c0_i32 = arith.constant 0 : i32
    %c0_i32_0 = arith.constant 0 : i32
    %c0_i32_1 = arith.constant 0 : i32
    %c0_i32_2 = arith.constant 0 : i32
    return %c0_i32, %c0_i32_0, %c0_i32_1 : i32, i32, i32
  }
  func.func @transform_7(%arg0: i32, %arg1: i32) -> (i32, i32) {
    %c0_i32 = arith.constant 0 : i32
    %c0_i32_0 = arith.constant 0 : i32
    %c0_i32_1 = arith.constant 0 : i32
    return %c0_i32, %c0_i32_0 : i32, i32
  }
  func.func @transform_8(%arg0: i32, %arg1: i32) -> (i32, i32) {
    %c0_i32 = arith.constant 0 : i32
    %c0_i32_0 = arith.constant 0 : i32
    %c0_i32_1 = arith.constant 0 : i32
    return %c0_i32, %c0_i32_0 : i32, i32
  }
  func.func @transform_9(%arg0: i32, %arg1: i32) -> (i32, i32, i32) {
    %c0_i32 = arith.constant 0 : i32
    %c0_i32_0 = arith.constant 0 : i32
    return %arg0, %c0_i32, %arg1 : i32, i32, i32
  }
}

</mosaic_0001>

<bundles_post_ra>
// kernel: tpu_custom_call.1
= control target key start
LH: loop header
LB: loop body
LE: loop exit
PB: predicated region body
PF: predicated region fallthrough
CT: control target
= control target key end

     0   :  { %s9041_s0 = inlined_call_operand.vmem [shape: f32[2,512,8], index: 0, kind: input, shape index: {}]   ;;  %s9042_s1 = inlined_call_operand.vmem [shape: f32[2,1,128], index: 1, kind: input, shape index: {}]   ;;  %s9043_s2 = inlined_call_operand.vmem [shape: f32[2,11,128], index: 2, kind: input, shape index: {}]   ;;  %s9044_s3 = inlined_call_operand.vmem [shape: f32[2,11,128], index: 3, kind: input, shape index: {}]   ;;  %s9045_s4 = inlined_call_operand.vmem [shape: f32[8,128], index: 4, kind: input, shape index: {}]   ;;  %s9046_s5 = inlined_call_operand.vmem [shape: bf16[10,128,128], index: 5, kind: input, shape index: {}]   ;;  %s9047_s6 = inlined_call_operand.vmem [shape: f32[10,1,128], index: 6, kind: input, shape index: {}]   ;;  %s9048_s7 = inlined_call_operand.vmem [shape: f32[1,128], index: 7, kind: input, shape index: {}]   ;;  %s9049_s8 = inlined_call_operand.<no memory space> [shape: f32[1,1], index: 8, kind: input, shape index: {}]   ;;  %s9050_s9 = inlined_call_operand.hbm [shape: f32[2,1,512], index: 9, kind: output, shape index: {}]  }
   0x1   :  { %9054 = sst [smem:[#allocation9_spill]] %s9045_s4  ;;  %v14_v0 = vstv %s9049_s8 }
   0x2   :  { %15 = vst [vmem:[#allocation3] sm:$0x1] %v14_v0 }
   0x3   :  { %16 = vsyncpa [#allocation5], 0 }
   0x4   :  { %18 = vsyncpa [#allocation5 + $0x1], 0  ;;  %s6685_s11 = smov 0   ;;  %s6687_s12 = smov 0  }
   0x5   :  { %s6689_s13 = smov 0   ;;  %s6691_s14 = smov 0  }
   0x6   :  { %s6693_s15 = smov 0   ;;  %s6695_s16 = smov 0  }
   0x7   :  { %s6697_s17 = smov 0   ;;  %s6699_s18 = smov 0  }
   0x8 LB: > { %s5205_s8 = sadd.s32 4294967295, %s6627_s18   ;;  %s5206_s19 = sadd.s32 4294967294, %s6627_s18   ;;  %s6627_s18 = sphi %s6699_s18, %s24_s18   ;;  %s6623_s17 = sphi %s6697_s17, %s9069_s17   ;;  %s6619_s16 = sphi %s6695_s16, %s9068_s16   ;;  %s6615_s15 = sphi %s6693_s15, %s9067_s15   ;;  %s6611_s14 = sphi %s6691_s14, %s9066_s14   ;;  %s6607_s13 = sphi %s6689_s13, %s9065_s13   ;;  %s6603_s12 = sphi %s6687_s12, %s9064_s12   ;;  %s6599_s11 = sphi %s6685_s11, %s9063_s11  }
   0x9   : > { %s33_s20 = sadd.s32 1, %s6619_s16  ;;  %s36_s21 = sadd.s32 1, %s6623_s17 }
   0xa   : > { %p34_p0 = scmp.ge.s32.totalorder %s33_s20, 2  ;;  %p266_p1 = scmp.ne.s32.totalorder %s6607_s13, %s6603_s12 }
   0xb   : > { %p267_p2 = scmp.eq.s32.totalorder %s5205_s8, 3  ;;  %p272_p5 = scmp.ne.s32.totalorder %s6603_s12, %s6599_s11 }
   0xc   : > { %s9071_s20 = smov (%p34_p0, %s33_s20), 0  ;;  %s9073_s21 = smov (!%p34_p0, %s36_s21), %s6623_s17 }
   0xd   : > { %s252_s22 = ssub.s32 %s6619_s16, %s9071_s20  ;;  %p6736_p3 = por %p267_p2, %p266_p1 }
   0xe   : > { %p38_p4 = scmp.ge.s32.totalorder %s9073_s21, 2  ;;  %p273_p6 = scmp.eq.s32.totalorder %s5206_s19, 3 }
   0xf   : > { %p5209_p7 = scmp.ge.s32.totalorder %s6627_s18, 1  ;;  %p341_p9 = scmp.lt.s32.totalorder %s6627_s18, 5 }
  0x10   : > { %s9075_s21 = smov (%p38_p4, %s9073_s21), 0  ;;  %p6745_p8 = por %p273_p6, %p272_p5 }
  0x11   : > { %9056 = sst [smem:[#allocation7_spill]] %s9075_s21  ;;  %s251_s25 = ssub.s32 %s6623_s17, %s9075_s21 }
  0x12   : > { %s256_s26 = sadd.s32 1, %s6607_s13  ;;  %s253_s27 = sor.u32 %s252_s22, %s251_s25 }
  0x13   : > { %p342_p10 = pnand %p5209_p7, %p341_p9  ;;  %p254_p11 = scmp.eq.s32.totalorder %s253_s27, 0 }
  0x15   : > { %s6754_s28 = scalar_select %p254_p11, %s6607_s13, %s256_s26  }
  0x16   : > { %345 = sbr.rel (%p342_p10) target bundleno = 2867 (0xb33), region = 56 }
  0x1d   : > { %s9058_s4 = sld [smem:[#allocation9_spill]]  ;;  %s5211_s10 = sshll.u32 %s6611_s14, 5  ;;  %v6447_v2 = vld [vmem:[%s9046_s5] sm:$0xff]   ;;  %v9052_v3 = vlaneseq  ;;  %vm459_vm0 = vcmask 64512   ;;  %v6448_v20 = vld [vmem:[%s9046_s5 + $0x8] sm:$0xff]   ;;  %v6449_v27 = vld [vmem:[%s9046_s5 + $0x10] sm:$0xff]  }
  0x1e   : > { %p395_p12 = scmp.lt.s32.totalorder %s6615_s15, 1  ;;  %p397_p13 = scmp.lt.s32.totalorder %s5211_s10, 63  ;;  %v6450_v31 = vld [vmem:[%s9046_s5 + $0x18] sm:$0xff]   ;;  %v6451_v48 = vld [vmem:[%s9046_s5 + $0x20] sm:$0xff]   ;;  %v6452_v49 = vld [vmem:[%s9046_s5 + $0x28] sm:$0xff]  }
  0x1f   : > { %v6775_v4 = vshrl.u32 %v9052_v3, 7  ;;  %v6453_v50 = vld [vmem:[%s9046_s5 + $0x30] sm:$0xff]   ;;  %v6454_v51 = vld [vmem:[%s9046_s5 + $0x38] sm:$0xff]   ;;  %v6455_v52 = vld [vmem:[%s9046_s5 + $0x40] sm:$0xff]  }
  0x20   : > { %s6765_s22 = scalar_select %p395_p12, %s6615_s15, 1  ;;  %v6456_v53 = vld [vmem:[%s9046_s5 + $0x48] sm:$0xff]   ;;  %v6457_v54 = vld [vmem:[%s9046_s5 + $0x50] sm:$0xff]   ;;  %v6458_v55 = vld [vmem:[%s9046_s5 + $0x58] sm:$0xff]  }
  0x21   : > { %s9077_s10 = smov (!%p397_p13, %s5211_s10), 63  ;;  %v6792_v8 = vsub.s32 1, %v6775_v4  ;;  %v6797_v11 = vsub.s32 2, %v6775_v4  ;;  %v6459_v56 = vld [vmem:[%s9046_s5 + $0x60] sm:$0xff]   ;;  %v6908_v57 = vsub.s32 0, %v6775_v4 }
  0x22   : > { %s5212_s25 = sshll.u32 %s6765_s22, 6  ;;  %s5500_s29 = sshll.u32 %s6765_s22, 4 }
  0x23   : > { %v451_v1 = vld [vmem:[%s9058_s4] sm:$0xff]  ;;  %s400_s26 = sadd.s32 %s5212_s25, %s9077_s10  ;;  %s6783_s19 = scalar_lea.vmem %s9043_s2, %s5500_s29 }
  0x24   : > { %5809 = vmatprep.subr.mxu0 %v451_v1  ;;  %6371 = vmatprep.subr.mxu1 %v451_v1  ;;  %s5213_s27 = sshll.u32 %s400_s26, 3  ;;  %s6788_s26 = scalar_lea.vmem %s9044_s3, %s5500_s29  ;;  %v814_v9 = vld [vmem:[%s6783_s19 + $0x8] sm:$0x7]  ;;  %v6915_v58 = vld [vmem:[%s6783_s19] sm:$0xff] }
  0x25   : > { %5810 = vmatpush3.msra.mxu0 %v451_v1  ;;  %6372 = vmatpush3.msra.mxu1 %v451_v1  ;;  %s6772_s21 = scalar_lea.vmem %s9041_s0, %s5213_s27  ;;  %v816_v10 = vld [vmem:[%s6788_s26 + $0x8] sm:$0x7]  ;;  %v6801_v12 = vrot.slane %v814_v9, %v6792_v8  ;;  %v6809_v15 = vrot.slane %v814_v9, %v6797_v11  ;;  %s406_s10 = scalar_lea.vmem %s9042_s1, %s6765_s22  ;;  %v6918_v59 = vld [vmem:[%s6788_s26] sm:$0xff]  ;;  %v6924_v61 = vrot.slane %v6915_v58, %v6908_v57 }
  0x26   : > { %5859 = vmatprep.subr.bf16.mxu1 %v6447_v2  ;;  %v419_v5 = vld [vmem:[%s6772_s21] sm:$0xff]  ;;  %v420_v6 = vld [vmem:[%s6772_s21 + $0x8] sm:$0xff]  ;;  %v421_v7 = vld [vmem:[%s6772_s21 + $0x10] sm:$0xff]  ;;  %v6804_v13 = vrot.slane %v816_v10, %v6792_v8  ;;  %v6812_v16 = vrot.slane %v816_v10, %v6797_v11  ;;  %5907 = vmatprep.subr.bf16.mxu0 %v6455_v52  ;;  %v6928_v63 = vrot.slane %v6918_v59, %v6908_v57  ;;  %s5495_s4 = sshll.u32 %s6611_s14, 1 }
  0x27   : > { %5811 = vmatprep.mubr.msk.f32.mxu0 %vm459_vm0, %v419_v5  ;;  %v422_v14 = vld [vmem:[%s6772_s21 + $0x18] sm:$0xff]  ;;  %v423_v17 = vld [vmem:[%s6772_s21 + $0x20] sm:$0xff]  ;;  %v436_v19 = vld [vmem:[%s6772_s21 + $0x88] sm:$0xff] }
  0x28   : > { %5812 = vmatmul.mubr.msk.f32.vlgmr.msra.gmra.mrb[0].mxu0 %vm459_vm0, %v420_v6  ;;  %9059 = vst [vmem:[#allocation8_spill] sm:$0xff] %v6812_v16  ;;  %v435_v18 = vld [vmem:[%s6772_s21 + $0x80] sm:$0xff]  ;;  %v437_v21 = vld [vmem:[%s6772_s21 + $0x90] sm:$0xff]  ;;  %v424_v22 = vld [vmem:[%s6772_s21 + $0x28] sm:$0xff] }
  0x29   : > { %5814 = vmatprep.mubr.msk.f32.mxu0 %vm459_vm0, %v421_v7  ;;  %5835 = vmatprep.mubr.msk.f32.mxu1 %vm459_vm0, %v435_v18  ;;  %v425_v23 = vld [vmem:[%s6772_s21 + $0x30] sm:$0xff]  ;;  %v438_v24 = vld [vmem:[%s6772_s21 + $0x98] sm:$0xff]  ;;  %v439_v26 = vld [vmem:[%s6772_s21 + $0xa0] sm:$0xff] }
  0x2a   : > { %5836 = vmatmul.mubr.msk.f32.vlgmr.msra.gmra.mrb[0].mxu1 %vm459_vm0, %v436_v19  ;;  %v426_v25 = vld [vmem:[%s6772_s21 + $0x38] sm:$0xff]  ;;  %v427_v28 = vld [vmem:[%s6772_s21 + $0x40] sm:$0xff]  ;;  %v440_v29 = vld [vmem:[%s6772_s21 + $0xa8] sm:$0xff]  ;;  %5908 = vmatpush3.bf16.msra.mxu0 %v6455_v52 }
  0x2b   : > { %5838 = vmatprep.mubr.msk.f32.mxu1 %vm459_vm0, %v437_v21  ;;  %5860 = vmatpush3.bf16.msra.mxu1 %v6447_v2  ;;  %v441_v30 = vld [vmem:[%s6772_s21 + $0xb0] sm:$0xff]  ;;  %v428_v32 = vld [vmem:[%s6772_s21 + $0x48] sm:$0xff]  ;;  %v442_v34 = vld [vmem:[%s6772_s21 + $0xb8] sm:$0xff] }
  0x2c   : > { %5815 = vmatmul.mubr.msk.f32.gmra.mrb[2].mxu0 %vm459_vm0, %v422_v14  ;;  %5861 = vmatprep.subr.bf16.mxu1 %v6448_v20  ;;  %v429_v33 = vld [vmem:[%s6772_s21 + $0x50] sm:$0xff]  ;;  %v443_v35 = vld [vmem:[%s6772_s21 + $0xc0] sm:$0xff]  ;;  %v430_v36 = vld [vmem:[%s6772_s21 + $0x58] sm:$0xff] }
  0x2d   : > { %5817 = vmatprep.mubr.msk.f32.mxu0 %vm459_vm0, %v423_v17  ;;  %v431_v37 = vld [vmem:[%s6772_s21 + $0x60] sm:$0xff]  ;;  %v444_v38 = vld [vmem:[%s6772_s21 + $0xc8] sm:$0xff]  ;;  %v445_v39 = vld [vmem:[%s6772_s21 + $0xd0] sm:$0xff]  ;;  %5909 = vmatprep.subr.bf16.mxu0 %v6456_v53 }
  0x2e   : > { %5839 = vmatmul.mubr.msk.f32.gmra.mrb[2].mxu1 %vm459_vm0, %v438_v24  ;;  %v432_v40 = vld [vmem:[%s6772_s21 + $0x68] sm:$0xff]  ;;  %v433_v41 = vld [vmem:[%s6772_s21 + $0x70] sm:$0xff]  ;;  %v446_v42 = vld [vmem:[%s6772_s21 + $0xd8] sm:$0xff]  ;;  %5910 = vmatpush3.bf16.msra.mxu0 %v6456_v53 }
  0x2f   : > { %5841 = vmatprep.mubr.msk.f32.mxu1 %vm459_vm0, %v439_v26  ;;  %5862 = vmatpush3.bf16.msra.mxu1 %v6448_v20  ;;  %v447_v43 = vld [vmem:[%s6772_s21 + $0xe0] sm:$0xff]  ;;  %v434_v44 = vld [vmem:[%s6772_s21 + $0x78] sm:$0xff]  ;;  %v448_v45 = vld [vmem:[%s6772_s21 + $0xe8] sm:$0xff] }
  0x30   : > { %5818 = vmatmul.mubr.msk.f32.gmra.mrb[4].mxu0 %vm459_vm0, %v424_v22  ;;  %5863 = vmatprep.subr.bf16.mxu1 %v6449_v27  ;;  %v449_v46 = vld [vmem:[%s6772_s21 + $0xf0] sm:$0xff]  ;;  %v450_v47 = vld [vmem:[%s6772_s21 + $0xf8] sm:$0xff]  ;;  %v6920_v60 = vld [vmem:[%s406_s10] ss:$0 sm:$0xff]  ;;  %s391_s21 = sand.u32 1, %s6603_s12  }
  0x31   : > { %5820 = vmatprep.mubr.msk.f32.mxu0 %vm459_vm0, %v425_v23  ;;  %5911 = vmatprep.subr.bf16.mxu0 %v6457_v54  ;;  %s5210_s8 = sshll.u32 %s391_s21, 1 }
  0x32   : > { %5842 = vmatmul.mubr.msk.f32.gmra.mrb[4].mxu1 %vm459_vm0, %v440_v29  ;;  %5912 = vmatpush3.bf16.msra.mxu0 %v6457_v54  ;;  %s393_s27 = scalar_lea.vmem [#allocation4], %s5210_s8  ;;  %s6631_s8 = smov [#allocation4]  }
  0x33   : > { %5844 = vmatprep.mubr.msk.f32.mxu1 %vm459_vm0, %v441_v30  ;;  %5864 = vmatpush3.bf16.msra.mxu1 %v6449_v27  ;;  %s5093_s29 = sshll.u32 %s393_s27, 4  ;;  %s8990_s29 = int_to_ptr.vmem [resolvable:$true] %s5093_s29 }
  0x34   : > { %5821 = vmatmul.mubr.msk.f32.gmra.mrb[6].mxu0 %vm459_vm0, %v426_v25  ;;  %5865 = vmatprep.subr.bf16.mxu1 %v6450_v31  ;;  %s6533_s22 = scalar_lea.vmem %s8990_s29, 32 }
  0x35   : > { %5823 = vmatprep.mubr.msk.f32.mxu0 %vm459_vm0, %v427_v28  ;;  %5913 = vmatprep.subr.bf16.mxu0 %v6458_v55  ;;  %p6534_p0 = scmp.ne.s32.totalorder %s8990_s29, %s6533_s22 }
  0x36   : > { %5845 = vmatmul.mubr.msk.f32.gmra.mrb[6].mxu1 %vm459_vm0, %v442_v34  ;;  %5914 = vmatpush3.bf16.msra.mxu0 %v6458_v55 }
  0x37   : > { %5847 = vmatprep.mubr.msk.f32.mxu1 %vm459_vm0, %v443_v35  ;;  %5866 = vmatpush3.bf16.msra.mxu1 %v6450_v31  ;;  %p6535_p1 = pnand %p6534_p0, %p6736_p3 }
  0x38   : > { %5824 = vmatmul.mubr.msk.f32.gmra.mrb[8].mxu0 %vm459_vm0, %v428_v32  ;;  %5867 = vmatprep.subr.bf16.mxu1 %v6451_v48 }
  0x39   : > { %5826 = vmatprep.mubr.msk.f32.mxu0 %vm459_vm0, %v429_v33  ;;  %5915 = vmatprep.subr.bf16.mxu0 %v6459_v56  ;;  %p6536_p2 = pneg %p6535_p1 }
  0x3a   : > { %5848 = vmatmul.mubr.msk.f32.gmra.mrb[8].mxu1 %vm459_vm0, %v444_v38  ;;  %5916 = vmatpush3.bf16.msra.mxu0 %v6459_v56 }
  0x3b   : > { %5850 = vmatprep.mubr.msk.f32.mxu1 %vm459_vm0, %v445_v39  ;;  %5868 = vmatpush3.bf16.msra.mxu1 %v6451_v48 }
  0x3c   : > { %5827 = vmatmul.mubr.msk.f32.gmra.mrb[10].mxu0 %vm459_vm0, %v430_v36  ;;  %5869 = vmatprep.subr.bf16.mxu1 %v6452_v49 }
  0x3d   : > { %5829 = vmatprep.mubr.msk.f32.mxu0 %vm459_vm0, %v431_v37 }
  0x3e   : > { %5851 = vmatmul.mubr.msk.f32.gmra.mrb[10].mxu1 %vm459_vm0, %v446_v42 }
  0x3f   : > { %5853 = vmatprep.mubr.msk.f32.mxu1 %vm459_vm0, %v447_v43  ;;  %5870 = vmatpush3.bf16.msra.mxu1 %v6452_v49 }
  0x40   : > { %5830 = vmatmul.mubr.msk.f32.gmra.mrb[12].mxu0 %vm459_vm0, %v432_v40  ;;  %5871 = vmatprep.subr.bf16.mxu1 %v6453_v50 }
  0x41   : > { %5832 = vmatprep.mubr.msk.f32.mxu0 %vm459_vm0, %v433_v41 }
  0x42   : > { %5854 = vmatmul.mubr.msk.f32.gmra.mrb[12].mxu1 %vm459_vm0, %v448_v45 }
  0x43   : > { %5856 = vmatprep.mubr.msk.f32.mxu1 %vm459_vm0, %v449_v46  ;;  %5872 = vmatpush3.bf16.msra.mxu1 %v6453_v50 }
  0x44   : > { %5833 = vmatmul.mubr.msk.f32.gmra.mrb[14].mxu0 %vm459_vm0, %v434_v44  ;;  %5873 = vmatprep.subr.bf16.mxu1 %v6454_v51 }
  0x46   : > { %5857 = vmatmul.mubr.msk.f32.gmra.mrb[14].mxu1 %vm459_vm0, %v450_v47 }
  0x47   : > { %5874 = vmatpush3.bf16.msra.mxu1 %v6454_v51 }
  0xfb   : > { %v5813_v62 = vpop.f32.mrb[0].mxu0 }
  0xfc   : > { %v6931_v0 = vadd.f32 %v5813_v62, %v6920_v60  ;;  %v622_v1 = vpop.f32.mrb[1].mxu0 }
  0xfd   : > { %v6934_v2 = vadd.f32 %v6920_v60, %v622_v1  ;;  %v5837_v17 = vpop.f32.mrb[0].mxu1 }
  0xfe   : > { %v854_v5 = vmul.f32 %v6924_v61, %v6931_v0  ;;  %v6949_v20 = vadd.f32 %v5837_v17, %v6920_v60  ;;  %v702_v21 = vpop.f32.mrb[1].mxu1 }
  0xff   : > { %v853_v6 = vmul.f32 %v6924_v61, %v6934_v2  ;;  %v5816_v7 = vpop.f32.mrb[2].mxu0  ;;  %v6954_v24 = vadd.f32 %v6920_v60, %v702_v21 }
 0x100   : > { %v890_v9 = vadd.f32 %v6928_v63, %v854_v5  ;;  %v6942_v10 = vadd.f32 %v5816_v7, %v6920_v60  ;;  %v632_v14 = vpop.f32.mrb[3].mxu0 }
 0x101   : > { %v889_v18 = vadd.f32 %v6928_v63, %v853_v6  ;;  %v6946_v19 = vadd.f32 %v6920_v60, %v632_v14  ;;  %v5840_v31 = vpop.f32.mrb[2].mxu1 }
 0x102   : > { %v922_v22 = vmax.f32 %v890_v9, 0.0  ;;  %v856_v23 = vmul.f32 %v6924_v61, %v6942_v10  ;;  %v712_v35 = vpop.f32.mrb[3].mxu1  ;;  %v6969_v38 = vadd.f32 %v5840_v31, %v6920_v60 }
 0x103   : > { %v921_v25 = vmax.f32 %v889_v18, 0.0  ;;  %v855_v26 = vmul.f32 %v6924_v61, %v6946_v19  ;;  %v5819_v27 = vpop.f32.mrb[4].mxu0  ;;  %v6974_v42 = vadd.f32 %v6920_v60, %v712_v35 }
 0x104   : > { %v892_v28 = vadd.f32 %v6928_v63, %v856_v23  ;;  %v6960_v29 = vadd.f32 %v5819_v27, %v6920_v60  ;;  %v642_v30 = vpop.f32.mrb[5].mxu0 }
 0x105   : > { %v891_v32 = vadd.f32 %v6928_v63, %v855_v26  ;;  %v6964_v33 = vadd.f32 %v6920_v60, %v642_v30  ;;  %v953_v34 = vpack.c.bf16 %v922_v22, %v921_v25  ;;  %v5843_v46 = vpop.f32.mrb[4].mxu1 }
 0x106   : > { %v924_v36 = vmax.f32 %v892_v28, 0.0  ;;  %v858_v37 = vmul.f32 %v6924_v61, %v6960_v29  ;;  %v722_v50 = vpop.f32.mrb[5].mxu1  ;;  %v6987_v53 = vadd.f32 %v5843_v46, %v6920_v60 }
 0x107   : > { %v923_v39 = vmax.f32 %v891_v32, 0.0  ;;  %v857_v40 = vmul.f32 %v6924_v61, %v6964_v33  ;;  %v5822_v41 = vpop.f32.mrb[6].mxu0  ;;  %5875 = vmatprep.mubr.bf16.mxu1 %v953_v34  ;;  %v6992_v62 = vadd.f32 %v6920_v60, %v722_v50 }
 0x108   : > { %v894_v43 = vadd.f32 %v6928_v63, %v858_v37  ;;  %v6978_v44 = vadd.f32 %v5822_v41, %v6920_v60  ;;  %v652_v45 = vpop.f32.mrb[7].mxu0  ;;  %v870_v41 = vmul.f32 %v6924_v61, %v6949_v20 }
 0x109   : > { %v954_v47 = vpack.c.bf16 %v924_v36, %v923_v39  ;;  %v893_v48 = vadd.f32 %v6928_v63, %v857_v40  ;;  %v6982_v49 = vadd.f32 %v6920_v60, %v652_v45  ;;  %v5846_v7 = vpop.f32.mrb[6].mxu1 }
 0x10a   : > { %v926_v51 = vmax.f32 %v894_v43, 0.0  ;;  %v860_v52 = vmul.f32 %v6924_v61, %v6978_v44  ;;  %v732_v18 = vpop.f32.mrb[7].mxu1  ;;  %v7007_v27 = vadd.f32 %v5846_v7, %v6920_v60 }
 0x10b   : > { %v925_v54 = vmax.f32 %v893_v48, 0.0  ;;  %v859_v55 = vmul.f32 %v6924_v61, %v6982_v49  ;;  %v5825_v56 = vpop.f32.mrb[8].mxu0  ;;  %5876 = vmatmul.mubr.bf16.vlgmr.msra.gmra.mrb[16].mxu1 %v954_v47  ;;  %v7022_v43 = vadd.f32 %v6920_v60, %v732_v18  ;;  %v906_v18 = vadd.f32 %v6928_v63, %v870_v41 }
 0x10c   : > { %v896_v1 = vadd.f32 %v6928_v63, %v860_v52  ;;  %v6996_v5 = vadd.f32 %v5825_v56, %v6920_v60  ;;  %v662_v6 = vpop.f32.mrb[9].mxu0  ;;  %v869_v52 = vmul.f32 %v6924_v61, %v6954_v24 }
 0x10d   : > { %v895_v9 = vadd.f32 %v6928_v63, %v859_v55  ;;  %v7000_v14 = vadd.f32 %v6920_v60, %v662_v6  ;;  %v955_v17 = vpack.c.bf16 %v926_v51, %v925_v54  ;;  %v5849_v32 = vpop.f32.mrb[8].mxu1 }
 0x10e   : > { %v928_v21 = vmax.f32 %v896_v1, 0.0  ;;  %v862_v22 = vmul.f32 %v6924_v61, %v6996_v5  ;;  %v742_v37 = vpop.f32.mrb[9].mxu1  ;;  %v7033_v54 = vadd.f32 %v5849_v32, %v6920_v60 }
 0x10f   : > { %v927_v23 = vmax.f32 %v895_v9, 0.0  ;;  %v861_v25 = vmul.f32 %v6924_v61, %v7000_v14  ;;  %v5828_v26 = vpop.f32.mrb[10].mxu0  ;;  %5879 = vmatprep.mubr.bf16.mxu1 %v955_v17 }
 0x110   : > { %v898_v28 = vadd.f32 %v6928_v63, %v862_v22  ;;  %v7011_v30 = vadd.f32 %v5828_v26, %v6920_v60  ;;  %v672_v31 = vpop.f32.mrb[11].mxu0 }
 0x111   : > { %v897_v34 = vadd.f32 %v6928_v63, %v861_v25  ;;  %v7015_v35 = vadd.f32 %v6920_v60, %v672_v31  ;;  %v956_v36 = vpack.c.bf16 %v928_v21, %v927_v23  ;;  %v5852_v55 = vpop.f32.mrb[10].mxu1  ;;  %v7045_v25 = vadd.f32 %v6920_v60, %v742_v37 }
 0x112   : > { %v930_v39 = vmax.f32 %v898_v28, 0.0  ;;  %v864_v40 = vmul.f32 %v6924_v61, %v7011_v30  ;;  %v752_v7 = vpop.f32.mrb[11].mxu1  ;;  %v7048_v26 = vadd.f32 %v5852_v55, %v6920_v60  ;;  %v871_v55 = vmul.f32 %v6924_v61, %v6974_v42 }
 0x113   : > { %v929_v45 = vmax.f32 %v897_v34, 0.0  ;;  %v863_v46 = vmul.f32 %v6924_v61, %v7015_v35  ;;  %v5831_v47 = vpop.f32.mrb[12].mxu0  ;;  %5880 = vmatmul.mubr.bf16.gmra.mrb[20].mxu1 %v956_v36  ;;  %v905_v34 = vadd.f32 %v6928_v63, %v869_v52 }
 0x114   : > { %v900_v48 = vadd.f32 %v6928_v63, %v864_v40  ;;  %v7028_v50 = vadd.f32 %v5831_v47, %v6920_v60  ;;  %v682_v51 = vpop.f32.mrb[13].mxu0  ;;  %v938_v47 = vmax.f32 %v906_v18, 0.0  ;;  %v873_v18 = vmul.f32 %v6924_v61, %v6992_v62 }
 0x115   : > { %v899_v56 = vadd.f32 %v6928_v63, %v863_v46  ;;  %v7037_v1 = vadd.f32 %v6920_v60, %v682_v51  ;;  %v957_v6 = vpack.c.bf16 %v930_v39, %v929_v45  ;;  %v5855_v36 = vpop.f32.mrb[12].mxu1 }
 0x116   : > { %v932_v9 = vmax.f32 %v900_v48, 0.0  ;;  %v866_v17 = vmul.f32 %v6924_v61, %v7028_v50  ;;  %v762_v37 = vpop.f32.mrb[13].mxu1  ;;  %v872_v48 = vmul.f32 %v6924_v61, %v6969_v38 }
 0x117   : > { %v931_v21 = vmax.f32 %v899_v56, 0.0  ;;  %v865_v22 = vmul.f32 %v6924_v61, %v7037_v1  ;;  %v5834_v23 = vpop.f32.mrb[14].mxu0  ;;  %5883 = vmatprep.mubr.bf16.mxu1 %v957_v6  ;;  %v7068_v56 = vadd.f32 %v6920_v60, %v752_v7  ;;  %v7078_v7 = vadd.f32 %v5855_v36, %v6920_v60 }
 0x118   : > { %v902_v28 = vadd.f32 %v6928_v63, %v866_v17  ;;  %v7052_v31 = vadd.f32 %v5834_v23, %v6920_v60  ;;  %v692_v32 = vpop.f32.mrb[15].mxu0  ;;  %v874_v17 = vmul.f32 %v6924_v61, %v6987_v53 }
 0x119   : > { %v901_v39 = vadd.f32 %v6928_v63, %v865_v22  ;;  %v7057_v40 = vadd.f32 %v6920_v60, %v692_v32  ;;  %v958_v41 = vpack.c.bf16 %v932_v9, %v931_v21  ;;  %v937_v9 = vmax.f32 %v905_v34, 0.0  ;;  %v5858_v21 = vpop.f32.mrb[14].mxu1 }
 0x11a   : > { %v934_v45 = vmax.f32 %v902_v28, 0.0  ;;  %v868_v46 = vmul.f32 %v6924_v61, %v7052_v31  ;;  %v772_v28 = vpop.f32.mrb[15].mxu1  ;;  %v7085_v3 = vadd.f32 %v5858_v21, %v6920_v60 }
 0x11b   : > { %v933_v51 = vmax.f32 %v901_v39, 0.0  ;;  %v867_v52 = vmul.f32 %v6924_v61, %v7057_v40  ;;  %5884 = vmatmul.mubr.bf16.gmra.mrb[24].mxu1 %v958_v41  ;;  %v908_v39 = vadd.f32 %v6928_v63, %v872_v48  ;;  %v7081_v41 = vadd.f32 %v6920_v60, %v762_v37 }
 0x11c   : > { %v904_v6 = vadd.f32 %v6928_v63, %v868_v46  ;;  %v907_v46 = vadd.f32 %v6928_v63, %v871_v55  ;;  %v909_v48 = vadd.f32 %v6928_v63, %v873_v18  ;;  %v876_v37 = vmul.f32 %v6924_v61, %v7007_v27 }
 0x11d   : > { %v903_v22 = vadd.f32 %v6928_v63, %v867_v52  ;;  %v959_v23 = vpack.c.bf16 %v934_v45, %v933_v51  ;;  %v7088_v52 = vadd.f32 %v6920_v60, %v772_v28  ;;  %v910_v45 = vadd.f32 %v6928_v63, %v874_v17 }
 0x11e   : > { %v936_v32 = vmax.f32 %v904_v6, 0.0  ;;  %v961_v51 = vpack.c.bf16 %v938_v47, %v937_v9  ;;  %v940_v6 = vmax.f32 %v908_v39, 0.0  ;;  %v939_v16 = vmax.f32 %v907_v46, 0.0 }
 0x11f   : > { %v935_v34 = vmax.f32 %v903_v22, 0.0  ;;  %5887 = vmatprep.mubr.bf16.mxu1 %v959_v23  ;;  %v875_v55 = vmul.f32 %v6924_v61, %v7022_v43  ;;  %v942_v21 = vmax.f32 %v910_v45, 0.0  ;;  %v941_v22 = vmax.f32 %v909_v48, 0.0 }
 0x120   : > { %v878_v60 = vmul.f32 %v6924_v61, %v7033_v54  ;;  %v877_v17 = vmul.f32 %v6924_v61, %v7045_v25  ;;  %v912_v47 = vadd.f32 %v6928_v63, %v876_v37  ;;  %v962_v18 = vpack.c.bf16 %v940_v6, %v939_v16 }
 0x121   : > { %v960_v36 = vpack.c.bf16 %v936_v32, %v935_v34  ;;  %v911_v9 = vadd.f32 %v6928_v63, %v875_v55  ;;  %v963_v32 = vpack.c.bf16 %v942_v21, %v941_v22  ;;  %v880_v46 = vmul.f32 %v6924_v61, %v7048_v26 }
 0x122   : > { %v914_v23 = vadd.f32 %v6928_v63, %v878_v60  ;;  %v913_v28 = vadd.f32 %v6928_v63, %v877_v17  ;;  %v944_v39 = vmax.f32 %v912_v47, 0.0  ;;  %v879_v45 = vmul.f32 %v6924_v61, %v7068_v56 }
 0x123   : > { %5888 = vmatmul.mubr.bf16.gmra.mrb[28].mxu1 %v960_v36  ;;  %v943_v34 = vmax.f32 %v911_v9, 0.0  ;;  %v882_v16 = vmul.f32 %v6924_v61, %v7078_v7  ;;  %v881_v36 = vmul.f32 %v6924_v61, %v7081_v41  ;;  %v916_v6 = vadd.f32 %v6928_v63, %v880_v46 }
 0x124   : > { %5891 = vmatprep.mubr.bf16.mxu1 %v961_v51  ;;  %v946_v48 = vmax.f32 %v914_v23, 0.0  ;;  %v945_v51 = vmax.f32 %v913_v28, 0.0  ;;  %v915_v37 = vadd.f32 %v6928_v63, %v879_v45  ;;  %v884_v9 = vmul.f32 %v6924_v61, %v7085_v3 }
 0x125   : > { %v964_v55 = vpack.c.bf16 %v944_v39, %v943_v34  ;;  %v918_v21 = vadd.f32 %v6928_v63, %v882_v16  ;;  %v917_v22 = vadd.f32 %v6928_v63, %v881_v36  ;;  %v948_v17 = vmax.f32 %v916_v6, 0.0  ;;  %v6460_v16 = vld [vmem:[%s9046_s5 + $0x68] sm:$0xff]   ;;  %v6463_v36 = vld [vmem:[%s9046_s5 + $0x80] sm:$0xff]  }
 0x126   : > { %v965_v60 = vpack.c.bf16 %v946_v48, %v945_v51  ;;  %v947_v47 = vmax.f32 %v915_v37, 0.0  ;;  %5917 = vmatprep.subr.bf16.mxu0 %v6460_v16  ;;  %v6464_v6 = vld [vmem:[%s9046_s5 + $0x88] sm:$0xff]   ;;  %5955 = vmatprep.subr.bf16.mxu1 %v6463_v36  ;;  %v6465_v37 = vld [vmem:[%s9046_s5 + $0x90] sm:$0xff]  }
 0x127   : > { %v950_v23 = vmax.f32 %v918_v21, 0.0  ;;  %v949_v28 = vmax.f32 %v917_v22, 0.0  ;;  %5918 = vmatpush3.bf16.msra.mxu0 %v6460_v16  ;;  %5956 = vmatpush3.bf16.msra.mxu1 %v6463_v36  ;;  %v6467_v21 = vld [vmem:[%s9046_s5 + $0xa0] sm:$0xff]   ;;  %v6468_v22 = vld [vmem:[%s9046_s5 + $0xa8] sm:$0xff]  }
 0x128   : > { %v966_v34 = vpack.c.bf16 %v948_v17, %v947_v47  ;;  %5957 = vmatprep.subr.bf16.mxu1 %v6464_v6  ;;  %v7156_v17 = vrot.slane %v6915_v58, %v6792_v8 }
 0x129   : > { %v967_v46 = vpack.c.bf16 %v950_v23, %v949_v28 }
 0x12b   : > { %5892 = vmatmul.mubr.bf16.gmra.mrb[32].mxu1 %v962_v18  ;;  %v883_v18 = vmul.f32 %v6924_v61, %v7088_v52  ;;  %v6461_v61 = vld [vmem:[%s9046_s5 + $0x70] sm:$0xff]  }
 0x12c   : > { %5895 = vmatprep.mubr.bf16.mxu1 %v963_v32  ;;  %v920_v32 = vadd.f32 %v6928_v63, %v884_v9  ;;  %5919 = vmatprep.subr.bf16.mxu0 %v6461_v61  ;;  %v7160_v9 = vrot.slane %v6918_v59, %v6792_v8 }
 0x12d   : > { %v919_v39 = vadd.f32 %v6928_v63, %v883_v18  ;;  %5920 = vmatpush3.bf16.msra.mxu0 %v6461_v61  ;;  %v6462_v63 = vld [vmem:[%s9046_s5 + $0x78] sm:$0xff]   ;;  %5958 = vmatpush3.bf16.msra.mxu1 %v6464_v6 }
 0x12e   : > { %v952_v45 = vmax.f32 %v920_v32, 0.0  ;;  %5921 = vmatprep.subr.bf16.mxu0 %v6462_v63  ;;  %5959 = vmatprep.subr.bf16.mxu1 %v6465_v37 }
 0x12f   : > { %v951_v48 = vmax.f32 %v919_v39, 0.0 }
 0x131   : > { %v968_v51 = vpack.c.bf16 %v952_v45, %v951_v48  ;;  %5922 = vmatpush3.bf16.msra.mxu0 %v6462_v63  ;;  %5960 = vmatpush3.bf16.msra.mxu1 %v6465_v37 }
 0x133   : > { %5896 = vmatmul.mubr.bf16.gmra.mrb[36].mxu1 %v964_v55  ;;  %v6466_v55 = vld [vmem:[%s9046_s5 + $0x98] sm:$0xff]  }
 0x134   : > { %5899 = vmatprep.mubr.bf16.mxu1 %v965_v60  ;;  %5961 = vmatprep.subr.bf16.mxu1 %v6466_v55  ;;  %v7152_v60 = vld [vmem:[%s9047_s6] ss:$0 sm:$0xff] }
 0x135   : > { %5962 = vmatpush3.bf16.msra.mxu1 %v6466_v55 }
 0x136   : > { %5963 = vmatprep.subr.bf16.mxu1 %v6467_v21 }
 0x139   : > { %5964 = vmatpush3.bf16.msra.mxu1 %v6467_v21 }
 0x13a   : > { %5965 = vmatprep.subr.bf16.mxu1 %v6468_v22 }
 0x13b   : > { %5900 = vmatmul.mubr.bf16.gmra.mrb[40].mxu1 %v966_v34 }
 0x13c   : > { %5903 = vmatprep.mubr.bf16.mxu1 %v967_v46 }
 0x13d   : > { %5966 = vmatpush3.bf16.msra.mxu1 %v6468_v22 }
 0x143   : > { %5904 = vmatmul.mubr.bf16.gmra.mrb[44].mxu1 %v968_v51 }
 0x1de   : > { %v5877_v47 = vpop.f32.mrb[16].mxu1 }
 0x1df   : > { %v1083_v18 = vadd.f32 %v5877_v47, %v7152_v60  ;;  %v1074_v23 = vpop.f32.mrb[17].mxu1 }
 0x1e0   : > { %v1075_v28 = vadd.f32 %v7152_v60, %v1074_v23  ;;  %v5878_v32 = vpop.f32.mrb[18].mxu1 }
 0x1e1   : > { %v1207_v39 = vmul.f32 %v7156_v17, %v1083_v18  ;;  %v1086_v34 = vadd.f32 %v5878_v32, %v7152_v60  ;;  %v1077_v46 = vpop.f32.mrb[19].mxu1 }
 0x1e2   : > { %v1205_v45 = vmul.f32 %v7156_v17, %v1075_v28  ;;  %v1078_v48 = vadd.f32 %v7152_v60, %v1077_v46 }
 0x1e3   : > { %v1243_v51 = vadd.f32 %v7160_v9, %v1207_v39  ;;  %v1208_v8 = vmul.f32 %v7156_v17, %v1086_v34 }
 0x1e4   : > { %v1241_v16 = vadd.f32 %v7160_v9, %v1205_v45  ;;  %v1206_v61 = vmul.f32 %v7156_v17, %v1078_v48 }
 0x1e5   : > { %v1244_v63 = vadd.f32 %v7160_v9, %v1208_v8  ;;  %v1275_v37 = vmax.f32 %v1243_v51, 0.0 }
 0x1e6   : > { %v1242_v36 = vadd.f32 %v7160_v9, %v1206_v61  ;;  %v5881_v6 = vpop.f32.mrb[20].mxu1  ;;  %v1273_v47 = vmax.f32 %v1241_v16, 0.0 }
 0x1e7   : > { %v1276_v55 = vmax.f32 %v1244_v63, 0.0  ;;  %v1099_v21 = vadd.f32 %v5881_v6, %v7152_v60  ;;  %v1090_v22 = vpop.f32.mrb[21].mxu1 }
 0x1e8   : > { %v1274_v18 = vmax.f32 %v1242_v36, 0.0  ;;  %v1091_v23 = vadd.f32 %v7152_v60, %v1090_v22  ;;  %v5882_v28 = vpop.f32.mrb[22].mxu1 }
 0x1e9   : > { %v1306_v32 = vpack.c.bf16 %v1276_v55, %v1275_v37  ;;  %v1211_v39 = vmul.f32 %v7156_v17, %v1099_v21  ;;  %v1102_v34 = vadd.f32 %v5882_v28, %v7152_v60  ;;  %v1093_v46 = vpop.f32.mrb[23].mxu1 }
 0x1ea   : > { %v1209_v45 = vmul.f32 %v7156_v17, %v1091_v23  ;;  %v1094_v48 = vadd.f32 %v7152_v60, %v1093_v46  ;;  %v1305_v51 = vpack.c.bf16 %v1274_v18, %v1273_v47 }
 0x1eb   : > { %v1247_v8 = vadd.f32 %v7160_v9, %v1211_v39  ;;  %v1212_v61 = vmul.f32 %v7156_v17, %v1102_v34 }
 0x1ec   : > { %v1245_v16 = vadd.f32 %v7160_v9, %v1209_v45  ;;  %v1210_v63 = vmul.f32 %v7156_v17, %v1094_v48  ;;  %5923 = vmatprep.mubr.bf16.mxu0 %v1305_v51 }
 0x1ed   : > { %v1248_v36 = vadd.f32 %v7160_v9, %v1212_v61  ;;  %5924 = vmatmul.mubr.bf16.vlgmr.msra.gmra.mrb[16].mxu0 %v1306_v32  ;;  %v1279_v55 = vmax.f32 %v1247_v8, 0.0 }
 0x1ee   : > { %v1246_v6 = vadd.f32 %v7160_v9, %v1210_v63  ;;  %v5885_v37 = vpop.f32.mrb[24].mxu1  ;;  %v1277_v18 = vmax.f32 %v1245_v16, 0.0 }
 0x1ef   : > { %v1280_v21 = vmax.f32 %v1248_v36, 0.0  ;;  %v1115_v22 = vadd.f32 %v5885_v37, %v7152_v60  ;;  %v1106_v47 = vpop.f32.mrb[25].mxu1 }
 0x1f0   : > { %v1278_v23 = vmax.f32 %v1246_v6, 0.0  ;;  %v1107_v28 = vadd.f32 %v7152_v60, %v1106_v47  ;;  %v5886_v39 = vpop.f32.mrb[26].mxu1 }
 0x1f1   : > { %v1215_v34 = vmul.f32 %v7156_v17, %v1115_v22  ;;  %v1118_v46 = vadd.f32 %v5886_v39, %v7152_v60  ;;  %v1109_v45 = vpop.f32.mrb[27].mxu1  ;;  %v1308_v48 = vpack.c.bf16 %v1280_v21, %v1279_v55 }
 0x1f2   : > { %v1213_v32 = vmul.f32 %v7156_v17, %v1107_v28  ;;  %v1110_v51 = vadd.f32 %v7152_v60, %v1109_v45  ;;  %v1307_v8 = vpack.c.bf16 %v1278_v23, %v1277_v18 }
 0x1f3   : > { %v1251_v61 = vadd.f32 %v7160_v9, %v1215_v34  ;;  %v1216_v63 = vmul.f32 %v7156_v17, %v1118_v46 }
 0x1f4   : > { %v1249_v16 = vadd.f32 %v7160_v9, %v1213_v32  ;;  %v1214_v36 = vmul.f32 %v7156_v17, %v1110_v51  ;;  %5927 = vmatprep.mubr.bf16.mxu0 %v1307_v8 }
 0x1f5   : > { %v1252_v6 = vadd.f32 %v7160_v9, %v1216_v63  ;;  %5928 = vmatmul.mubr.bf16.gmra.mrb[20].mxu0 %v1308_v48  ;;  %v1283_v21 = vmax.f32 %v1251_v61, 0.0 }
 0x1f6   : > { %v1250_v37 = vadd.f32 %v7160_v9, %v1214_v36  ;;  %v5889_v55 = vpop.f32.mrb[28].mxu1  ;;  %v1281_v23 = vmax.f32 %v1249_v16, 0.0 }
 0x1f7   : > { %v1284_v22 = vmax.f32 %v1252_v6, 0.0  ;;  %v1131_v47 = vadd.f32 %v5889_v55, %v7152_v60  ;;  %v1122_v18 = vpop.f32.mrb[29].mxu1 }
 0x1f8   : > { %v1282_v28 = vmax.f32 %v1250_v37, 0.0  ;;  %v1123_v39 = vadd.f32 %v7152_v60, %v1122_v18  ;;  %v5890_v34 = vpop.f32.mrb[30].mxu1 }
 0x1f9   : > { %v1219_v46 = vmul.f32 %v7156_v17, %v1131_v47  ;;  %v1134_v45 = vadd.f32 %v5890_v34, %v7152_v60  ;;  %v1125_v32 = vpop.f32.mrb[31].mxu1  ;;  %v1310_v51 = vpack.c.bf16 %v1284_v22, %v1283_v21 }
 0x1fa   : > { %v1217_v48 = vmul.f32 %v7156_v17, %v1123_v39  ;;  %v1126_v8 = vadd.f32 %v7152_v60, %v1125_v32  ;;  %v1309_v61 = vpack.c.bf16 %v1282_v28, %v1281_v23 }
 0x1fb   : > { %v1255_v63 = vadd.f32 %v7160_v9, %v1219_v46  ;;  %v1220_v36 = vmul.f32 %v7156_v17, %v1134_v45 }
 0x1fc   : > { %v1253_v16 = vadd.f32 %v7160_v9, %v1217_v48  ;;  %v1218_v6 = vmul.f32 %v7156_v17, %v1126_v8  ;;  %5931 = vmatprep.mubr.bf16.mxu0 %v1309_v61 }
 0x1fd   : > { %v1256_v37 = vadd.f32 %v7160_v9, %v1220_v36  ;;  %5932 = vmatmul.mubr.bf16.gmra.mrb[24].mxu0 %v1310_v51  ;;  %v1287_v22 = vmax.f32 %v1255_v63, 0.0 }
 0x1fe   : > { %v1254_v55 = vadd.f32 %v7160_v9, %v1218_v6  ;;  %v5893_v21 = vpop.f32.mrb[32].mxu1  ;;  %v1285_v28 = vmax.f32 %v1253_v16, 0.0 }
 0x1ff   : > { %v1288_v47 = vmax.f32 %v1256_v37, 0.0  ;;  %v1147_v18 = vadd.f32 %v5893_v21, %v7152_v60  ;;  %v1138_v23 = vpop.f32.mrb[33].mxu1 }
 0x200   : > { %v1286_v39 = vmax.f32 %v1254_v55, 0.0  ;;  %v1139_v34 = vadd.f32 %v7152_v60, %v1138_v23  ;;  %v5894_v46 = vpop.f32.mrb[34].mxu1 }
 0x201   : > { %v1223_v45 = vmul.f32 %v7156_v17, %v1147_v18  ;;  %v1150_v32 = vadd.f32 %v5894_v46, %v7152_v60  ;;  %v1141_v48 = vpop.f32.mrb[35].mxu1  ;;  %v1312_v8 = vpack.c.bf16 %v1288_v47, %v1287_v22 }
 0x202   : > { %v1221_v51 = vmul.f32 %v7156_v17, %v1139_v34  ;;  %v1142_v61 = vadd.f32 %v7152_v60, %v1141_v48  ;;  %v1311_v63 = vpack.c.bf16 %v1286_v39, %v1285_v28 }
 0x203   : > { %v1259_v36 = vadd.f32 %v7160_v9, %v1223_v45  ;;  %v1224_v6 = vmul.f32 %v7156_v17, %v1150_v32 }
 0x204   : > { %v1257_v16 = vadd.f32 %v7160_v9, %v1221_v51  ;;  %v1222_v37 = vmul.f32 %v7156_v17, %v1142_v61  ;;  %5935 = vmatprep.mubr.bf16.mxu0 %v1311_v63 }
 0x205   : > { %v1260_v55 = vadd.f32 %v7160_v9, %v1224_v6  ;;  %5936 = vmatmul.mubr.bf16.gmra.mrb[28].mxu0 %v1312_v8  ;;  %v1291_v47 = vmax.f32 %v1259_v36, 0.0 }
 0x206   : > { %v1258_v21 = vadd.f32 %v7160_v9, %v1222_v37  ;;  %v5897_v22 = vpop.f32.mrb[36].mxu1  ;;  %v1289_v39 = vmax.f32 %v1257_v16, 0.0 }
 0x207   : > { %v1292_v18 = vmax.f32 %v1260_v55, 0.0  ;;  %v1163_v23 = vadd.f32 %v5897_v22, %v7152_v60  ;;  %v1154_v28 = vpop.f32.mrb[37].mxu1 }
 0x208   : > { %v1290_v34 = vmax.f32 %v1258_v21, 0.0  ;;  %v1155_v46 = vadd.f32 %v7152_v60, %v1154_v28  ;;  %v5898_v45 = vpop.f32.mrb[38].mxu1 }
 0x209   : > { %v1227_v32 = vmul.f32 %v7156_v17, %v1163_v23  ;;  %v1166_v48 = vadd.f32 %v5898_v45, %v7152_v60  ;;  %v1157_v51 = vpop.f32.mrb[39].mxu1  ;;  %v1314_v61 = vpack.c.bf16 %v1292_v18, %v1291_v47 }
 0x20a   : > { %v1225_v8 = vmul.f32 %v7156_v17, %v1155_v46  ;;  %v1158_v63 = vadd.f32 %v7152_v60, %v1157_v51  ;;  %v1313_v36 = vpack.c.bf16 %v1290_v34, %v1289_v39 }
 0x20b   : > { %v1263_v6 = vadd.f32 %v7160_v9, %v1227_v32  ;;  %v1228_v37 = vmul.f32 %v7156_v17, %v1166_v48 }
 0x20c   : > { %v1261_v16 = vadd.f32 %v7160_v9, %v1225_v8  ;;  %v1226_v55 = vmul.f32 %v7156_v17, %v1158_v63  ;;  %5939 = vmatprep.mubr.bf16.mxu0 %v1313_v36 }
 0x20d   : > { %v1295_v21 = vmax.f32 %v1263_v6, 0.0  ;;  %v1264_v22 = vadd.f32 %v7160_v9, %v1228_v37  ;;  %5940 = vmatmul.mubr.bf16.gmra.mrb[32].mxu0 %v1314_v61 }
 0x20e   : > { %v1293_v23 = vmax.f32 %v1261_v16, 0.0  ;;  %v1262_v47 = vadd.f32 %v7160_v9, %v1226_v55  ;;  %v5901_v18 = vpop.f32.mrb[40].mxu1 }
 0x20f   : > { %v1296_v28 = vmax.f32 %v1264_v22, 0.0  ;;  %v1179_v39 = vadd.f32 %v5901_v18, %v7152_v60  ;;  %v1170_v34 = vpop.f32.mrb[41].mxu1 }
 0x210   : > { %v1294_v46 = vmax.f32 %v1262_v47, 0.0  ;;  %v1171_v45 = vadd.f32 %v7152_v60, %v1170_v34  ;;  %v5902_v32 = vpop.f32.mrb[42].mxu1 }
 0x211   : > { %v1231_v48 = vmul.f32 %v7156_v17, %v1179_v39  ;;  %v1182_v51 = vadd.f32 %v5902_v32, %v7152_v60  ;;  %v1173_v8 = vpop.f32.mrb[43].mxu1  ;;  %v1316_v63 = vpack.c.bf16 %v1296_v28, %v1295_v21 }
 0x212   : > { %v1229_v61 = vmul.f32 %v7156_v17, %v1171_v45  ;;  %v1174_v36 = vadd.f32 %v7152_v60, %v1173_v8  ;;  %v1315_v6 = vpack.c.bf16 %v1294_v46, %v1293_v23 }
 0x213   : > { %v1267_v37 = vadd.f32 %v7160_v9, %v1231_v48  ;;  %v1232_v16 = vmul.f32 %v7156_v17, %v1182_v51 }
 0x214   : > { %v1265_v55 = vadd.f32 %v7160_v9, %v1229_v61  ;;  %v1230_v22 = vmul.f32 %v7156_v17, %v1174_v36  ;;  %5943 = vmatprep.mubr.bf16.mxu0 %v1315_v6 }
 0x215   : > { %v1299_v47 = vmax.f32 %v1267_v37, 0.0  ;;  %v1268_v18 = vadd.f32 %v7160_v9, %v1232_v16  ;;  %5944 = vmatmul.mubr.bf16.gmra.mrb[36].mxu0 %v1316_v63 }
 0x216   : > { %v1297_v39 = vmax.f32 %v1265_v55, 0.0  ;;  %v1266_v21 = vadd.f32 %v7160_v9, %v1230_v22  ;;  %v5905_v28 = vpop.f32.mrb[44].mxu1 }
 0x217   : > { %v1300_v34 = vmax.f32 %v1268_v18, 0.0  ;;  %v1195_v23 = vadd.f32 %v5905_v28, %v7152_v60  ;;  %v1186_v46 = vpop.f32.mrb[45].mxu1 }
 0x218   : > { %v1298_v45 = vmax.f32 %v1266_v21, 0.0  ;;  %v1187_v32 = vadd.f32 %v7152_v60, %v1186_v46  ;;  %v5906_v48 = vpop.f32.mrb[46].mxu1 }
 0x219   : > { %v1235_v51 = vmul.f32 %v7156_v17, %v1195_v23  ;;  %v1198_v8 = vadd.f32 %v5906_v48, %v7152_v60  ;;  %v1189_v61 = vpop.f32.mrb[47].mxu1  ;;  %v1318_v36 = vpack.c.bf16 %v1300_v34, %v1299_v47  ;;  %v6473_v48 = vld [vmem:[%s9046_s5 + $0xd0] sm:$0xff]  }
 0x21a   : > { %v1233_v63 = vmul.f32 %v7156_v17, %v1187_v32  ;;  %v1190_v6 = vadd.f32 %v7152_v60, %v1189_v61  ;;  %v1317_v37 = vpack.c.bf16 %v1298_v45, %v1297_v39  ;;  %v6469_v45 = vld [vmem:[%s9046_s5 + $0xb0] sm:$0xff]   ;;  %v6472_v32 = vld [vmem:[%s9046_s5 + $0xc8] sm:$0xff]  }
 0x21b   : > { %v1271_v16 = vadd.f32 %v7160_v9, %v1235_v51  ;;  %v1236_v55 = vmul.f32 %v7156_v17, %v1198_v8  ;;  %5967 = vmatprep.subr.bf16.mxu1 %v6469_v45  ;;  %v6474_v51 = vld [vmem:[%s9046_s5 + $0xd8] sm:$0xff]   ;;  %v6475_v8 = vld [vmem:[%s9046_s5 + $0xe0] sm:$0xff]   ;;  %v6476_v61 = vld [vmem:[%s9046_s5 + $0xe8] sm:$0xff]  }
 0x21c   : > { %v1269_v22 = vadd.f32 %v7160_v9, %v1233_v63  ;;  %v1234_v18 = vmul.f32 %v7156_v17, %v1190_v6  ;;  %5947 = vmatprep.mubr.bf16.mxu0 %v1317_v37  ;;  %5968 = vmatpush3.bf16.msra.mxu1 %v6469_v45  ;;  %v6470_v17 = vld [vmem:[%s9046_s5 + $0xb8] sm:$0xff]   ;;  %v7288_v63 = vld [vmem:[%s9047_s6 + $0x1] ss:$0 sm:$0xff]  ;;  %v7292_v37 = vrot.slane %v6915_v58, %v6797_v11 }
 0x21d   : > { %v1303_v21 = vmax.f32 %v1271_v16, 0.0  ;;  %v1272_v28 = vadd.f32 %v7160_v9, %v1236_v55  ;;  %5948 = vmatmul.mubr.bf16.gmra.mrb[40].mxu0 %v1318_v36  ;;  %5969 = vmatprep.subr.bf16.mxu1 %v6470_v17  ;;  %v6477_v36 = vld [vmem:[%s9046_s5 + $0xf0] sm:$0xff]  }
 0x21e   : > { %v1301_v23 = vmax.f32 %v1269_v22, 0.0  ;;  %v1270_v47 = vadd.f32 %v7160_v9, %v1234_v18  ;;  %v6471_v9 = vld [vmem:[%s9046_s5 + $0xc0] sm:$0xff]  }
 0x21f   : > { %v1304_v34 = vmax.f32 %v1272_v28, 0.0  ;;  %6003 = vmatprep.subr.bf16.mxu0 %v6471_v9 }
 0x220   : > { %v1302_v46 = vmax.f32 %v1270_v47, 0.0  ;;  %5970 = vmatpush3.bf16.msra.mxu1 %v6470_v17  ;;  %6004 = vmatpush3.bf16.msra.mxu0 %v6471_v9 }
 0x221   : > { %v1320_v60 = vpack.c.bf16 %v1304_v34, %v1303_v21  ;;  %6005 = vmatprep.subr.bf16.mxu0 %v6472_v32  ;;  %v7298_v21 = vrot.slane %v6918_v59, %v6797_v11 }
 0x222   : > { %v1319_v39 = vpack.c.bf16 %v1302_v46, %v1301_v23 }
 0x224   : > { %5951 = vmatprep.mubr.bf16.mxu0 %v1319_v39  ;;  %6006 = vmatpush3.bf16.msra.mxu0 %v6472_v32 }
 0x225   : > { %5952 = vmatmul.mubr.bf16.gmra.mrb[44].mxu0 %v1320_v60  ;;  %6007 = vmatprep.subr.bf16.mxu0 %v6473_v48 }
 0x228   : > { %6008 = vmatpush3.bf16.msra.mxu0 %v6473_v48 }
 0x229   : > { %6009 = vmatprep.subr.bf16.mxu0 %v6474_v51 }
 0x22c   : > { %6010 = vmatpush3.bf16.msra.mxu0 %v6474_v51 }
 0x22d   : > { %6011 = vmatprep.subr.bf16.mxu0 %v6475_v8 }
 0x230   : > { %6012 = vmatpush3.bf16.msra.mxu0 %v6475_v8 }
 0x231   : > { %6013 = vmatprep.subr.bf16.mxu0 %v6476_v61 }
 0x234   : > { %6014 = vmatpush3.bf16.msra.mxu0 %v6476_v61 }
 0x235   : > { %6015 = vmatprep.subr.bf16.mxu0 %v6477_v36 }
 0x238   : > { %6016 = vmatpush3.bf16.msra.mxu0 %v6477_v36 }
 0x2c0   : > { %v5925_v6 = vpop.f32.mrb[16].mxu0 }
 0x2c1   : > { %v1437_v16 = vadd.f32 %v5925_v6, %v7288_v63  ;;  %v1428_v55 = vpop.f32.mrb[17].mxu0 }
 0x2c2   : > { %v1429_v22 = vadd.f32 %v7288_v63, %v1428_v55  ;;  %v5926_v18 = vpop.f32.mrb[18].mxu0 }
 0x2c3   : > { %v7301_v28 = vadd.f32 %v1437_v16, %v6946_v19  ;;  %v1440_v23 = vadd.f32 %v5926_v18, %v7288_v63  ;;  %v1431_v47 = vpop.f32.mrb[19].mxu0 }
 0x2c4   : > { %v7305_v34 = vadd.f32 %v1429_v22, %v6934_v2  ;;  %v1432_v58 = vadd.f32 %v7288_v63, %v1431_v47 }
 0x2c5   : > { %v1657_v46 = vmul.f32 %v7292_v37, %v7301_v28  ;;  %v7311_v60 = vadd.f32 %v1440_v23, %v6942_v10 }
 0x2c6   : > { %v1655_v11 = vmul.f32 %v7292_v37, %v7305_v34  ;;  %v7316_v59 = vadd.f32 %v1432_v58, %v6931_v0 }
 0x2c7   : > { %v1693_v19 = vadd.f32 %v7298_v21, %v1657_v46  ;;  %v1658_v2 = vmul.f32 %v7292_v37, %v7311_v60 }
 0x2c8   : > { %v1656_v39 = vmul.f32 %v7292_v37, %v7316_v59  ;;  %v5929_v45 = vpop.f32.mrb[20].mxu0  ;;  %v1691_v17 = vadd.f32 %v7298_v21, %v1655_v11 }
 0x2c9   : > { %v1694_v10 = vadd.f32 %v7298_v21, %v1658_v2  ;;  %v1453_v9 = vadd.f32 %v5929_v45, %v7288_v63  ;;  %v1444_v32 = vpop.f32.mrb[21].mxu0  ;;  %v1725_v8 = vmax.f32 %v1693_v19, 0.0 }
 0x2ca   : > { %v1445_v48 = vadd.f32 %v7288_v63, %v1444_v32  ;;  %v5930_v0 = vpop.f32.mrb[22].mxu0  ;;  %v1692_v51 = vadd.f32 %v7298_v21, %v1656_v39  ;;  %v1723_v18 = vmax.f32 %v1691_v17, 0.0 }
 0x2cb   : > { %v1726_v61 = vmax.f32 %v1694_v10, 0.0  ;;  %v7329_v36 = vadd.f32 %v1453_v9, %v6982_v49  ;;  %v1456_v6 = vadd.f32 %v5930_v0, %v7288_v63  ;;  %v1447_v16 = vpop.f32.mrb[23].mxu0 }
 0x2cc   : > { %v7333_v55 = vadd.f32 %v1445_v48, %v6964_v33  ;;  %v1448_v22 = vadd.f32 %v7288_v63, %v1447_v16  ;;  %v1724_v23 = vmax.f32 %v1692_v51, 0.0 }
 0x2cd   : > { %v1756_v47 = vpack.c.bf16 %v1726_v61, %v1725_v8  ;;  %v1661_v58 = vmul.f32 %v7292_v37, %v7329_v36  ;;  %v7339_v46 = vadd.f32 %v1456_v6, %v6978_v44 }
 0x2ce   : > { %v1659_v49 = vmul.f32 %v7292_v37, %v7333_v55  ;;  %v7344_v11 = vadd.f32 %v1448_v22, %v6960_v29  ;;  %v1755_v19 = vpack.c.bf16 %v1724_v23, %v1723_v18 }
 0x2cf   : > { %v1662_v33 = vmul.f32 %v7292_v37, %v7339_v46  ;;  %v1697_v2 = vadd.f32 %v7298_v21, %v1661_v58 }
 0x2d0   : > { %v1660_v39 = vmul.f32 %v7292_v37, %v7344_v11  ;;  %v5933_v45 = vpop.f32.mrb[24].mxu0  ;;  %5971 = vmatprep.mubr.bf16.mxu1 %v1755_v19  ;;  %v1695_v44 = vadd.f32 %v7298_v21, %v1659_v49 }
 0x2d1   : > { %v1469_v17 = vadd.f32 %v5933_v45, %v7288_v63  ;;  %v1460_v10 = vpop.f32.mrb[25].mxu0  ;;  %5972 = vmatmul.mubr.bf16.vlgmr.msra.gmra.mrb[48].mxu1 %v1756_v47  ;;  %v1698_v29 = vadd.f32 %v7298_v21, %v1662_v33  ;;  %v1729_v61 = vmax.f32 %v1697_v2, 0.0 }
 0x2d2   : > { %v1461_v9 = vadd.f32 %v7288_v63, %v1460_v10  ;;  %v5934_v32 = vpop.f32.mrb[26].mxu0  ;;  %v1696_v48 = vadd.f32 %v7298_v21, %v1660_v39  ;;  %v1727_v18 = vmax.f32 %v1695_v44, 0.0 }
 0x2d3   : > { %v7357_v0 = vadd.f32 %v1469_v17, %v7015_v35  ;;  %v1472_v51 = vadd.f32 %v5934_v32, %v7288_v63  ;;  %v1463_v8 = vpop.f32.mrb[27].mxu0  ;;  %v1730_v6 = vmax.f32 %v1698_v29, 0.0 }
 0x2d4   : > { %v7361_v16 = vadd.f32 %v1461_v9, %v7000_v14  ;;  %v1464_v22 = vadd.f32 %v7288_v63, %v1463_v8  ;;  %v1728_v23 = vmax.f32 %v1696_v48, 0.0 }
 0x2d5   : > { %v1665_v47 = vmul.f32 %v7292_v37, %v7357_v0  ;;  %v7367_v58 = vadd.f32 %v1472_v51, %v7011_v30  ;;  %v1758_v35 = vpack.c.bf16 %v1730_v6, %v1729_v61 }
 0x2d6   : > { %v1663_v49 = vmul.f32 %v7292_v37, %v7361_v16  ;;  %v7372_v19 = vadd.f32 %v1464_v22, %v6996_v5  ;;  %v1757_v33 = vpack.c.bf16 %v1728_v23, %v1727_v18 }
 0x2d7   : > { %v1666_v14 = vmul.f32 %v7292_v37, %v7367_v58  ;;  %v1701_v2 = vadd.f32 %v7298_v21, %v1665_v47 }
 0x2d8   : > { %v1664_v39 = vmul.f32 %v7292_v37, %v7372_v19  ;;  %v5937_v45 = vpop.f32.mrb[28].mxu0  ;;  %5975 = vmatprep.mubr.bf16.mxu1 %v1757_v33  ;;  %v1699_v30 = vadd.f32 %v7298_v21, %v1663_v49 }
 0x2d9   : > { %v1485_v44 = vadd.f32 %v5937_v45, %v7288_v63  ;;  %v1476_v17 = vpop.f32.mrb[29].mxu0  ;;  %5976 = vmatmul.mubr.bf16.gmra.mrb[52].mxu1 %v1758_v35  ;;  %v1702_v5 = vadd.f32 %v7298_v21, %v1666_v14  ;;  %v1733_v8 = vmax.f32 %v1701_v2, 0.0 }
 0x2da   : > { %v1477_v10 = vadd.f32 %v7288_v63, %v1476_v17  ;;  %v5938_v29 = vpop.f32.mrb[30].mxu0  ;;  %v1700_v9 = vadd.f32 %v7298_v21, %v1664_v39  ;;  %v1731_v18 = vmax.f32 %v1699_v30, 0.0 }
 0x2db   : > { %v7385_v32 = vadd.f32 %v1485_v44, %v7057_v40  ;;  %v1488_v48 = vadd.f32 %v5938_v29, %v7288_v63  ;;  %v1479_v51 = vpop.f32.mrb[31].mxu0  ;;  %v1734_v61 = vmax.f32 %v1702_v5, 0.0 }
 0x2dc   : > { %v7389_v6 = vadd.f32 %v1477_v10, %v7037_v1  ;;  %v1480_v22 = vadd.f32 %v7288_v63, %v1479_v51  ;;  %v1732_v23 = vmax.f32 %v1700_v9, 0.0 }
 0x2dd   : > { %v1669_v47 = vmul.f32 %v7292_v37, %v7385_v32  ;;  %v7395_v35 = vadd.f32 %v1488_v48, %v7052_v31  ;;  %v1760_v40 = vpack.c.bf16 %v1734_v61, %v1733_v8 }
 0x2de   : > { %v1667_v49 = vmul.f32 %v7292_v37, %v7389_v6  ;;  %v7400_v33 = vadd.f32 %v1480_v22, %v7028_v50  ;;  %v1759_v14 = vpack.c.bf16 %v1732_v23, %v1731_v18 }
 0x2df   : > { %v1670_v1 = vmul.f32 %v7292_v37, %v7395_v35  ;;  %v1705_v2 = vadd.f32 %v7298_v21, %v1669_v47 }
 0x2e0   : > { %v1668_v39 = vmul.f32 %v7292_v37, %v7400_v33  ;;  %v5941_v45 = vpop.f32.mrb[32].mxu0  ;;  %5979 = vmatprep.mubr.bf16.mxu1 %v1759_v14  ;;  %v1703_v31 = vadd.f32 %v7298_v21, %v1667_v49 }
 0x2e1   : > { %v1501_v30 = vadd.f32 %v5941_v45, %v7288_v63  ;;  %v1492_v44 = vpop.f32.mrb[33].mxu0  ;;  %5980 = vmatmul.mubr.bf16.gmra.mrb[56].mxu1 %v1760_v40  ;;  %v1706_v50 = vadd.f32 %v7298_v21, %v1670_v1  ;;  %v1737_v51 = vmax.f32 %v1705_v2, 0.0 }
 0x2e2   : > { %v1493_v17 = vadd.f32 %v7288_v63, %v1492_v44  ;;  %v5942_v5 = vpop.f32.mrb[34].mxu0  ;;  %v1704_v10 = vadd.f32 %v7298_v21, %v1668_v39  ;;  %v1735_v18 = vmax.f32 %v1703_v31, 0.0 }
 0x2e3   : > { %v7413_v29 = vadd.f32 %v1501_v30, %v6974_v42  ;;  %v1504_v9 = vadd.f32 %v5942_v5, %v7288_v63  ;;  %v1495_v48 = vpop.f32.mrb[35].mxu0  ;;  %v1738_v8 = vmax.f32 %v1706_v50, 0.0 }
 0x2e4   : > { %v7417_v61 = vadd.f32 %v1493_v17, %v6954_v24  ;;  %v1496_v22 = vadd.f32 %v7288_v63, %v1495_v48  ;;  %v1736_v23 = vmax.f32 %v1704_v10, 0.0 }
 0x2e5   : > { %v1673_v47 = vmul.f32 %v7292_v37, %v7413_v29  ;;  %v7423_v40 = vadd.f32 %v1504_v9, %v6969_v38  ;;  %v1762_v42 = vpack.c.bf16 %v1738_v8, %v1737_v51 }
 0x2e6   : > { %v1671_v49 = vmul.f32 %v7292_v37, %v7417_v61  ;;  %v7428_v14 = vadd.f32 %v1496_v22, %v6949_v20  ;;  %v1761_v1 = vpack.c.bf16 %v1736_v23, %v1735_v18 }
 0x2e7   : > { %v1674_v24 = vmul.f32 %v7292_v37, %v7423_v40  ;;  %v1709_v2 = vadd.f32 %v7298_v21, %v1673_v47 }
 0x2e8   : > { %v1672_v39 = vmul.f32 %v7292_v37, %v7428_v14  ;;  %v5945_v45 = vpop.f32.mrb[36].mxu0  ;;  %5983 = vmatprep.mubr.bf16.mxu1 %v1761_v1  ;;  %v1707_v38 = vadd.f32 %v7298_v21, %v1671_v49 }
 0x2e9   : > { %v1517_v31 = vadd.f32 %v5945_v45, %v7288_v63  ;;  %v1508_v30 = vpop.f32.mrb[37].mxu0  ;;  %5984 = vmatmul.mubr.bf16.gmra.mrb[60].mxu1 %v1762_v42  ;;  %v1710_v20 = vadd.f32 %v7298_v21, %v1674_v24  ;;  %v1741_v48 = vmax.f32 %v1709_v2, 0.0 }
 0x2ea   : > { %v1509_v44 = vadd.f32 %v7288_v63, %v1508_v30  ;;  %v5946_v50 = vpop.f32.mrb[38].mxu0  ;;  %v1708_v17 = vadd.f32 %v7298_v21, %v1672_v39  ;;  %v1739_v18 = vmax.f32 %v1707_v38, 0.0 }
 0x2eb   : > { %v7441_v5 = vadd.f32 %v1517_v31, %v7022_v43  ;;  %v1520_v10 = vadd.f32 %v5946_v50, %v7288_v63  ;;  %v1511_v9 = vpop.f32.mrb[39].mxu0  ;;  %v1742_v51 = vmax.f32 %v1710_v20, 0.0 }
 0x2ec   : > { %v7445_v8 = vadd.f32 %v1509_v44, %v6992_v62  ;;  %v1512_v22 = vadd.f32 %v7288_v63, %v1511_v9  ;;  %v1740_v23 = vmax.f32 %v1708_v17, 0.0 }
 0x2ed   : > { %v1677_v47 = vmul.f32 %v7292_v37, %v7441_v5  ;;  %v7451_v42 = vadd.f32 %v1520_v10, %v7007_v27  ;;  %v1764_v43 = vpack.c.bf16 %v1742_v51, %v1741_v48 }
 0x2ee   : > { %v1675_v49 = vmul.f32 %v7292_v37, %v7445_v8  ;;  %v7456_v1 = vadd.f32 %v1512_v22, %v6987_v53  ;;  %v1763_v24 = vpack.c.bf16 %v1740_v23, %v1739_v18 }
 0x2ef   : > { %v1678_v62 = vmul.f32 %v7292_v37, %v7451_v42  ;;  %v1713_v2 = vadd.f32 %v7298_v21, %v1677_v47 }
 0x2f0   : > { %v1676_v39 = vmul.f32 %v7292_v37, %v7456_v1  ;;  %v5949_v45 = vpop.f32.mrb[40].mxu0  ;;  %5987 = vmatprep.mubr.bf16.mxu1 %v1763_v24  ;;  %v1711_v27 = vadd.f32 %v7298_v21, %v1675_v49 }
 0x2f1   : > { %v1533_v38 = vadd.f32 %v5949_v45, %v7288_v63  ;;  %v1524_v31 = vpop.f32.mrb[41].mxu0  ;;  %5988 = vmatmul.mubr.bf16.gmra.mrb[64].mxu1 %v1764_v43  ;;  %v1714_v53 = vadd.f32 %v7298_v21, %v1678_v62  ;;  %v1745_v9 = vmax.f32 %v1713_v2, 0.0 }
 0x2f2   : > { %v1525_v30 = vadd.f32 %v7288_v63, %v1524_v31  ;;  %v5950_v20 = vpop.f32.mrb[42].mxu0  ;;  %v1712_v44 = vadd.f32 %v7298_v21, %v1676_v39  ;;  %v1743_v18 = vmax.f32 %v1711_v27, 0.0 }
 0x2f3   : > { %v7469_v50 = vadd.f32 %v1533_v38, %v7068_v56  ;;  %v1536_v17 = vadd.f32 %v5950_v20, %v7288_v63  ;;  %v1527_v10 = vpop.f32.mrb[43].mxu0  ;;  %v1746_v48 = vmax.f32 %v1714_v53, 0.0 }
 0x2f4   : > { %v7473_v51 = vadd.f32 %v1525_v30, %v7045_v25  ;;  %v1528_v22 = vadd.f32 %v7288_v63, %v1527_v10  ;;  %v1744_v23 = vmax.f32 %v1712_v44, 0.0 }
 0x2f5   : > { %v1681_v47 = vmul.f32 %v7292_v37, %v7469_v50  ;;  %v7479_v43 = vadd.f32 %v1536_v17, %v7048_v26  ;;  %v1766_v56 = vpack.c.bf16 %v1746_v48, %v1745_v9 }
 0x2f6   : > { %v1679_v49 = vmul.f32 %v7292_v37, %v7473_v51  ;;  %v7484_v24 = vadd.f32 %v1528_v22, %v7033_v54  ;;  %v1765_v62 = vpack.c.bf16 %v1744_v23, %v1743_v18 }
 0x2f7   : > { %v1682_v25 = vmul.f32 %v7292_v37, %v7479_v43  ;;  %v1717_v2 = vadd.f32 %v7298_v21, %v1681_v47 }
 0x2f8   : > { %v1680_v39 = vmul.f32 %v7292_v37, %v7484_v24  ;;  %v5953_v45 = vpop.f32.mrb[44].mxu0  ;;  %5991 = vmatprep.mubr.bf16.mxu1 %v1765_v62  ;;  %v1715_v26 = vadd.f32 %v7298_v21, %v1679_v49 }
 0x2f9   : > { %v1549_v27 = vadd.f32 %v5953_v45, %v7288_v63  ;;  %v1540_v38 = vpop.f32.mrb[45].mxu0  ;;  %5992 = vmatmul.mubr.bf16.gmra.mrb[68].mxu1 %v1766_v56  ;;  %v1718_v54 = vadd.f32 %v7298_v21, %v1682_v25  ;;  %v1749_v10 = vmax.f32 %v1717_v2, 0.0 }
 0x2fa   : > { %v1541_v31 = vadd.f32 %v7288_v63, %v1540_v38  ;;  %v5954_v53 = vpop.f32.mrb[46].mxu0  ;;  %v1716_v30 = vadd.f32 %v7298_v21, %v1680_v39  ;;  %v1747_v18 = vmax.f32 %v1715_v26, 0.0 }
 0x2fb   : > { %v7497_v20 = vadd.f32 %v1549_v27, %v7088_v52  ;;  %v1552_v44 = vadd.f32 %v5954_v53, %v7288_v63  ;;  %v1543_v17 = vpop.f32.mrb[47].mxu0  ;;  %v1750_v9 = vmax.f32 %v1718_v54, 0.0  ;;  %v6479_v53 = vld [vmem:[%s9046_s5 + $0x100] sm:$0xff]  }
 0x2fc   : > { %v7501_v48 = vadd.f32 %v1541_v31, %v7081_v41  ;;  %v1544_v22 = vadd.f32 %v7288_v63, %v1543_v17  ;;  %v1748_v23 = vmax.f32 %v1716_v30, 0.0  ;;  %6051 = vmatprep.subr.bf16.mxu1 %v6479_v53  ;;  %v6481_v30 = vld [vmem:[%s9046_s5 + $0x110] sm:$0xff]   ;;  %v6483_v17 = vld [vmem:[%s9046_s5 + $0x120] sm:$0xff]  }
 0x2fd   : > { %v1685_v47 = vmul.f32 %v7292_v37, %v7497_v20  ;;  %v7507_v56 = vadd.f32 %v1552_v44, %v7085_v3  ;;  %v1768_v52 = vpack.c.bf16 %v1750_v9, %v1749_v10  ;;  %6052 = vmatpush3.bf16.msra.mxu1 %v6479_v53  ;;  %v6482_v44 = vld [vmem:[%s9046_s5 + $0x118] sm:$0xff]   ;;  %v6484_v10 = vld [vmem:[%s9046_s5 + $0x128] sm:$0xff]   ;;  %v2007_v9 = vsub.s32 3, %v6775_v4 }
 0x2fe   : > { %v1683_v49 = vmul.f32 %v7292_v37, %v7501_v48  ;;  %v7512_v62 = vadd.f32 %v1544_v22, %v7078_v7  ;;  %v1767_v25 = vpack.c.bf16 %v1748_v23, %v1747_v18  ;;  %v7547_v22 = vld [vmem:[%s9047_s6 + $0x2] ss:$0 sm:$0xff] }
 0x2ff   : > { %v1686_v41 = vmul.f32 %v7292_v37, %v7507_v56  ;;  %v1721_v63 = vadd.f32 %v7298_v21, %v1685_v47  ;;  %v7550_v18 = vld [vmem:[%s6783_s19] sm:$0xff] }
 0x300   : > { %v1684_v2 = vmul.f32 %v7292_v37, %v7512_v62  ;;  %5995 = vmatprep.mubr.bf16.mxu1 %v1767_v25  ;;  %v1719_v3 = vadd.f32 %v7298_v21, %v1683_v49  ;;  %v6478_v37 = vld [vmem:[%s9046_s5 + $0xf8] sm:$0xff]   ;;  %v7553_v23 = vrot.slane %v7550_v18, %v2007_v9 }
 0x301   : > { %5996 = vmatmul.mubr.bf16.gmra.mrb[72].mxu1 %v1768_v52  ;;  %v1722_v39 = vadd.f32 %v7298_v21, %v1686_v41  ;;  %v1753_v26 = vmax.f32 %v1721_v63, 0.0  ;;  %6017 = vmatprep.subr.bf16.mxu0 %v6478_v37  ;;  %v7556_v52 = vld [vmem:[%s6788_s26] sm:$0xff] }
 0x302   : > { %v1720_v45 = vadd.f32 %v7298_v21, %v1684_v2  ;;  %v1751_v27 = vmax.f32 %v1719_v3, 0.0  ;;  %6018 = vmatpush3.bf16.msra.mxu0 %v6478_v37  ;;  %v6480_v21 = vld [vmem:[%s9046_s5 + $0x108] sm:$0xff]   ;;  %v7559_v49 = vrot.slane %v7556_v52, %v2007_v9 }
 0x303   : > { %v1754_v7 = vmax.f32 %v1722_v39, 0.0  ;;  %6053 = vmatprep.subr.bf16.mxu1 %v6480_v21 }
 0x304   : > { %v1752_v38 = vmax.f32 %v1720_v45, 0.0  ;;  %6054 = vmatpush3.bf16.msra.mxu1 %v6480_v21 }
 0x305   : > { %v1770_v54 = vpack.c.bf16 %v1754_v7, %v1753_v26  ;;  %6055 = vmatprep.subr.bf16.mxu1 %v6481_v30 }
 0x306   : > { %v1769_v31 = vpack.c.bf16 %v1752_v38, %v1751_v27 }
 0x308   : > { %5999 = vmatprep.mubr.bf16.mxu1 %v1769_v31  ;;  %6056 = vmatpush3.bf16.msra.mxu1 %v6481_v30 }
 0x309   : > { %6000 = vmatmul.mubr.bf16.gmra.mrb[76].mxu1 %v1770_v54  ;;  %6057 = vmatprep.subr.bf16.mxu1 %v6482_v44 }
 0x30c   : > { %6058 = vmatpush3.bf16.msra.mxu1 %v6482_v44 }
 0x30d   : > { %6059 = vmatprep.subr.bf16.mxu1 %v6483_v17 }
 0x310   : > { %6060 = vmatpush3.bf16.msra.mxu1 %v6483_v17 }
 0x311   : > { %6061 = vmatprep.subr.bf16.mxu1 %v6484_v10 }
 0x314   : > { %6062 = vmatpush3.bf16.msra.mxu1 %v6484_v10 }
 0x3a4   : > { %v5973_v47 = vpop.f32.mrb[48].mxu1 }
 0x3a5   : > { %v1887_v25 = vadd.f32 %v5973_v47, %v7547_v22  ;;  %v1878_v41 = vpop.f32.mrb[49].mxu1 }
 0x3a6   : > { %v1879_v63 = vadd.f32 %v7547_v22, %v1878_v41  ;;  %v5974_v2 = vpop.f32.mrb[50].mxu1 }
 0x3a7   : > { %v2011_v3 = vmul.f32 %v7553_v23, %v1887_v25  ;;  %v1890_v39 = vadd.f32 %v5974_v2, %v7547_v22  ;;  %v1881_v45 = vpop.f32.mrb[51].mxu1 }
 0x3a8   : > { %v2009_v26 = vmul.f32 %v7553_v23, %v1879_v63  ;;  %v1882_v7 = vadd.f32 %v7547_v22, %v1881_v45 }
 0x3a9   : > { %v2047_v27 = vadd.f32 %v7559_v49, %v2011_v3  ;;  %v2012_v38 = vmul.f32 %v7553_v23, %v1890_v39 }
 0x3aa   : > { %v2045_v54 = vadd.f32 %v7559_v49, %v2009_v26  ;;  %v2010_v31 = vmul.f32 %v7553_v23, %v1882_v7 }
 0x3ab   : > { %v2048_v37 = vadd.f32 %v7559_v49, %v2012_v38  ;;  %v2079_v30 = vmax.f32 %v2047_v27, 0.0 }
 0x3ac   : > { %v2046_v53 = vadd.f32 %v7559_v49, %v2010_v31  ;;  %v5977_v21 = vpop.f32.mrb[52].mxu1  ;;  %v2077_v9 = vmax.f32 %v2045_v54, 0.0 }
 0x3ad   : > { %v2080_v44 = vmax.f32 %v2048_v37, 0.0  ;;  %v1903_v17 = vadd.f32 %v5977_v21, %v7547_v22  ;;  %v1894_v10 = vpop.f32.mrb[53].mxu1 }
 0x3ae   : > { %v2078_v47 = vmax.f32 %v2046_v53, 0.0  ;;  %v1895_v25 = vadd.f32 %v7547_v22, %v1894_v10  ;;  %v5978_v41 = vpop.f32.mrb[54].mxu1 }
 0x3af   : > { %v2110_v63 = vpack.c.bf16 %v2080_v44, %v2079_v30  ;;  %v2015_v2 = vmul.f32 %v7553_v23, %v1903_v17  ;;  %v1906_v3 = vadd.f32 %v5978_v41, %v7547_v22  ;;  %v1897_v39 = vpop.f32.mrb[55].mxu1 }
 0x3b0   : > { %v2013_v45 = vmul.f32 %v7553_v23, %v1895_v25  ;;  %v1898_v26 = vadd.f32 %v7547_v22, %v1897_v39  ;;  %v2109_v7 = vpack.c.bf16 %v2078_v47, %v2077_v9 }
 0x3b1   : > { %v2051_v27 = vadd.f32 %v7559_v49, %v2015_v2  ;;  %v2016_v38 = vmul.f32 %v7553_v23, %v1906_v3 }
 0x3b2   : > { %v2049_v54 = vadd.f32 %v7559_v49, %v2013_v45  ;;  %v2014_v31 = vmul.f32 %v7553_v23, %v1898_v26  ;;  %6019 = vmatprep.mubr.bf16.mxu0 %v2109_v7 }
 0x3b3   : > { %v2052_v37 = vadd.f32 %v7559_v49, %v2016_v38  ;;  %6020 = vmatmul.mubr.bf16.vlgmr.msra.gmra.mrb[48].mxu0 %v2110_v63  ;;  %v2083_v30 = vmax.f32 %v2051_v27, 0.0 }
 0x3b4   : > { %v2050_v53 = vadd.f32 %v7559_v49, %v2014_v31  ;;  %v5981_v21 = vpop.f32.mrb[56].mxu1  ;;  %v2081_v9 = vmax.f32 %v2049_v54, 0.0 }
 0x3b5   : > { %v2084_v44 = vmax.f32 %v2052_v37, 0.0  ;;  %v1919_v17 = vadd.f32 %v5981_v21, %v7547_v22  ;;  %v1910_v10 = vpop.f32.mrb[57].mxu1 }
 0x3b6   : > { %v2082_v47 = vmax.f32 %v2050_v53, 0.0  ;;  %v1911_v25 = vadd.f32 %v7547_v22, %v1910_v10  ;;  %v5982_v41 = vpop.f32.mrb[58].mxu1 }
 0x3b7   : > { %v2019_v2 = vmul.f32 %v7553_v23, %v1919_v17  ;;  %v1922_v3 = vadd.f32 %v5982_v41, %v7547_v22  ;;  %v1913_v39 = vpop.f32.mrb[59].mxu1  ;;  %v2112_v45 = vpack.c.bf16 %v2084_v44, %v2083_v30 }
 0x3b8   : > { %v2017_v63 = vmul.f32 %v7553_v23, %v1911_v25  ;;  %v1914_v26 = vadd.f32 %v7547_v22, %v1913_v39  ;;  %v2111_v7 = vpack.c.bf16 %v2082_v47, %v2081_v9 }
 0x3b9   : > { %v2055_v27 = vadd.f32 %v7559_v49, %v2019_v2  ;;  %v2020_v38 = vmul.f32 %v7553_v23, %v1922_v3 }
 0x3ba   : > { %v2053_v54 = vadd.f32 %v7559_v49, %v2017_v63  ;;  %v2018_v31 = vmul.f32 %v7553_v23, %v1914_v26  ;;  %6023 = vmatprep.mubr.bf16.mxu0 %v2111_v7 }
 0x3bb   : > { %v2056_v37 = vadd.f32 %v7559_v49, %v2020_v38  ;;  %6024 = vmatmul.mubr.bf16.gmra.mrb[52].mxu0 %v2112_v45  ;;  %v2087_v30 = vmax.f32 %v2055_v27, 0.0 }
 0x3bc   : > { %v2054_v53 = vadd.f32 %v7559_v49, %v2018_v31  ;;  %v5985_v21 = vpop.f32.mrb[60].mxu1  ;;  %v2085_v9 = vmax.f32 %v2053_v54, 0.0 }
 0x3bd   : > { %v2088_v44 = vmax.f32 %v2056_v37, 0.0  ;;  %v1935_v17 = vadd.f32 %v5985_v21, %v7547_v22  ;;  %v1926_v10 = vpop.f32.mrb[61].mxu1 }
 0x3be   : > { %v2086_v47 = vmax.f32 %v2054_v53, 0.0  ;;  %v1927_v25 = vadd.f32 %v7547_v22, %v1926_v10  ;;  %v5986_v41 = vpop.f32.mrb[62].mxu1 }
 0x3bf   : > { %v2023_v2 = vmul.f32 %v7553_v23, %v1935_v17  ;;  %v1938_v3 = vadd.f32 %v5986_v41, %v7547_v22  ;;  %v1929_v39 = vpop.f32.mrb[63].mxu1  ;;  %v2114_v63 = vpack.c.bf16 %v2088_v44, %v2087_v30 }
 0x3c0   : > { %v2021_v45 = vmul.f32 %v7553_v23, %v1927_v25  ;;  %v1930_v26 = vadd.f32 %v7547_v22, %v1929_v39  ;;  %v2113_v7 = vpack.c.bf16 %v2086_v47, %v2085_v9 }
 0x3c1   : > { %v2059_v27 = vadd.f32 %v7559_v49, %v2023_v2  ;;  %v2024_v38 = vmul.f32 %v7553_v23, %v1938_v3 }
 0x3c2   : > { %v2057_v54 = vadd.f32 %v7559_v49, %v2021_v45  ;;  %v2022_v31 = vmul.f32 %v7553_v23, %v1930_v26  ;;  %6027 = vmatprep.mubr.bf16.mxu0 %v2113_v7 }
 0x3c3   : > { %v2060_v37 = vadd.f32 %v7559_v49, %v2024_v38  ;;  %6028 = vmatmul.mubr.bf16.gmra.mrb[56].mxu0 %v2114_v63  ;;  %v2091_v30 = vmax.f32 %v2059_v27, 0.0 }
 0x3c4   : > { %v2058_v53 = vadd.f32 %v7559_v49, %v2022_v31  ;;  %v5989_v21 = vpop.f32.mrb[64].mxu1  ;;  %v2089_v9 = vmax.f32 %v2057_v54, 0.0 }
 0x3c5   : > { %v2092_v44 = vmax.f32 %v2060_v37, 0.0  ;;  %v1951_v17 = vadd.f32 %v5989_v21, %v7547_v22  ;;  %v1942_v10 = vpop.f32.mrb[65].mxu1 }
 0x3c6   : > { %v2090_v47 = vmax.f32 %v2058_v53, 0.0  ;;  %v1943_v25 = vadd.f32 %v7547_v22, %v1942_v10  ;;  %v5990_v41 = vpop.f32.mrb[66].mxu1 }
 0x3c7   : > { %v2027_v2 = vmul.f32 %v7553_v23, %v1951_v17  ;;  %v1954_v3 = vadd.f32 %v5990_v41, %v7547_v22  ;;  %v1945_v39 = vpop.f32.mrb[67].mxu1  ;;  %v2116_v45 = vpack.c.bf16 %v2092_v44, %v2091_v30 }
 0x3c8   : > { %v2025_v63 = vmul.f32 %v7553_v23, %v1943_v25  ;;  %v1946_v26 = vadd.f32 %v7547_v22, %v1945_v39  ;;  %v2115_v7 = vpack.c.bf16 %v2090_v47, %v2089_v9 }
 0x3c9   : > { %v2063_v27 = vadd.f32 %v7559_v49, %v2027_v2  ;;  %v2028_v38 = vmul.f32 %v7553_v23, %v1954_v3 }
 0x3ca   : > { %v2061_v54 = vadd.f32 %v7559_v49, %v2025_v63  ;;  %v2026_v31 = vmul.f32 %v7553_v23, %v1946_v26  ;;  %6031 = vmatprep.mubr.bf16.mxu0 %v2115_v7 }
 0x3cb   : > { %v2064_v37 = vadd.f32 %v7559_v49, %v2028_v38  ;;  %6032 = vmatmul.mubr.bf16.gmra.mrb[60].mxu0 %v2116_v45  ;;  %v2095_v30 = vmax.f32 %v2063_v27, 0.0 }
 0x3cc   : > { %v2062_v53 = vadd.f32 %v7559_v49, %v2026_v31  ;;  %v5993_v21 = vpop.f32.mrb[68].mxu1  ;;  %v2093_v9 = vmax.f32 %v2061_v54, 0.0 }
 0x3cd   : > { %v2096_v44 = vmax.f32 %v2064_v37, 0.0  ;;  %v1967_v17 = vadd.f32 %v5993_v21, %v7547_v22  ;;  %v1958_v10 = vpop.f32.mrb[69].mxu1 }
 0x3ce   : > { %v2094_v47 = vmax.f32 %v2062_v53, 0.0  ;;  %v1959_v25 = vadd.f32 %v7547_v22, %v1958_v10  ;;  %v5994_v41 = vpop.f32.mrb[70].mxu1 }
 0x3cf   : > { %v2031_v2 = vmul.f32 %v7553_v23, %v1967_v17  ;;  %v1970_v3 = vadd.f32 %v5994_v41, %v7547_v22  ;;  %v1961_v39 = vpop.f32.mrb[71].mxu1  ;;  %v2118_v63 = vpack.c.bf16 %v2096_v44, %v2095_v30 }
 0x3d0   : > { %v2029_v45 = vmul.f32 %v7553_v23, %v1959_v25  ;;  %v1962_v26 = vadd.f32 %v7547_v22, %v1961_v39  ;;  %v2117_v7 = vpack.c.bf16 %v2094_v47, %v2093_v9 }
 0x3d1   : > { %v2067_v27 = vadd.f32 %v7559_v49, %v2031_v2  ;;  %v2032_v38 = vmul.f32 %v7553_v23, %v1970_v3 }
 0x3d2   : > { %v2065_v54 = vadd.f32 %v7559_v49, %v2029_v45  ;;  %v2030_v31 = vmul.f32 %v7553_v23, %v1962_v26  ;;  %6035 = vmatprep.mubr.bf16.mxu0 %v2117_v7 }
 0x3d3   : > { %v2068_v37 = vadd.f32 %v7559_v49, %v2032_v38  ;;  %6036 = vmatmul.mubr.bf16.gmra.mrb[64].mxu0 %v2118_v63  ;;  %v2099_v30 = vmax.f32 %v2067_v27, 0.0 }
 0x3d4   : > { %v2066_v53 = vadd.f32 %v7559_v49, %v2030_v31  ;;  %v5997_v21 = vpop.f32.mrb[72].mxu1  ;;  %v2097_v9 = vmax.f32 %v2065_v54, 0.0 }
 0x3d5   : > { %v2100_v44 = vmax.f32 %v2068_v37, 0.0  ;;  %v1983_v17 = vadd.f32 %v5997_v21, %v7547_v22  ;;  %v1974_v10 = vpop.f32.mrb[73].mxu1 }
 0x3d6   : > { %v2098_v47 = vmax.f32 %v2066_v53, 0.0  ;;  %v1975_v25 = vadd.f32 %v7547_v22, %v1974_v10  ;;  %v5998_v41 = vpop.f32.mrb[74].mxu1 }
 0x3d7   : > { %v2035_v2 = vmul.f32 %v7553_v23, %v1983_v17  ;;  %v1986_v3 = vadd.f32 %v5998_v41, %v7547_v22  ;;  %v1977_v39 = vpop.f32.mrb[75].mxu1  ;;  %v2120_v45 = vpack.c.bf16 %v2100_v44, %v2099_v30 }
 0x3d8   : > { %v2033_v63 = vmul.f32 %v7553_v23, %v1975_v25  ;;  %v1978_v26 = vadd.f32 %v7547_v22, %v1977_v39  ;;  %v2119_v7 = vpack.c.bf16 %v2098_v47, %v2097_v9 }
 0x3d9   : > { %v2071_v27 = vadd.f32 %v7559_v49, %v2035_v2  ;;  %v2036_v38 = vmul.f32 %v7553_v23, %v1986_v3 }
 0x3da   : > { %v2069_v54 = vadd.f32 %v7559_v49, %v2033_v63  ;;  %v2034_v31 = vmul.f32 %v7553_v23, %v1978_v26  ;;  %6039 = vmatprep.mubr.bf16.mxu0 %v2119_v7 }
 0x3db   : > { %v2072_v37 = vadd.f32 %v7559_v49, %v2036_v38  ;;  %6040 = vmatmul.mubr.bf16.gmra.mrb[68].mxu0 %v2120_v45  ;;  %v2103_v30 = vmax.f32 %v2071_v27, 0.0 }
 0x3dc   : > { %v2070_v53 = vadd.f32 %v7559_v49, %v2034_v31  ;;  %v6001_v21 = vpop.f32.mrb[76].mxu1  ;;  %v2101_v9 = vmax.f32 %v2069_v54, 0.0 }
 0x3dd   : > { %v2104_v44 = vmax.f32 %v2072_v37, 0.0  ;;  %v1999_v17 = vadd.f32 %v6001_v21, %v7547_v22  ;;  %v1990_v10 = vpop.f32.mrb[77].mxu1 }
 0x3de   : > { %v2102_v47 = vmax.f32 %v2070_v53, 0.0  ;;  %v1991_v25 = vadd.f32 %v7547_v22, %v1990_v10  ;;  %v6002_v41 = vpop.f32.mrb[78].mxu1 }
 0x3df   : > { %v2039_v2 = vmul.f32 %v7553_v23, %v1999_v17  ;;  %v2002_v3 = vadd.f32 %v6002_v41, %v7547_v22  ;;  %v1993_v39 = vpop.f32.mrb[79].mxu1  ;;  %v2122_v63 = vpack.c.bf16 %v2104_v44, %v2103_v30  ;;  %v6490_v41 = vld [vmem:[%s9046_s5 + $0x158] sm:$0xff]  }
 0x3e0   : > { %v2037_v45 = vmul.f32 %v7553_v23, %v1991_v25  ;;  %v1994_v26 = vadd.f32 %v7547_v22, %v1993_v39  ;;  %v2121_v7 = vpack.c.bf16 %v2102_v47, %v2101_v9  ;;  %v6485_v9 = vld [vmem:[%s9046_s5 + $0x130] sm:$0xff]   ;;  %v6488_v47 = vld [vmem:[%s9046_s5 + $0x148] sm:$0xff]  }
 0x3e1   : > { %v2075_v27 = vadd.f32 %v7559_v49, %v2039_v2  ;;  %v2040_v38 = vmul.f32 %v7553_v23, %v2002_v3  ;;  %6063 = vmatprep.subr.bf16.mxu1 %v6485_v9  ;;  %v6489_v25 = vld [vmem:[%s9046_s5 + $0x150] sm:$0xff]   ;;  %v6491_v2 = vld [vmem:[%s9046_s5 + $0x160] sm:$0xff]   ;;  %v6492_v3 = vld [vmem:[%s9046_s5 + $0x168] sm:$0xff]  }
 0x3e2   : > { %v2073_v54 = vadd.f32 %v7559_v49, %v2037_v45  ;;  %v2038_v31 = vmul.f32 %v7553_v23, %v1994_v26  ;;  %6043 = vmatprep.mubr.bf16.mxu0 %v2121_v7  ;;  %6064 = vmatpush3.bf16.msra.mxu1 %v6485_v9  ;;  %v6486_v23 = vld [vmem:[%s9046_s5 + $0x138] sm:$0xff]   ;;  %v6493_v39 = vld [vmem:[%s9046_s5 + $0x170] sm:$0xff]   ;;  %v7688_v45 = vld [vmem:[%s9047_s6 + $0x3] ss:$0 sm:$0xff] }
 0x3e3   : > { %v2076_v37 = vadd.f32 %v7559_v49, %v2040_v38  ;;  %6044 = vmatmul.mubr.bf16.gmra.mrb[72].mxu0 %v2122_v63  ;;  %v2107_v21 = vmax.f32 %v2075_v27, 0.0  ;;  %6065 = vmatprep.subr.bf16.mxu1 %v6486_v23  ;;  %v2457_v63 = vsub.s32 4, %v6775_v4 }
 0x3e4   : > { %v2074_v53 = vadd.f32 %v7559_v49, %v2038_v31  ;;  %v2105_v44 = vmax.f32 %v2073_v54, 0.0  ;;  %v6487_v49 = vld [vmem:[%s9046_s5 + $0x140] sm:$0xff]  }
 0x3e5   : > { %v2108_v30 = vmax.f32 %v2076_v37, 0.0  ;;  %6099 = vmatprep.subr.bf16.mxu0 %v6487_v49  ;;  %v7691_v7 = vrot.slane %v7550_v18, %v2457_v63  ;;  %v7696_v37 = vrot.slane %v7556_v52, %v2457_v63 }
 0x3e6   : > { %v2106_v17 = vmax.f32 %v2074_v53, 0.0  ;;  %6066 = vmatpush3.bf16.msra.mxu1 %v6486_v23  ;;  %6100 = vmatpush3.bf16.msra.mxu0 %v6487_v49 }
 0x3e7   : > { %v2124_v22 = vpack.c.bf16 %v2108_v30, %v2107_v21  ;;  %6101 = vmatprep.subr.bf16.mxu0 %v6488_v47 }
 0x3e8   : > { %v2123_v10 = vpack.c.bf16 %v2106_v17, %v2105_v44 }
 0x3ea   : > { %6047 = vmatprep.mubr.bf16.mxu0 %v2123_v10  ;;  %6102 = vmatpush3.bf16.msra.mxu0 %v6488_v47 }
 0x3eb   : > { %6048 = vmatmul.mubr.bf16.gmra.mrb[76].mxu0 %v2124_v22  ;;  %6103 = vmatprep.subr.bf16.mxu0 %v6489_v25 }
 0x3ee   : > { %6104 = vmatpush3.bf16.msra.mxu0 %v6489_v25 }
 0x3ef   : > { %6105 = vmatprep.subr.bf16.mxu0 %v6490_v41 }
 0x3f2   : > { %6106 = vmatpush3.bf16.msra.mxu0 %v6490_v41 }
 0x3f3   : > { %6107 = vmatprep.subr.bf16.mxu0 %v6491_v2 }
 0x3f6   : > { %6108 = vmatpush3.bf16.msra.mxu0 %v6491_v2 }
 0x3f7   : > { %6109 = vmatprep.subr.bf16.mxu0 %v6492_v3 }
 0x3fa   : > { %6110 = vmatpush3.bf16.msra.mxu0 %v6492_v3 }
 0x3fb   : > { %6111 = vmatprep.subr.bf16.mxu0 %v6493_v39 }
 0x3fe   : > { %6112 = vmatpush3.bf16.msra.mxu0 %v6493_v39 }
 0x486   : > { %v6021_v26 = vpop.f32.mrb[48].mxu0 }
 0x487   : > { %v2241_v27 = vadd.f32 %v6021_v26, %v7688_v45  ;;  %v2232_v38 = vpop.f32.mrb[49].mxu0 }
 0x488   : > { %v2233_v54 = vadd.f32 %v7688_v45, %v2232_v38  ;;  %v6022_v31 = vpop.f32.mrb[50].mxu0 }
 0x489   : > { %v7699_v53 = vadd.f32 %v2241_v27, %v7301_v28  ;;  %v2244_v21 = vadd.f32 %v6022_v31, %v7688_v45  ;;  %v2235_v30 = vpop.f32.mrb[51].mxu0 }
 0x48a   : > { %v7703_v44 = vadd.f32 %v2233_v54, %v7305_v34  ;;  %v2236_v17 = vadd.f32 %v7688_v45, %v2235_v30 }
 0x48b   : > { %v2461_v22 = vmul.f32 %v7691_v7, %v7699_v53  ;;  %v7709_v10 = vadd.f32 %v2244_v21, %v7311_v60 }
 0x48c   : > { %v2459_v9 = vmul.f32 %v7691_v7, %v7703_v44  ;;  %v7714_v28 = vadd.f32 %v2236_v17, %v7316_v59 }
 0x48d   : > { %v2497_v23 = vadd.f32 %v7696_v37, %v2461_v22  ;;  %v2462_v34 = vmul.f32 %v7691_v7, %v7709_v10 }
 0x48e   : > { %v2460_v49 = vmul.f32 %v7691_v7, %v7714_v28  ;;  %v6025_v47 = vpop.f32.mrb[52].mxu0  ;;  %v2495_v25 = vadd.f32 %v7696_v37, %v2459_v9 }
 0x48f   : > { %v2498_v60 = vadd.f32 %v7696_v37, %v2462_v34  ;;  %v2257_v41 = vadd.f32 %v6025_v47, %v7688_v45  ;;  %v2248_v2 = vpop.f32.mrb[53].mxu0  ;;  %v2529_v63 = vmax.f32 %v2497_v23, 0.0 }
 0x490   : > { %v2249_v3 = vadd.f32 %v7688_v45, %v2248_v2  ;;  %v6026_v59 = vpop.f32.mrb[54].mxu0  ;;  %v2496_v39 = vadd.f32 %v7696_v37, %v2460_v49  ;;  %v2527_v30 = vmax.f32 %v2495_v25, 0.0 }
 0x491   : > { %v2530_v26 = vmax.f32 %v2498_v60, 0.0  ;;  %v7727_v27 = vadd.f32 %v2257_v41, %v7329_v36  ;;  %v2260_v38 = vadd.f32 %v6026_v59, %v7688_v45  ;;  %v2251_v54 = vpop.f32.mrb[55].mxu0 }
 0x492   : > { %v7731_v31 = vadd.f32 %v2249_v3, %v7333_v55  ;;  %v2252_v21 = vadd.f32 %v7688_v45, %v2251_v54  ;;  %v2528_v17 = vmax.f32 %v2496_v39, 0.0 }
 0x493   : > { %v2560_v22 = vpack.c.bf16 %v2530_v26, %v2529_v63  ;;  %v2465_v9 = vmul.f32 %v7691_v7, %v7727_v27  ;;  %v7737_v23 = vadd.f32 %v2260_v38, %v7339_v46 }
 0x494   : > { %v2463_v36 = vmul.f32 %v7691_v7, %v7731_v31  ;;  %v7742_v34 = vadd.f32 %v2252_v21, %v7344_v11  ;;  %v2559_v49 = vpack.c.bf16 %v2528_v17, %v2527_v30 }
 0x495   : > { %v2466_v55 = vmul.f32 %v7691_v7, %v7737_v23  ;;  %v2501_v47 = vadd.f32 %v7696_v37, %v2465_v9 }
 0x496   : > { %v2464_v25 = vmul.f32 %v7691_v7, %v7742_v34  ;;  %v6029_v60 = vpop.f32.mrb[56].mxu0  ;;  %6067 = vmatprep.mubr.bf16.mxu1 %v2559_v49  ;;  %v2499_v46 = vadd.f32 %v7696_v37, %v2463_v36 }
 0x497   : > { %v2273_v41 = vadd.f32 %v6029_v60, %v7688_v45  ;;  %v2264_v2 = vpop.f32.mrb[57].mxu0  ;;  %6068 = vmatmul.mubr.bf16.vlgmr.msra.gmra.mrb[80].mxu1 %v2560_v22  ;;  %v2502_v11 = vadd.f32 %v7696_v37, %v2466_v55  ;;  %v2533_v54 = vmax.f32 %v2501_v47, 0.0 }
 0x498   : > { %v2265_v3 = vadd.f32 %v7688_v45, %v2264_v2  ;;  %v6030_v59 = vpop.f32.mrb[58].mxu0  ;;  %v2500_v39 = vadd.f32 %v7696_v37, %v2464_v25  ;;  %v2531_v22 = vmax.f32 %v2499_v46, 0.0 }
 0x499   : > { %v7755_v63 = vadd.f32 %v2273_v41, %v7357_v0  ;;  %v2276_v26 = vadd.f32 %v6030_v59, %v7688_v45  ;;  %v2267_v38 = vpop.f32.mrb[59].mxu0  ;;  %v2534_v21 = vmax.f32 %v2502_v11, 0.0 }
 0x49a   : > { %v7759_v30 = vadd.f32 %v2265_v3, %v7361_v16  ;;  %v2268_v17 = vadd.f32 %v7688_v45, %v2267_v38  ;;  %v2532_v9 = vmax.f32 %v2500_v39, 0.0 }
 0x49b   : > { %v2469_v36 = vmul.f32 %v7691_v7, %v7755_v63  ;;  %v7765_v49 = vadd.f32 %v2276_v26, %v7367_v58  ;;  %v2562_v0 = vpack.c.bf16 %v2534_v21, %v2533_v54 }
 0x49c   : > { %v2467_v55 = vmul.f32 %v7691_v7, %v7759_v30  ;;  %v7770_v47 = vadd.f32 %v2268_v17, %v7372_v19  ;;  %v2561_v25 = vpack.c.bf16 %v2532_v9, %v2531_v22 }
 0x49d   : > { %v2470_v16 = vmul.f32 %v7691_v7, %v7765_v49  ;;  %v2505_v60 = vadd.f32 %v7696_v37, %v2469_v36 }
 0x49e   : > { %v2468_v46 = vmul.f32 %v7691_v7, %v7770_v47  ;;  %v6033_v41 = vpop.f32.mrb[60].mxu0  ;;  %6071 = vmatprep.mubr.bf16.mxu1 %v2561_v25  ;;  %v2503_v58 = vadd.f32 %v7696_v37, %v2467_v55 }
 0x49f   : > { %v2289_v2 = vadd.f32 %v6033_v41, %v7688_v45  ;;  %v2280_v11 = vpop.f32.mrb[61].mxu0  ;;  %6072 = vmatmul.mubr.bf16.gmra.mrb[84].mxu1 %v2562_v0  ;;  %v2506_v19 = vadd.f32 %v7696_v37, %v2470_v16  ;;  %v2537_v21 = vmax.f32 %v2505_v60, 0.0 }
 0x4a0   : > { %v2281_v3 = vadd.f32 %v7688_v45, %v2280_v11  ;;  %v6034_v59 = vpop.f32.mrb[62].mxu0  ;;  %v2504_v39 = vadd.f32 %v7696_v37, %v2468_v46  ;;  %v2535_v36 = vmax.f32 %v2503_v58, 0.0 }
 0x4a1   : > { %v7783_v26 = vadd.f32 %v2289_v2, %v7385_v32  ;;  %v2292_v38 = vadd.f32 %v6034_v59, %v7688_v45  ;;  %v2283_v54 = vpop.f32.mrb[63].mxu0  ;;  %v2538_v17 = vmax.f32 %v2506_v19, 0.0 }
 0x4a2   : > { %v7787_v22 = vadd.f32 %v2281_v3, %v7389_v6  ;;  %v2284_v9 = vadd.f32 %v7688_v45, %v2283_v54  ;;  %v2536_v0 = vmax.f32 %v2504_v39, 0.0 }
 0x4a3   : > { %v2473_v55 = vmul.f32 %v7691_v7, %v7783_v26  ;;  %v7793_v25 = vadd.f32 %v2292_v38, %v7395_v35  ;;  %v2564_v32 = vpack.c.bf16 %v2538_v17, %v2537_v21 }
 0x4a4   : > { %v2471_v16 = vmul.f32 %v7691_v7, %v7787_v22  ;;  %v7798_v60 = vadd.f32 %v2284_v9, %v7400_v33  ;;  %v2563_v46 = vpack.c.bf16 %v2536_v0, %v2535_v36 }
 0x4a5   : > { %v2474_v6 = vmul.f32 %v7691_v7, %v7793_v25  ;;  %v2509_v41 = vadd.f32 %v7696_v37, %v2473_v55 }
 0x4a6   : > { %v2472_v58 = vmul.f32 %v7691_v7, %v7798_v60  ;;  %v6037_v2 = vpop.f32.mrb[64].mxu0  ;;  %6075 = vmatprep.mubr.bf16.mxu1 %v2563_v46  ;;  %v2507_v35 = vadd.f32 %v7696_v37, %v2471_v16 }
 0x4a7   : > { %v2305_v11 = vadd.f32 %v6037_v2, %v7688_v45  ;;  %v2296_v19 = vpop.f32.mrb[65].mxu0  ;;  %6076 = vmatmul.mubr.bf16.gmra.mrb[88].mxu1 %v2564_v32  ;;  %v2510_v33 = vadd.f32 %v7696_v37, %v2474_v6  ;;  %v2541_v17 = vmax.f32 %v2509_v41, 0.0 }
 0x4a8   : > { %v2297_v3 = vadd.f32 %v7688_v45, %v2296_v19  ;;  %v6038_v59 = vpop.f32.mrb[66].mxu0  ;;  %v2508_v39 = vadd.f32 %v7696_v37, %v2472_v58  ;;  %v2539_v55 = vmax.f32 %v2507_v35, 0.0 }
 0x4a9   : > { %v7811_v38 = vadd.f32 %v2305_v11, %v7413_v29  ;;  %v2308_v54 = vadd.f32 %v6038_v59, %v7688_v45  ;;  %v2299_v21 = vpop.f32.mrb[67].mxu0  ;;  %v2542_v9 = vmax.f32 %v2510_v33, 0.0 }
 0x4aa   : > { %v7815_v36 = vadd.f32 %v2297_v3, %v7417_v61  ;;  %v2300_v0 = vadd.f32 %v7688_v45, %v2299_v21  ;;  %v2540_v32 = vmax.f32 %v2508_v39, 0.0 }
 0x4ab   : > { %v2477_v16 = vmul.f32 %v7691_v7, %v7811_v38  ;;  %v7821_v46 = vadd.f32 %v2308_v54, %v7423_v40  ;;  %v2566_v29 = vpack.c.bf16 %v2542_v9, %v2541_v17 }
 0x4ac   : > { %v2475_v6 = vmul.f32 %v7691_v7, %v7815_v36  ;;  %v7826_v41 = vadd.f32 %v2300_v0, %v7428_v14  ;;  %v2565_v58 = vpack.c.bf16 %v2540_v32, %v2539_v55 }
 0x4ad   : > { %v2478_v61 = vmul.f32 %v7691_v7, %v7821_v46  ;;  %v2513_v2 = vadd.f32 %v7696_v37, %v2477_v16 }
 0x4ae   : > { %v2476_v35 = vmul.f32 %v7691_v7, %v7826_v41  ;;  %v6041_v11 = vpop.f32.mrb[68].mxu0  ;;  %6079 = vmatprep.mubr.bf16.mxu1 %v2565_v58  ;;  %v2511_v40 = vadd.f32 %v7696_v37, %v2475_v6 }
 0x4af   : > { %v2321_v19 = vadd.f32 %v6041_v11, %v7688_v45  ;;  %v2312_v33 = vpop.f32.mrb[69].mxu0  ;;  %6080 = vmatmul.mubr.bf16.gmra.mrb[92].mxu1 %v2566_v29  ;;  %v2514_v14 = vadd.f32 %v7696_v37, %v2478_v61  ;;  %v2545_v9 = vmax.f32 %v2513_v2, 0.0 }
 0x4b0   : > { %v2313_v3 = vadd.f32 %v7688_v45, %v2312_v33  ;;  %v6042_v59 = vpop.f32.mrb[70].mxu0  ;;  %v2512_v39 = vadd.f32 %v7696_v37, %v2476_v35  ;;  %v2543_v16 = vmax.f32 %v2511_v40, 0.0 }
 0x4b1   : > { %v7839_v54 = vadd.f32 %v2321_v19, %v7441_v5  ;;  %v2324_v21 = vadd.f32 %v6042_v59, %v7688_v45  ;;  %v2315_v17 = vpop.f32.mrb[71].mxu0  ;;  %v2546_v0 = vmax.f32 %v2514_v14, 0.0 }
 0x4b2   : > { %v7843_v55 = vadd.f32 %v2313_v3, %v7445_v8  ;;  %v2316_v32 = vadd.f32 %v7688_v45, %v2315_v17  ;;  %v2544_v29 = vmax.f32 %v2512_v39, 0.0 }
 0x4b3   : > { %v2481_v6 = vmul.f32 %v7691_v7, %v7839_v54  ;;  %v7849_v58 = vadd.f32 %v2324_v21, %v7451_v42  ;;  %v2568_v5 = vpack.c.bf16 %v2546_v0, %v2545_v9 }
 0x4b4   : > { %v2479_v61 = vmul.f32 %v7691_v7, %v7843_v55  ;;  %v7854_v2 = vadd.f32 %v2316_v32, %v7456_v1  ;;  %v2567_v35 = vpack.c.bf16 %v2544_v29, %v2543_v16 }
 0x4b5   : > { %v2482_v8 = vmul.f32 %v7691_v7, %v7849_v58  ;;  %v2517_v11 = vadd.f32 %v7696_v37, %v2481_v6 }
 0x4b6   : > { %v2480_v40 = vmul.f32 %v7691_v7, %v7854_v2  ;;  %v6045_v19 = vpop.f32.mrb[72].mxu0  ;;  %6083 = vmatprep.mubr.bf16.mxu1 %v2567_v35  ;;  %v2515_v42 = vadd.f32 %v7696_v37, %v2479_v61 }
 0x4b7   : > { %v2337_v33 = vadd.f32 %v6045_v19, %v7688_v45  ;;  %v2328_v14 = vpop.f32.mrb[73].mxu0  ;;  %6084 = vmatmul.mubr.bf16.gmra.mrb[96].mxu1 %v2568_v5  ;;  %v2518_v1 = vadd.f32 %v7696_v37, %v2482_v8  ;;  %v2549_v0 = vmax.f32 %v2517_v11, 0.0 }
 0x4b8   : > { %v2329_v3 = vadd.f32 %v7688_v45, %v2328_v14  ;;  %v6046_v59 = vpop.f32.mrb[74].mxu0  ;;  %v2516_v39 = vadd.f32 %v7696_v37, %v2480_v40  ;;  %v2547_v6 = vmax.f32 %v2515_v42, 0.0 }
 0x4b9   : > { %v7867_v21 = vadd.f32 %v2337_v33, %v7469_v50  ;;  %v2340_v17 = vadd.f32 %v6046_v59, %v7688_v45  ;;  %v2331_v9 = vpop.f32.mrb[75].mxu0  ;;  %v2550_v32 = vmax.f32 %v2518_v1, 0.0 }
 0x4ba   : > { %v7871_v16 = vadd.f32 %v2329_v3, %v7473_v51  ;;  %v2332_v29 = vadd.f32 %v7688_v45, %v2331_v9  ;;  %v2548_v5 = vmax.f32 %v2516_v39, 0.0 }
 0x4bb   : > { %v2485_v61 = vmul.f32 %v7691_v7, %v7867_v21  ;;  %v7877_v35 = vadd.f32 %v2340_v17, %v7479_v43  ;;  %v2570_v50 = vpack.c.bf16 %v2550_v32, %v2549_v0 }
 0x4bc   : > { %v2483_v8 = vmul.f32 %v7691_v7, %v7871_v16  ;;  %v7882_v11 = vadd.f32 %v2332_v29, %v7484_v24  ;;  %v2569_v40 = vpack.c.bf16 %v2548_v5, %v2547_v6 }
 0x4bd   : > { %v2486_v51 = vmul.f32 %v7691_v7, %v7877_v35  ;;  %v2521_v19 = vadd.f32 %v7696_v37, %v2485_v61 }
 0x4be   : > { %v2484_v42 = vmul.f32 %v7691_v7, %v7882_v11  ;;  %v6049_v33 = vpop.f32.mrb[76].mxu0  ;;  %6087 = vmatprep.mubr.bf16.mxu1 %v2569_v40  ;;  %v2519_v43 = vadd.f32 %v7696_v37, %v2483_v8 }
 0x4bf   : > { %v2353_v14 = vadd.f32 %v6049_v33, %v7688_v45  ;;  %v2344_v1 = vpop.f32.mrb[77].mxu0  ;;  %6088 = vmatmul.mubr.bf16.gmra.mrb[100].mxu1 %v2570_v50  ;;  %v2522_v24 = vadd.f32 %v7696_v37, %v2486_v51  ;;  %v2553_v32 = vmax.f32 %v2521_v19, 0.0 }
 0x4c0   : > { %v2345_v3 = vadd.f32 %v7688_v45, %v2344_v1  ;;  %v6050_v59 = vpop.f32.mrb[78].mxu0  ;;  %v2520_v39 = vadd.f32 %v7696_v37, %v2484_v42  ;;  %v2551_v61 = vmax.f32 %v2519_v43, 0.0 }
 0x4c1   : > { %v7895_v17 = vadd.f32 %v2353_v14, %v7497_v20  ;;  %v2356_v9 = vadd.f32 %v6050_v59, %v7688_v45  ;;  %v2347_v0 = vpop.f32.mrb[79].mxu0  ;;  %v2554_v29 = vmax.f32 %v2522_v24, 0.0 }
 0x4c2   : > { %v7899_v6 = vadd.f32 %v2345_v3, %v7501_v48  ;;  %v2348_v5 = vadd.f32 %v7688_v45, %v2347_v0  ;;  %v2552_v50 = vmax.f32 %v2520_v39, 0.0  ;;  %v6497_v0 = vld [vmem:[%s9046_s5 + $0x190] sm:$0xff]  }
 0x4c3   : > { %v2489_v8 = vmul.f32 %v7691_v7, %v7895_v17  ;;  %v7905_v40 = vadd.f32 %v2356_v9, %v7507_v56  ;;  %v2572_v20 = vpack.c.bf16 %v2554_v29, %v2553_v32  ;;  %v6495_v9 = vld [vmem:[%s9046_s5 + $0x180] sm:$0xff]   ;;  %v6498_v32 = vld [vmem:[%s9046_s5 + $0x198] sm:$0xff]  }
 0x4c4   : > { %v2487_v51 = vmul.f32 %v7691_v7, %v7899_v6  ;;  %v7910_v19 = vadd.f32 %v2348_v5, %v7512_v62  ;;  %v2571_v42 = vpack.c.bf16 %v2552_v50, %v2551_v61  ;;  %6147 = vmatprep.subr.bf16.mxu1 %v6495_v9  ;;  %v6499_v29 = vld [vmem:[%s9046_s5 + $0x1a0] sm:$0xff]   ;;  %v6500_v5 = vld [vmem:[%s9046_s5 + $0x1a8] sm:$0xff]   ;;  %v2811_v61 = vsub.s32 5, %v6775_v4 }
 0x4c5   : > { %v2490_v48 = vmul.f32 %v7691_v7, %v7905_v40  ;;  %v2525_v45 = vadd.f32 %v7696_v37, %v2489_v8  ;;  %6148 = vmatpush3.bf16.msra.mxu1 %v6495_v9  ;;  %v7945_v50 = vld [vmem:[%s9047_s6 + $0x4] ss:$0 sm:$0xff] }
 0x4c6   : > { %v2488_v33 = vmul.f32 %v7691_v7, %v7910_v19  ;;  %6091 = vmatprep.mubr.bf16.mxu1 %v2571_v42  ;;  %v2523_v56 = vadd.f32 %v7696_v37, %v2487_v51  ;;  %v6494_v7 = vld [vmem:[%s9046_s5 + $0x178] sm:$0xff]   ;;  %v7948_v8 = vrot.slane %v7550_v18, %v2811_v61  ;;  %v7951_v51 = vrot.slane %v7556_v52, %v2811_v61 }
 0x4c7   : > { %6092 = vmatmul.mubr.bf16.gmra.mrb[104].mxu1 %v2572_v20  ;;  %v2526_v43 = vadd.f32 %v7696_v37, %v2490_v48  ;;  %v2557_v1 = vmax.f32 %v2525_v45, 0.0  ;;  %6113 = vmatprep.subr.bf16.mxu0 %v6494_v7 }
 0x4c8   : > { %v2524_v14 = vadd.f32 %v7696_v37, %v2488_v33  ;;  %v2555_v24 = vmax.f32 %v2523_v56, 0.0  ;;  %6114 = vmatpush3.bf16.msra.mxu0 %v6494_v7  ;;  %v6496_v37 = vld [vmem:[%s9046_s5 + $0x188] sm:$0xff]  }
 0x4c9   : > { %v2558_v62 = vmax.f32 %v2526_v43, 0.0  ;;  %6149 = vmatprep.subr.bf16.mxu1 %v6496_v37 }
 0x4ca   : > { %v2556_v3 = vmax.f32 %v2524_v14, 0.0  ;;  %6150 = vmatpush3.bf16.msra.mxu1 %v6496_v37 }
 0x4cb   : > { %v2574_v59 = vpack.c.bf16 %v2558_v62, %v2557_v1  ;;  %6151 = vmatprep.subr.bf16.mxu1 %v6497_v0 }
 0x4cc   : > { %v2573_v39 = vpack.c.bf16 %v2556_v3, %v2555_v24 }
 0x4ce   : > { %6095 = vmatprep.mubr.bf16.mxu1 %v2573_v39  ;;  %6152 = vmatpush3.bf16.msra.mxu1 %v6497_v0 }
 0x4cf   : > { %6096 = vmatmul.mubr.bf16.gmra.mrb[108].mxu1 %v2574_v59  ;;  %6153 = vmatprep.subr.bf16.mxu1 %v6498_v32 }
 0x4d2   : > { %6154 = vmatpush3.bf16.msra.mxu1 %v6498_v32 }
 0x4d3   : > { %6155 = vmatprep.subr.bf16.mxu1 %v6499_v29 }
 0x4d6   : > { %6156 = vmatpush3.bf16.msra.mxu1 %v6499_v29 }
 0x4d7   : > { %6157 = vmatprep.subr.bf16.mxu1 %v6500_v5 }
 0x4da   : > { %6158 = vmatpush3.bf16.msra.mxu1 %v6500_v5 }
 0x56a   : > { %v6069_v20 = vpop.f32.mrb[80].mxu1 }
 0x56b   : > { %v2691_v42 = vadd.f32 %v6069_v20, %v7945_v50  ;;  %v2682_v48 = vpop.f32.mrb[81].mxu1 }
 0x56c   : > { %v2683_v45 = vadd.f32 %v7945_v50, %v2682_v48  ;;  %v6070_v33 = vpop.f32.mrb[82].mxu1 }
 0x56d   : > { %v2815_v56 = vmul.f32 %v7948_v8, %v2691_v42  ;;  %v2694_v43 = vadd.f32 %v6070_v33, %v7945_v50  ;;  %v2685_v14 = vpop.f32.mrb[83].mxu1 }
 0x56e   : > { %v2813_v1 = vmul.f32 %v7948_v8, %v2683_v45  ;;  %v2686_v18 = vadd.f32 %v7945_v50, %v2685_v14 }
 0x56f   : > { %v2851_v62 = vadd.f32 %v7951_v51, %v2815_v56  ;;  %v2816_v52 = vmul.f32 %v7948_v8, %v2694_v43 }
 0x570   : > { %v2849_v24 = vadd.f32 %v7951_v51, %v2813_v1  ;;  %v2814_v3 = vmul.f32 %v7948_v8, %v2686_v18 }
 0x571   : > { %v2852_v59 = vadd.f32 %v7951_v51, %v2816_v52  ;;  %v2883_v9 = vmax.f32 %v2851_v62, 0.0 }
 0x572   : > { %v2850_v39 = vadd.f32 %v7951_v51, %v2814_v3  ;;  %v6073_v7 = vpop.f32.mrb[84].mxu1  ;;  %v2881_v29 = vmax.f32 %v2849_v24, 0.0 }
 0x573   : > { %v2884_v37 = vmax.f32 %v2852_v59, 0.0  ;;  %v2707_v0 = vadd.f32 %v6073_v7, %v7945_v50  ;;  %v2698_v32 = vpop.f32.mrb[85].mxu1 }
 0x574   : > { %v2882_v5 = vmax.f32 %v2850_v39, 0.0  ;;  %v2699_v61 = vadd.f32 %v7945_v50, %v2698_v32  ;;  %v6074_v20 = vpop.f32.mrb[86].mxu1 }
 0x575   : > { %v2914_v42 = vpack.c.bf16 %v2884_v37, %v2883_v9  ;;  %v2819_v48 = vmul.f32 %v7948_v8, %v2707_v0  ;;  %v2710_v45 = vadd.f32 %v6074_v20, %v7945_v50  ;;  %v2701_v33 = vpop.f32.mrb[87].mxu1 }
 0x576   : > { %v2817_v56 = vmul.f32 %v7948_v8, %v2699_v61  ;;  %v2702_v43 = vadd.f32 %v7945_v50, %v2701_v33  ;;  %v2913_v14 = vpack.c.bf16 %v2882_v5, %v2881_v29 }
 0x577   : > { %v2855_v1 = vadd.f32 %v7951_v51, %v2819_v48  ;;  %v2820_v18 = vmul.f32 %v7948_v8, %v2710_v45 }
 0x578   : > { %v2853_v62 = vadd.f32 %v7951_v51, %v2817_v56  ;;  %v2818_v52 = vmul.f32 %v7948_v8, %v2702_v43  ;;  %6115 = vmatprep.mubr.bf16.mxu0 %v2913_v14 }
 0x579   : > { %v2856_v24 = vadd.f32 %v7951_v51, %v2820_v18  ;;  %6116 = vmatmul.mubr.bf16.vlgmr.msra.gmra.mrb[80].mxu0 %v2914_v42  ;;  %v2887_v39 = vmax.f32 %v2855_v1, 0.0 }
 0x57a   : > { %v2854_v3 = vadd.f32 %v7951_v51, %v2818_v52  ;;  %v6077_v59 = vpop.f32.mrb[88].mxu1  ;;  %v2885_v0 = vmax.f32 %v2853_v62, 0.0 }
 0x57b   : > { %v2888_v7 = vmax.f32 %v2856_v24, 0.0  ;;  %v2723_v9 = vadd.f32 %v6077_v59, %v7945_v50  ;;  %v2714_v37 = vpop.f32.mrb[89].mxu1 }
 0x57c   : > { %v2886_v32 = vmax.f32 %v2854_v3, 0.0  ;;  %v2715_v29 = vadd.f32 %v7945_v50, %v2714_v37  ;;  %v6078_v5 = vpop.f32.mrb[90].mxu1 }
 0x57d   : > { %v2823_v61 = vmul.f32 %v7948_v8, %v2723_v9  ;;  %v2726_v20 = vadd.f32 %v6078_v5, %v7945_v50  ;;  %v2717_v48 = vpop.f32.mrb[91].mxu1  ;;  %v2916_v45 = vpack.c.bf16 %v2888_v7, %v2887_v39 }
 0x57e   : > { %v2821_v42 = vmul.f32 %v7948_v8, %v2715_v29  ;;  %v2718_v33 = vadd.f32 %v7945_v50, %v2717_v48  ;;  %v2915_v56 = vpack.c.bf16 %v2886_v32, %v2885_v0 }
 0x57f   : > { %v2859_v43 = vadd.f32 %v7951_v51, %v2823_v61  ;;  %v2824_v14 = vmul.f32 %v7948_v8, %v2726_v20 }
 0x580   : > { %v2857_v1 = vadd.f32 %v7951_v51, %v2821_v42  ;;  %v2822_v18 = vmul.f32 %v7948_v8, %v2718_v33  ;;  %6119 = vmatprep.mubr.bf16.mxu0 %v2915_v56 }
 0x581   : > { %v2860_v62 = vadd.f32 %v7951_v51, %v2824_v14  ;;  %6120 = vmatmul.mubr.bf16.gmra.mrb[84].mxu0 %v2916_v45  ;;  %v2891_v3 = vmax.f32 %v2859_v43, 0.0 }
 0x582   : > { %v2858_v52 = vadd.f32 %v7951_v51, %v2822_v18  ;;  %v6081_v24 = vpop.f32.mrb[92].mxu1  ;;  %v2889_v9 = vmax.f32 %v2857_v1, 0.0 }
 0x583   : > { %v2892_v59 = vmax.f32 %v2860_v62, 0.0  ;;  %v2739_v39 = vadd.f32 %v6081_v24, %v7945_v50  ;;  %v2730_v7 = vpop.f32.mrb[93].mxu1 }
 0x584   : > { %v2890_v37 = vmax.f32 %v2858_v52, 0.0  ;;  %v2731_v0 = vadd.f32 %v7945_v50, %v2730_v7  ;;  %v6082_v32 = vpop.f32.mrb[94].mxu1 }
 0x585   : > { %v2827_v29 = vmul.f32 %v7948_v8, %v2739_v39  ;;  %v2742_v5 = vadd.f32 %v6082_v32, %v7945_v50  ;;  %v2733_v61 = vpop.f32.mrb[95].mxu1  ;;  %v2918_v20 = vpack.c.bf16 %v2892_v59, %v2891_v3 }
 0x586   : > { %v2825_v48 = vmul.f32 %v7948_v8, %v2731_v0  ;;  %v2734_v45 = vadd.f32 %v7945_v50, %v2733_v61  ;;  %v2917_v42 = vpack.c.bf16 %v2890_v37, %v2889_v9 }
 0x587   : > { %v2863_v33 = vadd.f32 %v7951_v51, %v2827_v29  ;;  %v2828_v56 = vmul.f32 %v7948_v8, %v2742_v5 }
 0x588   : > { %v2861_v43 = vadd.f32 %v7951_v51, %v2825_v48  ;;  %v2826_v14 = vmul.f32 %v7948_v8, %v2734_v45  ;;  %6123 = vmatprep.mubr.bf16.mxu0 %v2917_v42 }
 0x589   : > { %v2864_v1 = vadd.f32 %v7951_v51, %v2828_v56  ;;  %6124 = vmatmul.mubr.bf16.gmra.mrb[88].mxu0 %v2918_v20  ;;  %v2895_v52 = vmax.f32 %v2863_v33, 0.0 }
 0x58a   : > { %v2862_v18 = vadd.f32 %v7951_v51, %v2826_v14  ;;  %v6085_v62 = vpop.f32.mrb[96].mxu1  ;;  %v2893_v39 = vmax.f32 %v2861_v43, 0.0 }
 0x58b   : > { %v2896_v24 = vmax.f32 %v2864_v1, 0.0  ;;  %v2755_v3 = vadd.f32 %v6085_v62, %v7945_v50  ;;  %v2746_v59 = vpop.f32.mrb[97].mxu1 }
 0x58c   : > { %v2894_v7 = vmax.f32 %v2862_v18, 0.0  ;;  %v2747_v9 = vadd.f32 %v7945_v50, %v2746_v59  ;;  %v6086_v37 = vpop.f32.mrb[98].mxu1 }
 0x58d   : > { %v2831_v0 = vmul.f32 %v7948_v8, %v2755_v3  ;;  %v2758_v32 = vadd.f32 %v6086_v37, %v7945_v50  ;;  %v2749_v29 = vpop.f32.mrb[99].mxu1  ;;  %v2920_v5 = vpack.c.bf16 %v2896_v24, %v2895_v52 }
 0x58e   : > { %v2829_v61 = vmul.f32 %v7948_v8, %v2747_v9  ;;  %v2750_v20 = vadd.f32 %v7945_v50, %v2749_v29  ;;  %v2919_v48 = vpack.c.bf16 %v2894_v7, %v2893_v39 }
 0x58f   : > { %v2867_v45 = vadd.f32 %v7951_v51, %v2831_v0  ;;  %v2832_v42 = vmul.f32 %v7948_v8, %v2758_v32 }
 0x590   : > { %v2865_v33 = vadd.f32 %v7951_v51, %v2829_v61  ;;  %v2830_v56 = vmul.f32 %v7948_v8, %v2750_v20  ;;  %6127 = vmatprep.mubr.bf16.mxu0 %v2919_v48 }
 0x591   : > { %v2868_v43 = vadd.f32 %v7951_v51, %v2832_v42  ;;  %6128 = vmatmul.mubr.bf16.gmra.mrb[92].mxu0 %v2920_v5  ;;  %v2899_v18 = vmax.f32 %v2867_v45, 0.0 }
 0x592   : > { %v2866_v14 = vadd.f32 %v7951_v51, %v2830_v56  ;;  %v6089_v1 = vpop.f32.mrb[100].mxu1  ;;  %v2897_v3 = vmax.f32 %v2865_v33, 0.0 }
 0x593   : > { %v2900_v62 = vmax.f32 %v2868_v43, 0.0  ;;  %v2771_v52 = vadd.f32 %v6089_v1, %v7945_v50  ;;  %v2762_v24 = vpop.f32.mrb[101].mxu1 }
 0x594   : > { %v2898_v59 = vmax.f32 %v2866_v14, 0.0  ;;  %v2763_v39 = vadd.f32 %v7945_v50, %v2762_v24  ;;  %v6090_v7 = vpop.f32.mrb[102].mxu1 }
 0x595   : > { %v2835_v9 = vmul.f32 %v7948_v8, %v2771_v52  ;;  %v2774_v37 = vadd.f32 %v6090_v7, %v7945_v50  ;;  %v2765_v0 = vpop.f32.mrb[103].mxu1  ;;  %v2922_v32 = vpack.c.bf16 %v2900_v62, %v2899_v18 }
 0x596   : > { %v2833_v29 = vmul.f32 %v7948_v8, %v2763_v39  ;;  %v2766_v5 = vadd.f32 %v7945_v50, %v2765_v0  ;;  %v2921_v61 = vpack.c.bf16 %v2898_v59, %v2897_v3 }
 0x597   : > { %v2871_v20 = vadd.f32 %v7951_v51, %v2835_v9  ;;  %v2836_v48 = vmul.f32 %v7948_v8, %v2774_v37 }
 0x598   : > { %v2869_v45 = vadd.f32 %v7951_v51, %v2833_v29  ;;  %v2834_v42 = vmul.f32 %v7948_v8, %v2766_v5  ;;  %6131 = vmatprep.mubr.bf16.mxu0 %v2921_v61 }
 0x599   : > { %v2872_v33 = vadd.f32 %v7951_v51, %v2836_v48  ;;  %6132 = vmatmul.mubr.bf16.gmra.mrb[96].mxu0 %v2922_v32  ;;  %v2903_v14 = vmax.f32 %v2871_v20, 0.0 }
 0x59a   : > { %v2870_v56 = vadd.f32 %v7951_v51, %v2834_v42  ;;  %v6093_v43 = vpop.f32.mrb[104].mxu1  ;;  %v2901_v52 = vmax.f32 %v2869_v45, 0.0 }
 0x59b   : > { %v2904_v1 = vmax.f32 %v2872_v33, 0.0  ;;  %v2787_v18 = vadd.f32 %v6093_v43, %v7945_v50  ;;  %v2778_v62 = vpop.f32.mrb[105].mxu1 }
 0x59c   : > { %v2902_v24 = vmax.f32 %v2870_v56, 0.0  ;;  %v2779_v3 = vadd.f32 %v7945_v50, %v2778_v62  ;;  %v6094_v59 = vpop.f32.mrb[106].mxu1 }
 0x59d   : > { %v2839_v39 = vmul.f32 %v7948_v8, %v2787_v18  ;;  %v2790_v7 = vadd.f32 %v6094_v59, %v7945_v50  ;;  %v2781_v9 = vpop.f32.mrb[107].mxu1  ;;  %v2924_v37 = vpack.c.bf16 %v2904_v1, %v2903_v14 }
 0x59e   : > { %v2837_v0 = vmul.f32 %v7948_v8, %v2779_v3  ;;  %v2782_v32 = vadd.f32 %v7945_v50, %v2781_v9  ;;  %v2923_v29 = vpack.c.bf16 %v2902_v24, %v2901_v52 }
 0x59f   : > { %v2875_v5 = vadd.f32 %v7951_v51, %v2839_v39  ;;  %v2840_v61 = vmul.f32 %v7948_v8, %v2790_v7 }
 0x5a0   : > { %v2873_v20 = vadd.f32 %v7951_v51, %v2837_v0  ;;  %v2838_v48 = vmul.f32 %v7948_v8, %v2782_v32  ;;  %6135 = vmatprep.mubr.bf16.mxu0 %v2923_v29 }
 0x5a1   : > { %v2876_v45 = vadd.f32 %v7951_v51, %v2840_v61  ;;  %6136 = vmatmul.mubr.bf16.gmra.mrb[100].mxu0 %v2924_v37  ;;  %v2907_v56 = vmax.f32 %v2875_v5, 0.0 }
 0x5a2   : > { %v2874_v42 = vadd.f32 %v7951_v51, %v2838_v48  ;;  %v6097_v33 = vpop.f32.mrb[108].mxu1  ;;  %v2905_v18 = vmax.f32 %v2873_v20, 0.0 }
 0x5a3   : > { %v2908_v43 = vmax.f32 %v2876_v45, 0.0  ;;  %v2803_v14 = vadd.f32 %v6097_v33, %v7945_v50  ;;  %v2794_v1 = vpop.f32.mrb[109].mxu1 }
 0x5a4   : > { %v2906_v62 = vmax.f32 %v2874_v42, 0.0  ;;  %v2795_v52 = vadd.f32 %v7945_v50, %v2794_v1  ;;  %v6098_v24 = vpop.f32.mrb[110].mxu1  ;;  %v6504_v1 = vld [vmem:[%s9046_s5 + $0x1c8] sm:$0xff]  }
 0x5a5   : > { %v2843_v3 = vmul.f32 %v7948_v8, %v2803_v14  ;;  %v2806_v59 = vadd.f32 %v6098_v24, %v7945_v50  ;;  %v2797_v39 = vpop.f32.mrb[111].mxu1  ;;  %v2926_v7 = vpack.c.bf16 %v2908_v43, %v2907_v56  ;;  %v6501_v14 = vld [vmem:[%s9046_s5 + $0x1b0] sm:$0xff]   ;;  %v6508_v24 = vld [vmem:[%s9046_s5 + $0x1e8] sm:$0xff]  }
 0x5a6   : > { %v2841_v9 = vmul.f32 %v7948_v8, %v2795_v52  ;;  %v2798_v37 = vadd.f32 %v7945_v50, %v2797_v39  ;;  %v2925_v0 = vpack.c.bf16 %v2906_v62, %v2905_v18  ;;  %6159 = vmatprep.subr.bf16.mxu1 %v6501_v14  ;;  %v6505_v18 = vld [vmem:[%s9046_s5 + $0x1d0] sm:$0xff]   ;;  %v6506_v62 = vld [vmem:[%s9046_s5 + $0x1d8] sm:$0xff]   ;;  %v6507_v52 = vld [vmem:[%s9046_s5 + $0x1e0] sm:$0xff]  }
 0x5a7   : > { %v2879_v32 = vadd.f32 %v7951_v51, %v2843_v3  ;;  %v2844_v29 = vmul.f32 %v7948_v8, %v2806_v59  ;;  %6160 = vmatpush3.bf16.msra.mxu1 %v6501_v14  ;;  %v6509_v3 = vld [vmem:[%s9046_s5 + $0x1f0] sm:$0xff]   ;;  %v3261_v59 = vsub.s32 6, %v6775_v4  ;;  %v8080_v39 = vld [vmem:[%s9047_s6 + $0x5] ss:$0 sm:$0xff] }
 0x5a8   : > { %v2877_v5 = vadd.f32 %v7951_v51, %v2841_v9  ;;  %v2842_v61 = vmul.f32 %v7948_v8, %v2798_v37  ;;  %6139 = vmatprep.mubr.bf16.mxu0 %v2925_v0  ;;  %v6502_v8 = vld [vmem:[%s9046_s5 + $0x1b8] sm:$0xff]   ;;  %v8083_v9 = vld [vmem:[%s6783_s19] sm:$0xff] }
 0x5a9   : > { %v2880_v20 = vadd.f32 %v7951_v51, %v2844_v29  ;;  %6140 = vmatmul.mubr.bf16.gmra.mrb[104].mxu0 %v2926_v7  ;;  %v2911_v45 = vmax.f32 %v2879_v32, 0.0  ;;  %6161 = vmatprep.subr.bf16.mxu1 %v6502_v8  ;;  %v8086_v37 = vrot.slane %v8083_v9, %v3261_v59 }
 0x5aa   : > { %v2878_v48 = vadd.f32 %v7951_v51, %v2842_v61  ;;  %v2909_v33 = vmax.f32 %v2877_v5, 0.0  ;;  %v6503_v51 = vld [vmem:[%s9046_s5 + $0x1c0] sm:$0xff]  }
 0x5ab   : > { %v2912_v42 = vmax.f32 %v2880_v20, 0.0  ;;  %6162 = vmatpush3.bf16.msra.mxu1 %v6502_v8  ;;  %6195 = vmatprep.subr.bf16.mxu0 %v6503_v51  ;;  %v8091_v61 = vld [vmem:[%s6788_s26] sm:$0xff] }
 0x5ac   : > { %v2910_v56 = vmax.f32 %v2878_v48, 0.0  ;;  %6196 = vmatpush3.bf16.msra.mxu0 %v6503_v51  ;;  %v8094_v20 = vrot.slane %v8091_v61, %v3261_v59 }
 0x5ad   : > { %v2928_v50 = vpack.c.bf16 %v2912_v42, %v2911_v45  ;;  %6197 = vmatprep.subr.bf16.mxu0 %v6504_v1 }
 0x5ae   : > { %v2927_v43 = vpack.c.bf16 %v2910_v56, %v2909_v33 }
 0x5b0   : > { %6143 = vmatprep.mubr.bf16.mxu0 %v2927_v43  ;;  %6198 = vmatpush3.bf16.msra.mxu0 %v6504_v1 }
 0x5b1   : > { %6144 = vmatmul.mubr.bf16.gmra.mrb[108].mxu0 %v2928_v50  ;;  %6199 = vmatprep.subr.bf16.mxu0 %v6505_v18 }
 0x5b4   : > { %6200 = vmatpush3.bf16.msra.mxu0 %v6505_v18 }
 0x5b5   : > { %6201 = vmatprep.subr.bf16.mxu0 %v6506_v62 }
 0x5b8   : > { %6202 = vmatpush3.bf16.msra.mxu0 %v6506_v62 }
 0x5b9   : > { %6203 = vmatprep.subr.bf16.mxu0 %v6507_v52 }
 0x5bc   : > { %6204 = vmatpush3.bf16.msra.mxu0 %v6507_v52 }
 0x5bd   : > { %6205 = vmatprep.subr.bf16.mxu0 %v6508_v24 }
 0x5c0   : > { %6206 = vmatpush3.bf16.msra.mxu0 %v6508_v24 }
 0x5c1   : > { %6207 = vmatprep.subr.bf16.mxu0 %v6509_v3 }
 0x5c4   : > { %6208 = vmatpush3.bf16.msra.mxu0 %v6509_v3 }
 0x64c   : > { %v6117_v7 = vpop.f32.mrb[80].mxu0 }
 0x64d   : > { %v3045_v0 = vadd.f32 %v6117_v7, %v8080_v39  ;;  %v3036_v32 = vpop.f32.mrb[81].mxu0 }
 0x64e   : > { %v3037_v29 = vadd.f32 %v8080_v39, %v3036_v32  ;;  %v6118_v5 = vpop.f32.mrb[82].mxu0 }
 0x64f   : > { %v8097_v48 = vadd.f32 %v3045_v0, %v7699_v53  ;;  %v3048_v45 = vadd.f32 %v6118_v5, %v8080_v39  ;;  %v3039_v42 = vpop.f32.mrb[83].mxu0 }
 0x650   : > { %v8101_v33 = vadd.f32 %v3037_v29, %v7703_v44  ;;  %v3040_v56 = vadd.f32 %v8080_v39, %v3039_v42 }
 0x651   : > { %v3265_v50 = vmul.f32 %v8086_v37, %v8097_v48  ;;  %v8107_v43 = vadd.f32 %v3048_v45, %v7709_v10 }
 0x652   : > { %v3263_v14 = vmul.f32 %v8086_v37, %v8101_v33  ;;  %v8112_v53 = vadd.f32 %v3040_v56, %v7714_v28 }
 0x653   : > { %v3301_v8 = vadd.f32 %v8094_v20, %v3265_v50  ;;  %v3266_v44 = vmul.f32 %v8086_v37, %v8107_v43 }
 0x654   : > { %v3264_v51 = vmul.f32 %v8086_v37, %v8112_v53  ;;  %v6121_v1 = vpop.f32.mrb[84].mxu0  ;;  %v3299_v18 = vadd.f32 %v8094_v20, %v3263_v14 }
 0x655   : > { %v3302_v10 = vadd.f32 %v8094_v20, %v3266_v44  ;;  %v3061_v62 = vadd.f32 %v6121_v1, %v8080_v39  ;;  %v3052_v52 = vpop.f32.mrb[85].mxu0  ;;  %v3333_v59 = vmax.f32 %v3301_v8, 0.0 }
 0x656   : > { %v3053_v24 = vadd.f32 %v8080_v39, %v3052_v52  ;;  %v6122_v28 = vpop.f32.mrb[86].mxu0  ;;  %v3300_v3 = vadd.f32 %v8094_v20, %v3264_v51  ;;  %v3331_v42 = vmax.f32 %v3299_v18, 0.0 }
 0x657   : > { %v3334_v7 = vmax.f32 %v3302_v10, 0.0  ;;  %v8125_v0 = vadd.f32 %v3061_v62, %v7727_v27  ;;  %v3064_v32 = vadd.f32 %v6122_v28, %v8080_v39  ;;  %v3055_v29 = vpop.f32.mrb[87].mxu0 }
 0x658   : > { %v8129_v5 = vadd.f32 %v3053_v24, %v7731_v31  ;;  %v3056_v45 = vadd.f32 %v8080_v39, %v3055_v29  ;;  %v3332_v56 = vmax.f32 %v3300_v3, 0.0 }
 0x659   : > { %v3364_v50 = vpack.c.bf16 %v3334_v7, %v3333_v59  ;;  %v3269_v14 = vmul.f32 %v8086_v37, %v8125_v0  ;;  %v8135_v8 = vadd.f32 %v3064_v32, %v7737_v23 }
 0x65a   : > { %v3267_v27 = vmul.f32 %v8086_v37, %v8129_v5  ;;  %v8140_v44 = vadd.f32 %v3056_v45, %v7742_v34  ;;  %v3363_v51 = vpack.c.bf16 %v3332_v56, %v3331_v42 }
 0x65b   : > { %v3270_v31 = vmul.f32 %v8086_v37, %v8135_v8  ;;  %v3305_v1 = vadd.f32 %v8094_v20, %v3269_v14 }
 0x65c   : > { %v3268_v18 = vmul.f32 %v8086_v37, %v8140_v44  ;;  %v6125_v10 = vpop.f32.mrb[88].mxu0  ;;  %6163 = vmatprep.mubr.bf16.mxu1 %v3363_v51  ;;  %v3303_v23 = vadd.f32 %v8094_v20, %v3267_v27 }
 0x65d   : > { %v3077_v62 = vadd.f32 %v6125_v10, %v8080_v39  ;;  %v3068_v52 = vpop.f32.mrb[89].mxu0  ;;  %6164 = vmatmul.mubr.bf16.vlgmr.msra.gmra.mrb[112].mxu1 %v3364_v50  ;;  %v3306_v34 = vadd.f32 %v8094_v20, %v3270_v31  ;;  %v3337_v29 = vmax.f32 %v3305_v1, 0.0 }
 0x65e   : > { %v3069_v24 = vadd.f32 %v8080_v39, %v3068_v52  ;;  %v6126_v28 = vpop.f32.mrb[90].mxu0  ;;  %v3304_v3 = vadd.f32 %v8094_v20, %v3268_v18  ;;  %v3335_v50 = vmax.f32 %v3303_v23, 0.0 }
 0x65f   : > { %v8153_v59 = vadd.f32 %v3077_v62, %v7755_v63  ;;  %v3080_v7 = vadd.f32 %v6126_v28, %v8080_v39  ;;  %v3071_v32 = vpop.f32.mrb[91].mxu0  ;;  %v3338_v45 = vmax.f32 %v3306_v34, 0.0 }
 0x660   : > { %v8157_v42 = vadd.f32 %v3069_v24, %v7759_v30  ;;  %v3072_v56 = vadd.f32 %v8080_v39, %v3071_v32  ;;  %v3336_v14 = vmax.f32 %v3304_v3, 0.0 }
 0x661   : > { %v3273_v27 = vmul.f32 %v8086_v37, %v8153_v59  ;;  %v8163_v51 = vadd.f32 %v3080_v7, %v7765_v49  ;;  %v3366_v63 = vpack.c.bf16 %v3338_v45, %v3337_v29 }
 0x662   : > { %v3271_v31 = vmul.f32 %v8086_v37, %v8157_v42  ;;  %v8168_v1 = vadd.f32 %v3072_v56, %v7770_v47  ;;  %v3365_v18 = vpack.c.bf16 %v3336_v14, %v3335_v50 }
 0x663   : > { %v3274_v30 = vmul.f32 %v8086_v37, %v8163_v51  ;;  %v3309_v10 = vadd.f32 %v8094_v20, %v3273_v27 }
 0x664   : > { %v3272_v23 = vmul.f32 %v8086_v37, %v8168_v1  ;;  %v6129_v62 = vpop.f32.mrb[92].mxu0  ;;  %6167 = vmatprep.mubr.bf16.mxu1 %v3365_v18  ;;  %v3307_v49 = vadd.f32 %v8094_v20, %v3271_v31 }
 0x665   : > { %v3093_v52 = vadd.f32 %v6129_v62, %v8080_v39  ;;  %v3084_v34 = vpop.f32.mrb[93].mxu0  ;;  %6168 = vmatmul.mubr.bf16.gmra.mrb[116].mxu1 %v3366_v63  ;;  %v3310_v47 = vadd.f32 %v8094_v20, %v3274_v30  ;;  %v3341_v45 = vmax.f32 %v3309_v10, 0.0 }
 0x666   : > { %v3085_v24 = vadd.f32 %v8080_v39, %v3084_v34  ;;  %v6130_v28 = vpop.f32.mrb[94].mxu0  ;;  %v3308_v3 = vadd.f32 %v8094_v20, %v3272_v23  ;;  %v3339_v27 = vmax.f32 %v3307_v49, 0.0 }
 0x667   : > { %v8181_v7 = vadd.f32 %v3093_v52, %v7783_v26  ;;  %v3096_v32 = vadd.f32 %v6130_v28, %v8080_v39  ;;  %v3087_v29 = vpop.f32.mrb[95].mxu0  ;;  %v3342_v56 = vmax.f32 %v3310_v47, 0.0 }
 0x668   : > { %v8185_v50 = vadd.f32 %v3085_v24, %v7787_v22  ;;  %v3088_v14 = vadd.f32 %v8080_v39, %v3087_v29  ;;  %v3340_v63 = vmax.f32 %v3308_v3, 0.0 }
 0x669   : > { %v3277_v31 = vmul.f32 %v8086_v37, %v8181_v7  ;;  %v8191_v18 = vadd.f32 %v3096_v32, %v7793_v25  ;;  %v3368_v26 = vpack.c.bf16 %v3342_v56, %v3341_v45 }
 0x66a   : > { %v3275_v30 = vmul.f32 %v8086_v37, %v8185_v50  ;;  %v8196_v10 = vadd.f32 %v3088_v14, %v7798_v60  ;;  %v3367_v23 = vpack.c.bf16 %v3340_v63, %v3339_v27 }
 0x66b   : > { %v3278_v22 = vmul.f32 %v8086_v37, %v8191_v18  ;;  %v3313_v62 = vadd.f32 %v8094_v20, %v3277_v31 }
 0x66c   : > { %v3276_v49 = vmul.f32 %v8086_v37, %v8196_v10  ;;  %v6133_v52 = vpop.f32.mrb[96].mxu0  ;;  %6171 = vmatprep.mubr.bf16.mxu1 %v3367_v23  ;;  %v3311_v25 = vadd.f32 %v8094_v20, %v3275_v30 }
 0x66d   : > { %v3109_v34 = vadd.f32 %v6133_v52, %v8080_v39  ;;  %v3100_v47 = vpop.f32.mrb[97].mxu0  ;;  %6172 = vmatmul.mubr.bf16.gmra.mrb[120].mxu1 %v3368_v26  ;;  %v3314_v60 = vadd.f32 %v8094_v20, %v3278_v22  ;;  %v3345_v56 = vmax.f32 %v3313_v62, 0.0 }
 0x66e   : > { %v3101_v24 = vadd.f32 %v8080_v39, %v3100_v47  ;;  %v6134_v28 = vpop.f32.mrb[98].mxu0  ;;  %v3312_v3 = vadd.f32 %v8094_v20, %v3276_v49  ;;  %v3343_v31 = vmax.f32 %v3311_v25, 0.0 }
 0x66f   : > { %v8209_v32 = vadd.f32 %v3109_v34, %v7811_v38  ;;  %v3112_v29 = vadd.f32 %v6134_v28, %v8080_v39  ;;  %v3103_v45 = vpop.f32.mrb[99].mxu0  ;;  %v3346_v14 = vmax.f32 %v3314_v60, 0.0 }
 0x670   : > { %v8213_v27 = vadd.f32 %v3101_v24, %v7815_v36  ;;  %v3104_v63 = vadd.f32 %v8080_v39, %v3103_v45  ;;  %v3344_v26 = vmax.f32 %v3312_v3, 0.0 }
 0x671   : > { %v3281_v30 = vmul.f32 %v8086_v37, %v8209_v32  ;;  %v8219_v23 = vadd.f32 %v3112_v29, %v7821_v46  ;;  %v3370_v38 = vpack.c.bf16 %v3346_v14, %v3345_v56 }
 0x672   : > { %v3279_v22 = vmul.f32 %v8086_v37, %v8213_v27  ;;  %v8224_v62 = vadd.f32 %v3104_v63, %v7826_v41  ;;  %v3369_v49 = vpack.c.bf16 %v3344_v26, %v3343_v31 }
 0x673   : > { %v3282_v36 = vmul.f32 %v8086_v37, %v8219_v23  ;;  %v3317_v52 = vadd.f32 %v8094_v20, %v3281_v30 }
 0x674   : > { %v3280_v25 = vmul.f32 %v8086_v37, %v8224_v62  ;;  %v6137_v34 = vpop.f32.mrb[100].mxu0  ;;  %6175 = vmatprep.mubr.bf16.mxu1 %v3369_v49  ;;  %v3315_v46 = vadd.f32 %v8094_v20, %v3279_v22 }
 0x675   : > { %v3125_v47 = vadd.f32 %v6137_v34, %v8080_v39  ;;  %v3116_v60 = vpop.f32.mrb[101].mxu0  ;;  %6176 = vmatmul.mubr.bf16.gmra.mrb[124].mxu1 %v3370_v38  ;;  %v3318_v41 = vadd.f32 %v8094_v20, %v3282_v36  ;;  %v3349_v14 = vmax.f32 %v3317_v52, 0.0 }
 0x676   : > { %v3117_v24 = vadd.f32 %v8080_v39, %v3116_v60  ;;  %v6138_v28 = vpop.f32.mrb[102].mxu0  ;;  %v3316_v3 = vadd.f32 %v8094_v20, %v3280_v25  ;;  %v3347_v30 = vmax.f32 %v3315_v46, 0.0 }
 0x677   : > { %v8237_v29 = vadd.f32 %v3125_v47, %v7839_v54  ;;  %v3128_v45 = vadd.f32 %v6138_v28, %v8080_v39  ;;  %v3119_v56 = vpop.f32.mrb[103].mxu0  ;;  %v3350_v63 = vmax.f32 %v3318_v41, 0.0 }
 0x678   : > { %v8241_v31 = vadd.f32 %v3117_v24, %v7843_v55  ;;  %v3120_v26 = vadd.f32 %v8080_v39, %v3119_v56  ;;  %v3348_v38 = vmax.f32 %v3316_v3, 0.0 }
 0x679   : > { %v3285_v22 = vmul.f32 %v8086_v37, %v8237_v29  ;;  %v8247_v49 = vadd.f32 %v3128_v45, %v7849_v58  ;;  %v3372_v54 = vpack.c.bf16 %v3350_v63, %v3349_v14 }
 0x67a   : > { %v3283_v36 = vmul.f32 %v8086_v37, %v8241_v31  ;;  %v8252_v52 = vadd.f32 %v3120_v26, %v7854_v2  ;;  %v3371_v25 = vpack.c.bf16 %v3348_v38, %v3347_v30 }
 0x67b   : > { %v3286_v55 = vmul.f32 %v8086_v37, %v8247_v49  ;;  %v3321_v34 = vadd.f32 %v8094_v20, %v3285_v22 }
 0x67c   : > { %v3284_v46 = vmul.f32 %v8086_v37, %v8252_v52  ;;  %v6141_v47 = vpop.f32.mrb[104].mxu0  ;;  %6179 = vmatprep.mubr.bf16.mxu1 %v3371_v25  ;;  %v3319_v58 = vadd.f32 %v8094_v20, %v3283_v36 }
 0x67d   : > { %v3141_v60 = vadd.f32 %v6141_v47, %v8080_v39  ;;  %v3132_v41 = vpop.f32.mrb[105].mxu0  ;;  %6180 = vmatmul.mubr.bf16.gmra.mrb[128].mxu1 %v3372_v54  ;;  %v3322_v2 = vadd.f32 %v8094_v20, %v3286_v55  ;;  %v3353_v63 = vmax.f32 %v3321_v34, 0.0 }
 0x67e   : > { %v3133_v24 = vadd.f32 %v8080_v39, %v3132_v41  ;;  %v6142_v28 = vpop.f32.mrb[106].mxu0  ;;  %v3320_v3 = vadd.f32 %v8094_v20, %v3284_v46  ;;  %v3351_v22 = vmax.f32 %v3319_v58, 0.0 }
 0x67f   : > { %v8265_v45 = vadd.f32 %v3141_v60, %v7867_v21  ;;  %v3144_v56 = vadd.f32 %v6142_v28, %v8080_v39  ;;  %v3135_v14 = vpop.f32.mrb[107].mxu0  ;;  %v3354_v26 = vmax.f32 %v3322_v2, 0.0 }
 0x680   : > { %v8269_v30 = vadd.f32 %v3133_v24, %v7871_v16  ;;  %v3136_v38 = vadd.f32 %v8080_v39, %v3135_v14  ;;  %v3352_v54 = vmax.f32 %v3320_v3, 0.0 }
 0x681   : > { %v3289_v36 = vmul.f32 %v8086_v37, %v8265_v45  ;;  %v8275_v25 = vadd.f32 %v3144_v56, %v7877_v35  ;;  %v3374_v21 = vpack.c.bf16 %v3354_v26, %v3353_v63 }
 0x682   : > { %v3287_v55 = vmul.f32 %v8086_v37, %v8269_v30  ;;  %v8280_v34 = vadd.f32 %v3136_v38, %v7882_v11  ;;  %v3373_v46 = vpack.c.bf16 %v3352_v54, %v3351_v22 }
 0x683   : > { %v3290_v16 = vmul.f32 %v8086_v37, %v8275_v25  ;;  %v3325_v47 = vadd.f32 %v8094_v20, %v3289_v36 }
 0x684   : > { %v3288_v58 = vmul.f32 %v8086_v37, %v8280_v34  ;;  %v6145_v60 = vpop.f32.mrb[108].mxu0  ;;  %6183 = vmatprep.mubr.bf16.mxu1 %v3373_v46  ;;  %v3323_v35 = vadd.f32 %v8094_v20, %v3287_v55 }
 0x685   : > { %v3157_v41 = vadd.f32 %v6145_v60, %v8080_v39  ;;  %v3148_v2 = vpop.f32.mrb[109].mxu0  ;;  %6184 = vmatmul.mubr.bf16.gmra.mrb[132].mxu1 %v3374_v21  ;;  %v3326_v11 = vadd.f32 %v8094_v20, %v3290_v16  ;;  %v3357_v26 = vmax.f32 %v3325_v47, 0.0 }
 0x686   : > { %v3149_v24 = vadd.f32 %v8080_v39, %v3148_v2  ;;  %v6146_v28 = vpop.f32.mrb[110].mxu0  ;;  %v3324_v3 = vadd.f32 %v8094_v20, %v3288_v58  ;;  %v3355_v36 = vmax.f32 %v3323_v35, 0.0 }
 0x687   : > { %v8293_v56 = vadd.f32 %v3157_v41, %v7895_v17  ;;  %v3160_v14 = vadd.f32 %v6146_v28, %v8080_v39  ;;  %v3151_v63 = vpop.f32.mrb[111].mxu0  ;;  %v3358_v38 = vmax.f32 %v3326_v11, 0.0 }
 0x688   : > { %v8297_v22 = vadd.f32 %v3149_v24, %v7899_v6  ;;  %v3152_v54 = vadd.f32 %v8080_v39, %v3151_v63  ;;  %v3356_v21 = vmax.f32 %v3324_v3, 0.0  ;;  %v6513_v63 = vld [vmem:[%s9046_s5 + $0x210] sm:$0xff]  }
 0x689   : > { %v3293_v55 = vmul.f32 %v8086_v37, %v8293_v56  ;;  %v8303_v46 = vadd.f32 %v3160_v14, %v7905_v40  ;;  %v3376_v17 = vpack.c.bf16 %v3358_v38, %v3357_v26  ;;  %v6511_v14 = vld [vmem:[%s9046_s5 + $0x200] sm:$0xff]   ;;  %v6514_v26 = vld [vmem:[%s9046_s5 + $0x218] sm:$0xff]  }
 0x68a   : > { %v3291_v16 = vmul.f32 %v8086_v37, %v8297_v22  ;;  %v8308_v47 = vadd.f32 %v3152_v54, %v7910_v19  ;;  %v3375_v58 = vpack.c.bf16 %v3356_v21, %v3355_v36  ;;  %6243 = vmatprep.subr.bf16.mxu1 %v6511_v14  ;;  %v6515_v38 = vld [vmem:[%s9046_s5 + $0x220] sm:$0xff]   ;;  %v6516_v54 = vld [vmem:[%s9046_s5 + $0x228] sm:$0xff]   ;;  %v3615_v36 = vsub.s32 7, %v6775_v4 }
 0x68b   : > { %v3294_v6 = vmul.f32 %v8086_v37, %v8303_v46  ;;  %v3329_v39 = vadd.f32 %v8094_v20, %v3293_v55  ;;  %6244 = vmatpush3.bf16.msra.mxu1 %v6511_v14  ;;  %v8343_v21 = vld [vmem:[%s9047_s6 + $0x6] ss:$0 sm:$0xff] }
 0x68c   : > { %v3292_v60 = vmul.f32 %v8086_v37, %v8308_v47  ;;  %6187 = vmatprep.mubr.bf16.mxu1 %v3375_v58  ;;  %v3327_v40 = vadd.f32 %v8094_v20, %v3291_v16  ;;  %v6510_v37 = vld [vmem:[%s9046_s5 + $0x1f8] sm:$0xff]   ;;  %v8346_v55 = vrot.slane %v8083_v9, %v3615_v36  ;;  %v8349_v16 = vrot.slane %v8091_v61, %v3615_v36 }
 0x68d   : > { %6188 = vmatmul.mubr.bf16.gmra.mrb[136].mxu1 %v3376_v17  ;;  %v3330_v35 = vadd.f32 %v8094_v20, %v3294_v6  ;;  %v3361_v2 = vmax.f32 %v3329_v39, 0.0  ;;  %6209 = vmatprep.subr.bf16.mxu0 %v6510_v37 }
 0x68e   : > { %v3328_v41 = vadd.f32 %v8094_v20, %v3292_v60  ;;  %v3359_v11 = vmax.f32 %v3327_v40, 0.0  ;;  %6210 = vmatpush3.bf16.msra.mxu0 %v6510_v37  ;;  %v6512_v20 = vld [vmem:[%s9046_s5 + $0x208] sm:$0xff]  }
 0x68f   : > { %v3362_v19 = vmax.f32 %v3330_v35, 0.0  ;;  %6245 = vmatprep.subr.bf16.mxu1 %v6512_v20 }
 0x690   : > { %v3360_v24 = vmax.f32 %v3328_v41, 0.0  ;;  %6246 = vmatpush3.bf16.msra.mxu1 %v6512_v20 }
 0x691   : > { %v3378_v28 = vpack.c.bf16 %v3362_v19, %v3361_v2  ;;  %6247 = vmatprep.subr.bf16.mxu1 %v6513_v63 }
 0x692   : > { %v3377_v3 = vpack.c.bf16 %v3360_v24, %v3359_v11 }
 0x694   : > { %6191 = vmatprep.mubr.bf16.mxu1 %v3377_v3  ;;  %6248 = vmatpush3.bf16.msra.mxu1 %v6513_v63 }
 0x695   : > { %6192 = vmatmul.mubr.bf16.gmra.mrb[140].mxu1 %v3378_v28  ;;  %6249 = vmatprep.subr.bf16.mxu1 %v6514_v26 }
 0x698   : > { %6250 = vmatpush3.bf16.msra.mxu1 %v6514_v26 }
 0x699   : > { %6251 = vmatprep.subr.bf16.mxu1 %v6515_v38 }
 0x69c   : > { %6252 = vmatpush3.bf16.msra.mxu1 %v6515_v38 }
 0x69d   : > { %6253 = vmatprep.subr.bf16.mxu1 %v6516_v54 }
 0x6a0   : > { %6254 = vmatpush3.bf16.msra.mxu1 %v6516_v54 }
 0x730   : > { %v6165_v17 = vpop.f32.mrb[112].mxu1 }
 0x731   : > { %v3495_v58 = vadd.f32 %v6165_v17, %v8343_v21  ;;  %v3486_v6 = vpop.f32.mrb[113].mxu1 }
 0x732   : > { %v3487_v39 = vadd.f32 %v8343_v21, %v3486_v6  ;;  %v6166_v60 = vpop.f32.mrb[114].mxu1 }
 0x733   : > { %v3619_v40 = vmul.f32 %v8346_v55, %v3495_v58  ;;  %v3498_v35 = vadd.f32 %v6166_v60, %v8343_v21  ;;  %v3489_v41 = vpop.f32.mrb[115].mxu1 }
 0x734   : > { %v3617_v2 = vmul.f32 %v8346_v55, %v3487_v39  ;;  %v3490_v9 = vadd.f32 %v8343_v21, %v3489_v41 }
 0x735   : > { %v3655_v19 = vadd.f32 %v8349_v16, %v3619_v40  ;;  %v3620_v61 = vmul.f32 %v8346_v55, %v3498_v35 }
 0x736   : > { %v3653_v11 = vadd.f32 %v8349_v16, %v3617_v2  ;;  %v3618_v24 = vmul.f32 %v8346_v55, %v3490_v9 }
 0x737   : > { %v3656_v28 = vadd.f32 %v8349_v16, %v3620_v61  ;;  %v3687_v14 = vmax.f32 %v3655_v19, 0.0 }
 0x738   : > { %v3654_v3 = vadd.f32 %v8349_v16, %v3618_v24  ;;  %v6169_v37 = vpop.f32.mrb[116].mxu1  ;;  %v3685_v38 = vmax.f32 %v3653_v11, 0.0 }
 0x739   : > { %v3688_v20 = vmax.f32 %v3656_v28, 0.0  ;;  %v3511_v63 = vadd.f32 %v6169_v37, %v8343_v21  ;;  %v3502_v26 = vpop.f32.mrb[117].mxu1 }
 0x73a   : > { %v3686_v54 = vmax.f32 %v3654_v3, 0.0  ;;  %v3503_v36 = vadd.f32 %v8343_v21, %v3502_v26  ;;  %v6170_v17 = vpop.f32.mrb[118].mxu1 }
 0x73b   : > { %v3718_v58 = vpack.c.bf16 %v3688_v20, %v3687_v14  ;;  %v3623_v6 = vmul.f32 %v8346_v55, %v3511_v63  ;;  %v3514_v39 = vadd.f32 %v6170_v17, %v8343_v21  ;;  %v3505_v60 = vpop.f32.mrb[119].mxu1 }
 0x73c   : > { %v3621_v40 = vmul.f32 %v8346_v55, %v3503_v36  ;;  %v3506_v35 = vadd.f32 %v8343_v21, %v3505_v60  ;;  %v3717_v41 = vpack.c.bf16 %v3686_v54, %v3685_v38 }
 0x73d   : > { %v3659_v2 = vadd.f32 %v8349_v16, %v3623_v6  ;;  %v3624_v9 = vmul.f32 %v8346_v55, %v3514_v39 }
 0x73e   : > { %v3657_v19 = vadd.f32 %v8349_v16, %v3621_v40  ;;  %v3622_v61 = vmul.f32 %v8346_v55, %v3506_v35  ;;  %6211 = vmatprep.mubr.bf16.mxu0 %v3717_v41 }
 0x73f   : > { %v3660_v11 = vadd.f32 %v8349_v16, %v3624_v9  ;;  %6212 = vmatmul.mubr.bf16.vlgmr.msra.gmra.mrb[112].mxu0 %v3718_v58  ;;  %v3691_v3 = vmax.f32 %v3659_v2, 0.0 }
 0x740   : > { %v3658_v24 = vadd.f32 %v8349_v16, %v3622_v61  ;;  %v6173_v28 = vpop.f32.mrb[120].mxu1  ;;  %v3689_v63 = vmax.f32 %v3657_v19, 0.0 }
 0x741   : > { %v3692_v37 = vmax.f32 %v3660_v11, 0.0  ;;  %v3527_v14 = vadd.f32 %v6173_v28, %v8343_v21  ;;  %v3518_v20 = vpop.f32.mrb[121].mxu1 }
 0x742   : > { %v3690_v26 = vmax.f32 %v3658_v24, 0.0  ;;  %v3519_v38 = vadd.f32 %v8343_v21, %v3518_v20  ;;  %v6174_v54 = vpop.f32.mrb[122].mxu1 }
 0x743   : > { %v3627_v36 = vmul.f32 %v8346_v55, %v3527_v14  ;;  %v3530_v17 = vadd.f32 %v6174_v54, %v8343_v21  ;;  %v3521_v6 = vpop.f32.mrb[123].mxu1  ;;  %v3720_v39 = vpack.c.bf16 %v3692_v37, %v3691_v3 }
 0x744   : > { %v3625_v58 = vmul.f32 %v8346_v55, %v3519_v38  ;;  %v3522_v60 = vadd.f32 %v8343_v21, %v3521_v6  ;;  %v3719_v40 = vpack.c.bf16 %v3690_v26, %v3689_v63 }
 0x745   : > { %v3663_v35 = vadd.f32 %v8349_v16, %v3627_v36  ;;  %v3628_v41 = vmul.f32 %v8346_v55, %v3530_v17 }
 0x746   : > { %v3661_v2 = vadd.f32 %v8349_v16, %v3625_v58  ;;  %v3626_v9 = vmul.f32 %v8346_v55, %v3522_v60  ;;  %6215 = vmatprep.mubr.bf16.mxu0 %v3719_v40 }
 0x747   : > { %v3664_v19 = vadd.f32 %v8349_v16, %v3628_v41  ;;  %6216 = vmatmul.mubr.bf16.gmra.mrb[116].mxu0 %v3720_v39  ;;  %v3695_v24 = vmax.f32 %v3663_v35, 0.0 }
 0x748   : > { %v3662_v61 = vadd.f32 %v8349_v16, %v3626_v9  ;;  %v6177_v11 = vpop.f32.mrb[124].mxu1  ;;  %v3693_v14 = vmax.f32 %v3661_v2, 0.0 }
 0x749   : > { %v3696_v28 = vmax.f32 %v3664_v19, 0.0  ;;  %v3543_v3 = vadd.f32 %v6177_v11, %v8343_v21  ;;  %v3534_v37 = vpop.f32.mrb[125].mxu1 }
 0x74a   : > { %v3694_v20 = vmax.f32 %v3662_v61, 0.0  ;;  %v3535_v63 = vadd.f32 %v8343_v21, %v3534_v37  ;;  %v6178_v26 = vpop.f32.mrb[126].mxu1 }
 0x74b   : > { %v3631_v38 = vmul.f32 %v8346_v55, %v3543_v3  ;;  %v3546_v54 = vadd.f32 %v6178_v26, %v8343_v21  ;;  %v3537_v36 = vpop.f32.mrb[127].mxu1  ;;  %v3722_v17 = vpack.c.bf16 %v3696_v28, %v3695_v24 }
 0x74c   : > { %v3629_v6 = vmul.f32 %v8346_v55, %v3535_v63  ;;  %v3538_v39 = vadd.f32 %v8343_v21, %v3537_v36  ;;  %v3721_v58 = vpack.c.bf16 %v3694_v20, %v3693_v14 }
 0x74d   : > { %v3667_v60 = vadd.f32 %v8349_v16, %v3631_v38  ;;  %v3632_v40 = vmul.f32 %v8346_v55, %v3546_v54 }
 0x74e   : > { %v3665_v35 = vadd.f32 %v8349_v16, %v3629_v6  ;;  %v3630_v41 = vmul.f32 %v8346_v55, %v3538_v39  ;;  %6219 = vmatprep.mubr.bf16.mxu0 %v3721_v58 }
 0x74f   : > { %v3668_v2 = vadd.f32 %v8349_v16, %v3632_v40  ;;  %6220 = vmatmul.mubr.bf16.gmra.mrb[120].mxu0 %v3722_v17  ;;  %v3699_v61 = vmax.f32 %v3667_v60, 0.0 }
 0x750   : > { %v3666_v9 = vadd.f32 %v8349_v16, %v3630_v41  ;;  %v6181_v19 = vpop.f32.mrb[128].mxu1  ;;  %v3697_v3 = vmax.f32 %v3665_v35, 0.0 }
 0x751   : > { %v3700_v11 = vmax.f32 %v3668_v2, 0.0  ;;  %v3559_v24 = vadd.f32 %v6181_v19, %v8343_v21  ;;  %v3550_v28 = vpop.f32.mrb[129].mxu1 }
 0x752   : > { %v3698_v37 = vmax.f32 %v3666_v9, 0.0  ;;  %v3551_v14 = vadd.f32 %v8343_v21, %v3550_v28  ;;  %v6182_v20 = vpop.f32.mrb[130].mxu1 }
 0x753   : > { %v3635_v63 = vmul.f32 %v8346_v55, %v3559_v24  ;;  %v3562_v26 = vadd.f32 %v6182_v20, %v8343_v21  ;;  %v3553_v38 = vpop.f32.mrb[131].mxu1  ;;  %v3724_v54 = vpack.c.bf16 %v3700_v11, %v3699_v61 }
 0x754   : > { %v3633_v36 = vmul.f32 %v8346_v55, %v3551_v14  ;;  %v3554_v17 = vadd.f32 %v8343_v21, %v3553_v38  ;;  %v3723_v6 = vpack.c.bf16 %v3698_v37, %v3697_v3 }
 0x755   : > { %v3671_v39 = vadd.f32 %v8349_v16, %v3635_v63  ;;  %v3636_v58 = vmul.f32 %v8346_v55, %v3562_v26 }
 0x756   : > { %v3669_v60 = vadd.f32 %v8349_v16, %v3633_v36  ;;  %v3634_v40 = vmul.f32 %v8346_v55, %v3554_v17  ;;  %6223 = vmatprep.mubr.bf16.mxu0 %v3723_v6 }
 0x757   : > { %v3672_v35 = vadd.f32 %v8349_v16, %v3636_v58  ;;  %6224 = vmatmul.mubr.bf16.gmra.mrb[124].mxu0 %v3724_v54  ;;  %v3703_v9 = vmax.f32 %v3671_v39, 0.0 }
 0x758   : > { %v3670_v41 = vadd.f32 %v8349_v16, %v3634_v40  ;;  %v6185_v2 = vpop.f32.mrb[132].mxu1  ;;  %v3701_v24 = vmax.f32 %v3669_v60, 0.0 }
 0x759   : > { %v3704_v19 = vmax.f32 %v3672_v35, 0.0  ;;  %v3575_v61 = vadd.f32 %v6185_v2, %v8343_v21  ;;  %v3566_v11 = vpop.f32.mrb[133].mxu1 }
 0x75a   : > { %v3702_v28 = vmax.f32 %v3670_v41, 0.0  ;;  %v3567_v3 = vadd.f32 %v8343_v21, %v3566_v11  ;;  %v6186_v37 = vpop.f32.mrb[134].mxu1 }
 0x75b   : > { %v3639_v14 = vmul.f32 %v8346_v55, %v3575_v61  ;;  %v3578_v20 = vadd.f32 %v6186_v37, %v8343_v21  ;;  %v3569_v63 = vpop.f32.mrb[135].mxu1  ;;  %v3726_v26 = vpack.c.bf16 %v3704_v19, %v3703_v9 }
 0x75c   : > { %v3637_v38 = vmul.f32 %v8346_v55, %v3567_v3  ;;  %v3570_v54 = vadd.f32 %v8343_v21, %v3569_v63  ;;  %v3725_v36 = vpack.c.bf16 %v3702_v28, %v3701_v24 }
 0x75d   : > { %v3675_v17 = vadd.f32 %v8349_v16, %v3639_v14  ;;  %v3640_v6 = vmul.f32 %v8346_v55, %v3578_v20 }
 0x75e   : > { %v3673_v39 = vadd.f32 %v8349_v16, %v3637_v38  ;;  %v3638_v58 = vmul.f32 %v8346_v55, %v3570_v54  ;;  %6227 = vmatprep.mubr.bf16.mxu0 %v3725_v36 }
 0x75f   : > { %v3676_v60 = vadd.f32 %v8349_v16, %v3640_v6  ;;  %6228 = vmatmul.mubr.bf16.gmra.mrb[128].mxu0 %v3726_v26  ;;  %v3707_v41 = vmax.f32 %v3675_v17, 0.0 }
 0x760   : > { %v3674_v40 = vadd.f32 %v8349_v16, %v3638_v58  ;;  %v6189_v35 = vpop.f32.mrb[136].mxu1  ;;  %v3705_v61 = vmax.f32 %v3673_v39, 0.0 }
 0x761   : > { %v3708_v2 = vmax.f32 %v3676_v60, 0.0  ;;  %v3591_v9 = vadd.f32 %v6189_v35, %v8343_v21  ;;  %v3582_v19 = vpop.f32.mrb[137].mxu1 }
 0x762   : > { %v3706_v11 = vmax.f32 %v3674_v40, 0.0  ;;  %v3583_v24 = vadd.f32 %v8343_v21, %v3582_v19  ;;  %v6190_v28 = vpop.f32.mrb[138].mxu1 }
 0x763   : > { %v3643_v3 = vmul.f32 %v8346_v55, %v3591_v9  ;;  %v3594_v37 = vadd.f32 %v6190_v28, %v8343_v21  ;;  %v3585_v14 = vpop.f32.mrb[139].mxu1  ;;  %v3728_v20 = vpack.c.bf16 %v3708_v2, %v3707_v41 }
 0x764   : > { %v3641_v63 = vmul.f32 %v8346_v55, %v3583_v24  ;;  %v3586_v26 = vadd.f32 %v8343_v21, %v3585_v14  ;;  %v3727_v38 = vpack.c.bf16 %v3706_v11, %v3705_v61 }
 0x765   : > { %v3679_v54 = vadd.f32 %v8349_v16, %v3643_v3  ;;  %v3644_v36 = vmul.f32 %v8346_v55, %v3594_v37 }
 0x766   : > { %v3677_v17 = vadd.f32 %v8349_v16, %v3641_v63  ;;  %v3642_v6 = vmul.f32 %v8346_v55, %v3586_v26  ;;  %6231 = vmatprep.mubr.bf16.mxu0 %v3727_v38 }
 0x767   : > { %v3680_v39 = vadd.f32 %v8349_v16, %v3644_v36  ;;  %6232 = vmatmul.mubr.bf16.gmra.mrb[132].mxu0 %v3728_v20  ;;  %v3711_v40 = vmax.f32 %v3679_v54, 0.0 }
 0x768   : > { %v3678_v58 = vadd.f32 %v8349_v16, %v3642_v6  ;;  %v6193_v60 = vpop.f32.mrb[140].mxu1  ;;  %v3709_v9 = vmax.f32 %v3677_v17, 0.0 }
 0x769   : > { %v3712_v35 = vmax.f32 %v3680_v39, 0.0  ;;  %v3607_v41 = vadd.f32 %v6193_v60, %v8343_v21  ;;  %v3598_v2 = vpop.f32.mrb[141].mxu1 }
 0x76a   : > { %v3710_v19 = vmax.f32 %v3678_v58, 0.0  ;;  %v3599_v61 = vadd.f32 %v8343_v21, %v3598_v2  ;;  %v6194_v11 = vpop.f32.mrb[142].mxu1  ;;  %v6520_v2 = vld [vmem:[%s9046_s5 + $0x248] sm:$0xff]  }
 0x76b   : > { %v3647_v24 = vmul.f32 %v8346_v55, %v3607_v41  ;;  %v3610_v28 = vadd.f32 %v6194_v11, %v8343_v21  ;;  %v3601_v3 = vpop.f32.mrb[143].mxu1  ;;  %v3730_v37 = vpack.c.bf16 %v3712_v35, %v3711_v40  ;;  %v6517_v41 = vld [vmem:[%s9046_s5 + $0x230] sm:$0xff]   ;;  %v6524_v11 = vld [vmem:[%s9046_s5 + $0x268] sm:$0xff]  }
 0x76c   : > { %v3645_v14 = vmul.f32 %v8346_v55, %v3599_v61  ;;  %v3602_v20 = vadd.f32 %v8343_v21, %v3601_v3  ;;  %v3729_v63 = vpack.c.bf16 %v3710_v19, %v3709_v9  ;;  %6255 = vmatprep.subr.bf16.mxu1 %v6517_v41  ;;  %v6521_v9 = vld [vmem:[%s9046_s5 + $0x250] sm:$0xff]   ;;  %v6522_v19 = vld [vmem:[%s9046_s5 + $0x258] sm:$0xff]   ;;  %v6523_v61 = vld [vmem:[%s9046_s5 + $0x260] sm:$0xff]  }
 0x76d   : > { %v3683_v26 = vadd.f32 %v8349_v16, %v3647_v24  ;;  %v3648_v38 = vmul.f32 %v8346_v55, %v3610_v28  ;;  %6256 = vmatpush3.bf16.msra.mxu1 %v6517_v41  ;;  %v6525_v24 = vld [vmem:[%s9046_s5 + $0x270] sm:$0xff]   ;;  %v8477_v28 = vld [vmem:[%s9047_s6 + $0x7] ss:$0 sm:$0xff] }
 0x76e   : > { %v3681_v54 = vadd.f32 %v8349_v16, %v3645_v14  ;;  %v3646_v36 = vmul.f32 %v8346_v55, %v3602_v20  ;;  %6235 = vmatprep.mubr.bf16.mxu0 %v3729_v63  ;;  %v6518_v55 = vld [vmem:[%s9046_s5 + $0x238] sm:$0xff]  }
 0x76f   : > { %v3684_v17 = vadd.f32 %v8349_v16, %v3648_v38  ;;  %6236 = vmatmul.mubr.bf16.gmra.mrb[136].mxu0 %v3730_v37  ;;  %v3715_v39 = vmax.f32 %v3683_v26, 0.0  ;;  %6257 = vmatprep.subr.bf16.mxu1 %v6518_v55  ;;  %v6531_v37 = vld [vmem:[%s6783_s19 + $0x8] sm:$0x7]  ;;  %s5496_s19 = sshll.u32 %s6615_s15, 2  ;;  %s5077_s15 = scalar_lea.sflag [#allocation5], %s391_s21 }
 0x770   : > { %v3682_v6 = vadd.f32 %v8349_v16, %v3646_v36  ;;  %v3713_v60 = vmax.f32 %v3681_v54, 0.0  ;;  %v6519_v16 = vld [vmem:[%s9046_s5 + $0x240] sm:$0xff]   ;;  %v8481_v14 = vrot.slane %v6531_v37, %v6908_v57  ;;  %v6532_v54 = vld [vmem:[%s6788_s26 + $0x8] sm:$0x7]  ;;  %s5089_s26 = sadd.s32 %s5496_s19, %s5495_s4  ;;  %s6537_s4 = sshll.u32 %s6631_s8, 4  ;;  %s6538_s4 = int_to_ptr.vmem [resolvable:$false] %s6537_s4 }
 0x771   : > { %v3716_v58 = vmax.f32 %v3684_v17, 0.0  ;;  %6258 = vmatpush3.bf16.msra.mxu1 %v6518_v55  ;;  %6291 = vmatprep.subr.bf16.mxu0 %v6519_v16  ;;  %v8487_v36 = vrot.slane %v6532_v54, %v6908_v57  ;;  %s5497_s25 = sshll.u32 %s5089_s26, 4  ;;  %s6539_s19 = scalar_lea.vmem %s6538_s4, 64 }
 0x772   : > { %v3714_v40 = vmax.f32 %v3682_v6, 0.0  ;;  %6292 = vmatpush3.bf16.msra.mxu0 %v6519_v16  ;;  %s8988_s14 = scalar_lea.hbm %s9050_s9, %s5497_s25  ;;  %p6540_p4 = scmp.lt.s32.totalorder %s8990_s29, %s6538_s4 }
 0x773   : > { %v3732_v21 = vpack.c.bf16 %v3716_v58, %v3715_v39  ;;  %6293 = vmatprep.subr.bf16.mxu0 %v6520_v2  ;;  %p6541_p5 = scmp.lt.s32.totalorder %s6539_s19, %s6533_s22 }
 0x774   : > { %v3731_v35 = vpack.c.bf16 %v3714_v40, %v3713_v60 }
 0x775   : > { %p6542_p6 = por %p6541_p5, %p6540_p4 }
 0x776   : > { %6239 = vmatprep.mubr.bf16.mxu0 %v3731_v35  ;;  %6294 = vmatpush3.bf16.msra.mxu0 %v6520_v2 }
 0x777   : > { %6240 = vmatmul.mubr.bf16.gmra.mrb[140].mxu0 %v3732_v21  ;;  %6295 = vmatprep.subr.bf16.mxu0 %v6521_v9  ;;  %p6543_p7 = pnand %p6542_p6, %p6536_p2 }
 0x77a   : > { %6296 = vmatpush3.bf16.msra.mxu0 %v6521_v9 }
 0x77b   : > { %6297 = vmatprep.subr.bf16.mxu0 %v6522_v19 }
 0x77e   : > { %6298 = vmatpush3.bf16.msra.mxu0 %v6522_v19 }
 0x77f   : > { %6299 = vmatprep.subr.bf16.mxu0 %v6523_v61 }
 0x782   : > { %6300 = vmatpush3.bf16.msra.mxu0 %v6523_v61 }
 0x783   : > { %6301 = vmatprep.subr.bf16.mxu0 %v6524_v11 }
 0x786   : > { %6302 = vmatpush3.bf16.msra.mxu0 %v6524_v11 }
 0x787   : > { %6303 = vmatprep.subr.bf16.mxu0 %v6525_v24 }
 0x78a   : > { %6304 = vmatpush3.bf16.msra.mxu0 %v6525_v24 }
 0x812   : > { %v6213_v3 = vpop.f32.mrb[112].mxu0 }
 0x813   : > { %v3849_v20 = vadd.f32 %v6213_v3, %v8477_v28  ;;  %v3840_v63 = vpop.f32.mrb[113].mxu0 }
 0x814   : > { %v3841_v26 = vadd.f32 %v8477_v28, %v3840_v63  ;;  %v6214_v38 = vpop.f32.mrb[114].mxu0 }
 0x815   : > { %v8490_v17 = vadd.f32 %v3849_v20, %v8097_v48  ;;  %v3852_v6 = vadd.f32 %v6214_v38, %v8477_v28  ;;  %v3843_v39 = vpop.f32.mrb[115].mxu0 }
 0x816   : > { %v8494_v58 = vadd.f32 %v3841_v26, %v8101_v33  ;;  %v3844_v60 = vadd.f32 %v8477_v28, %v3843_v39 }
 0x817   : > { %v4069_v40 = vmul.f32 %v8481_v14, %v8490_v17  ;;  %v8500_v21 = vadd.f32 %v3852_v6, %v8107_v43 }
 0x818   : > { %v4067_v35 = vmul.f32 %v8481_v14, %v8494_v58  ;;  %v8505_v48 = vadd.f32 %v3844_v60, %v8112_v53 }
 0x819   : > { %v4105_v41 = vadd.f32 %v8487_v36, %v4069_v40  ;;  %v4070_v33 = vmul.f32 %v8481_v14, %v8500_v21 }
 0x81a   : > { %v4068_v55 = vmul.f32 %v8481_v14, %v8505_v48  ;;  %v6217_v16 = vpop.f32.mrb[116].mxu0  ;;  %v4103_v2 = vadd.f32 %v8487_v36, %v4067_v35 }
 0x81b   : > { %v4106_v43 = vadd.f32 %v8487_v36, %v4070_v33  ;;  %v3865_v9 = vadd.f32 %v6217_v16, %v8477_v28  ;;  %v3856_v19 = vpop.f32.mrb[117].mxu0  ;;  %v4137_v24 = vmax.f32 %v4105_v41, 0.0 }
 0x81c   : > { %v3857_v61 = vadd.f32 %v8477_v28, %v3856_v19  ;;  %v6218_v53 = vpop.f32.mrb[118].mxu0  ;;  %v4104_v11 = vadd.f32 %v8487_v36, %v4068_v55  ;;  %v4135_v54 = vmax.f32 %v4103_v2, 0.0 }
 0x81d   : > { %v4138_v3 = vmax.f32 %v4106_v43, 0.0  ;;  %v8518_v37 = vadd.f32 %v3865_v9, %v8125_v0  ;;  %v3868_v20 = vadd.f32 %v6218_v53, %v8477_v28  ;;  %v3859_v63 = vpop.f32.mrb[119].mxu0 }
 0x81e   : > { %v8522_v26 = vadd.f32 %v3857_v61, %v8129_v5  ;;  %v3860_v38 = vadd.f32 %v8477_v28, %v3859_v63  ;;  %v4136_v6 = vmax.f32 %v4104_v11, 0.0 }
 0x81f   : > { %v4168_v39 = vpack.c.bf16 %v4138_v3, %v4137_v24  ;;  %v4073_v60 = vmul.f32 %v8481_v14, %v8518_v37  ;;  %v8528_v40 = vadd.f32 %v3868_v20, %v8135_v8 }
 0x820   : > { %v4071_v0 = vmul.f32 %v8481_v14, %v8522_v26  ;;  %v8533_v35 = vadd.f32 %v3860_v38, %v8140_v44  ;;  %v4167_v41 = vpack.c.bf16 %v4136_v6, %v4135_v54 }
 0x821   : > { %v4074_v5 = vmul.f32 %v8481_v14, %v8528_v40  ;;  %v4109_v33 = vadd.f32 %v8487_v36, %v4073_v60 }
 0x822   : > { %v4072_v55 = vmul.f32 %v8481_v14, %v8533_v35  ;;  %v6221_v16 = vpop.f32.mrb[120].mxu0  ;;  %6259 = vmatprep.mubr.bf16.mxu1 %v4167_v41  ;;  %v4107_v8 = vadd.f32 %v8487_v36, %v4071_v0 }
 0x823   : > { %v3881_v2 = vadd.f32 %v6221_v16, %v8477_v28  ;;  %v3872_v43 = vpop.f32.mrb[121].mxu0  ;;  %6260 = vmatmul.mubr.bf16.vlgmr.msra.gmra.mrb[144].mxu1 %v4168_v39  ;;  %v4110_v44 = vadd.f32 %v8487_v36, %v4074_v5  ;;  %v4141_v3 = vmax.f32 %v4109_v33, 0.0 }
 0x824   : > { %v3873_v9 = vadd.f32 %v8477_v28, %v3872_v43  ;;  %v6222_v19 = vpop.f32.mrb[122].mxu0  ;;  %v4108_v61 = vadd.f32 %v8487_v36, %v4072_v55  ;;  %v4139_v54 = vmax.f32 %v4107_v8, 0.0 }
 0x825   : > { %v8546_v53 = vadd.f32 %v3881_v2, %v8153_v59  ;;  %v3884_v11 = vadd.f32 %v6222_v19, %v8477_v28  ;;  %v3875_v24 = vpop.f32.mrb[123].mxu0  ;;  %v4142_v20 = vmax.f32 %v4110_v44, 0.0 }
 0x826   : > { %v8550_v63 = vadd.f32 %v3873_v9, %v8157_v42  ;;  %v3876_v38 = vadd.f32 %v8477_v28, %v3875_v24  ;;  %v4140_v6 = vmax.f32 %v4108_v61, 0.0 }
 0x827   : > { %v4077_v39 = vmul.f32 %v8481_v14, %v8546_v53  ;;  %v8556_v60 = vadd.f32 %v3884_v11, %v8163_v51  ;;  %v4170_v59 = vpack.c.bf16 %v4142_v20, %v4141_v3 }
 0x828   : > { %v4075_v0 = vmul.f32 %v8481_v14, %v8550_v63  ;;  %v8561_v41 = vadd.f32 %v3876_v38, %v8168_v1  ;;  %v4169_v5 = vpack.c.bf16 %v4140_v6, %v4139_v54 }
 0x829   : > { %v4078_v42 = vmul.f32 %v8481_v14, %v8556_v60  ;;  %v4113_v33 = vadd.f32 %v8487_v36, %v4077_v39 }
 0x82a   : > { %v4076_v55 = vmul.f32 %v8481_v14, %v8561_v41  ;;  %v6225_v16 = vpop.f32.mrb[124].mxu0  ;;  %6263 = vmatprep.mubr.bf16.mxu1 %v4169_v5  ;;  %v4111_v51 = vadd.f32 %v8487_v36, %v4075_v0 }
 0x82b   : > { %v3897_v8 = vadd.f32 %v6225_v16, %v8477_v28  ;;  %v3888_v2 = vpop.f32.mrb[125].mxu0  ;;  %6264 = vmatmul.mubr.bf16.gmra.mrb[148].mxu1 %v4170_v59  ;;  %v4114_v1 = vadd.f32 %v8487_v36, %v4078_v42  ;;  %v4145_v24 = vmax.f32 %v4113_v33, 0.0 }
 0x82c   : > { %v3889_v43 = vadd.f32 %v8477_v28, %v3888_v2  ;;  %v6226_v44 = vpop.f32.mrb[126].mxu0  ;;  %v4112_v9 = vadd.f32 %v8487_v36, %v4076_v55  ;;  %v4143_v54 = vmax.f32 %v4111_v51, 0.0 }
 0x82d   : > { %v8574_v19 = vadd.f32 %v3897_v8, %v8181_v7  ;;  %v3900_v61 = vadd.f32 %v6226_v44, %v8477_v28  ;;  %v3891_v11 = vpop.f32.mrb[127].mxu0  ;;  %v4146_v3 = vmax.f32 %v4114_v1, 0.0 }
 0x82e   : > { %v8578_v20 = vadd.f32 %v3889_v43, %v8185_v50  ;;  %v3892_v38 = vadd.f32 %v8477_v28, %v3891_v11  ;;  %v4144_v6 = vmax.f32 %v4112_v9, 0.0 }
 0x82f   : > { %v4081_v39 = vmul.f32 %v8481_v14, %v8574_v19  ;;  %v8584_v59 = vadd.f32 %v3900_v61, %v8191_v18  ;;  %v4172_v7 = vpack.c.bf16 %v4146_v3, %v4145_v24 }
 0x830   : > { %v4079_v0 = vmul.f32 %v8481_v14, %v8578_v20  ;;  %v8589_v5 = vadd.f32 %v3892_v38, %v8196_v10  ;;  %v4171_v42 = vpack.c.bf16 %v4144_v6, %v4143_v54 }
 0x831   : > { %v4082_v50 = vmul.f32 %v8481_v14, %v8584_v59  ;;  %v4117_v33 = vadd.f32 %v8487_v36, %v4081_v39 }
 0x832   : > { %v4080_v55 = vmul.f32 %v8481_v14, %v8589_v5  ;;  %v6229_v16 = vpop.f32.mrb[128].mxu0  ;;  %6267 = vmatprep.mubr.bf16.mxu1 %v4171_v42  ;;  %v4115_v18 = vadd.f32 %v8487_v36, %v4079_v0 }
 0x833   : > { %v3913_v51 = vadd.f32 %v6229_v16, %v8477_v28  ;;  %v3904_v8 = vpop.f32.mrb[129].mxu0  ;;  %6268 = vmatmul.mubr.bf16.gmra.mrb[152].mxu1 %v4172_v7  ;;  %v4118_v10 = vadd.f32 %v8487_v36, %v4082_v50  ;;  %v4149_v11 = vmax.f32 %v4117_v33, 0.0 }
 0x834   : > { %v3905_v2 = vadd.f32 %v8477_v28, %v3904_v8  ;;  %v6230_v1 = vpop.f32.mrb[130].mxu0  ;;  %v4116_v43 = vadd.f32 %v8487_v36, %v4080_v55  ;;  %v4147_v54 = vmax.f32 %v4115_v18, 0.0 }
 0x835   : > { %v8602_v44 = vadd.f32 %v3913_v51, %v8209_v32  ;;  %v3916_v9 = vadd.f32 %v6230_v1, %v8477_v28  ;;  %v3907_v61 = vpop.f32.mrb[131].mxu0  ;;  %v4150_v24 = vmax.f32 %v4118_v10, 0.0 }
 0x836   : > { %v8606_v3 = vadd.f32 %v3905_v2, %v8213_v27  ;;  %v3908_v38 = vadd.f32 %v8477_v28, %v3907_v61  ;;  %v4148_v6 = vmax.f32 %v4116_v43, 0.0 }
 0x837   : > { %v4085_v39 = vmul.f32 %v8481_v14, %v8602_v44  ;;  %v8612_v7 = vadd.f32 %v3916_v9, %v8219_v23  ;;  %v4174_v32 = vpack.c.bf16 %v4150_v24, %v4149_v11 }
 0x838   : > { %v4083_v0 = vmul.f32 %v8481_v14, %v8606_v3  ;;  %v8617_v42 = vadd.f32 %v3908_v38, %v8224_v62  ;;  %v4173_v50 = vpack.c.bf16 %v4148_v6, %v4147_v54 }
 0x839   : > { %v4086_v27 = vmul.f32 %v8481_v14, %v8612_v7  ;;  %v4121_v33 = vadd.f32 %v8487_v36, %v4085_v39 }
 0x83a   : > { %v4084_v55 = vmul.f32 %v8481_v14, %v8617_v42  ;;  %v6233_v16 = vpop.f32.mrb[132].mxu0  ;;  %6271 = vmatprep.mubr.bf16.mxu1 %v4173_v50  ;;  %v4119_v23 = vadd.f32 %v8487_v36, %v4083_v0 }
 0x83b   : > { %v3929_v18 = vadd.f32 %v6233_v16, %v8477_v28  ;;  %v3920_v51 = vpop.f32.mrb[133].mxu0  ;;  %6272 = vmatmul.mubr.bf16.gmra.mrb[156].mxu1 %v4174_v32  ;;  %v4122_v62 = vadd.f32 %v8487_v36, %v4086_v27  ;;  %v4153_v61 = vmax.f32 %v4121_v33, 0.0 }
 0x83c   : > { %v3921_v8 = vadd.f32 %v8477_v28, %v3920_v51  ;;  %v6234_v10 = vpop.f32.mrb[134].mxu0  ;;  %v4120_v2 = vadd.f32 %v8487_v36, %v4084_v55  ;;  %v4151_v54 = vmax.f32 %v4119_v23, 0.0 }
 0x83d   : > { %v8630_v1 = vadd.f32 %v3929_v18, %v8237_v29  ;;  %v3932_v43 = vadd.f32 %v6234_v10, %v8477_v28  ;;  %v3923_v9 = vpop.f32.mrb[135].mxu0  ;;  %v4154_v11 = vmax.f32 %v4122_v62, 0.0 }
 0x83e   : > { %v8634_v24 = vadd.f32 %v3921_v8, %v8241_v31  ;;  %v3924_v38 = vadd.f32 %v8477_v28, %v3923_v9  ;;  %v4152_v6 = vmax.f32 %v4120_v2, 0.0 }
 0x83f   : > { %v4089_v39 = vmul.f32 %v8481_v14, %v8630_v1  ;;  %v8640_v32 = vadd.f32 %v3932_v43, %v8247_v49  ;;  %v4176_v29 = vpack.c.bf16 %v4154_v11, %v4153_v61 }
 0x840   : > { %v4087_v0 = vmul.f32 %v8481_v14, %v8634_v24  ;;  %v8645_v50 = vadd.f32 %v3924_v38, %v8252_v52  ;;  %v4175_v27 = vpack.c.bf16 %v4152_v6, %v4151_v54 }
 0x841   : > { %v4090_v31 = vmul.f32 %v8481_v14, %v8640_v32  ;;  %v4125_v33 = vadd.f32 %v8487_v36, %v4089_v39 }
 0x842   : > { %v4088_v55 = vmul.f32 %v8481_v14, %v8645_v50  ;;  %v6237_v16 = vpop.f32.mrb[136].mxu0  ;;  %6275 = vmatprep.mubr.bf16.mxu1 %v4175_v27  ;;  %v4123_v49 = vadd.f32 %v8487_v36, %v4087_v0 }
 0x843   : > { %v3945_v23 = vadd.f32 %v6237_v16, %v8477_v28  ;;  %v3936_v18 = vpop.f32.mrb[137].mxu0  ;;  %6276 = vmatmul.mubr.bf16.gmra.mrb[160].mxu1 %v4176_v29  ;;  %v4126_v52 = vadd.f32 %v8487_v36, %v4090_v31  ;;  %v4157_v9 = vmax.f32 %v4125_v33, 0.0 }
 0x844   : > { %v3937_v51 = vadd.f32 %v8477_v28, %v3936_v18  ;;  %v6238_v62 = vpop.f32.mrb[138].mxu0  ;;  %v4124_v8 = vadd.f32 %v8487_v36, %v4088_v55  ;;  %v4155_v54 = vmax.f32 %v4123_v49, 0.0 }
 0x845   : > { %v8658_v10 = vadd.f32 %v3945_v23, %v8265_v45  ;;  %v3948_v2 = vadd.f32 %v6238_v62, %v8477_v28  ;;  %v3939_v43 = vpop.f32.mrb[139].mxu0  ;;  %v4158_v61 = vmax.f32 %v4126_v52, 0.0 }
 0x846   : > { %v8662_v11 = vadd.f32 %v3937_v51, %v8269_v30  ;;  %v3940_v38 = vadd.f32 %v8477_v28, %v3939_v43  ;;  %v4156_v6 = vmax.f32 %v4124_v8, 0.0 }
 0x847   : > { %v4093_v39 = vmul.f32 %v8481_v14, %v8658_v10  ;;  %v8668_v29 = vadd.f32 %v3948_v2, %v8275_v25  ;;  %v4178_v45 = vpack.c.bf16 %v4158_v61, %v4157_v9 }
 0x848   : > { %v4091_v0 = vmul.f32 %v8481_v14, %v8662_v11  ;;  %v8673_v27 = vadd.f32 %v3940_v38, %v8280_v34  ;;  %v4177_v31 = vpack.c.bf16 %v4156_v6, %v4155_v54 }
 0x849   : > { %v4094_v30 = vmul.f32 %v8481_v14, %v8668_v29  ;;  %v4129_v33 = vadd.f32 %v8487_v36, %v4093_v39 }
 0x84a   : > { %v4092_v55 = vmul.f32 %v8481_v14, %v8673_v27  ;;  %v6241_v16 = vpop.f32.mrb[140].mxu0  ;;  %6279 = vmatprep.mubr.bf16.mxu1 %v4177_v31  ;;  %v4127_v25 = vadd.f32 %v8487_v36, %v4091_v0 }
 0x84b   : > { %v3961_v49 = vadd.f32 %v6241_v16, %v8477_v28  ;;  %v3952_v23 = vpop.f32.mrb[141].mxu0  ;;  %6280 = vmatmul.mubr.bf16.gmra.mrb[164].mxu1 %v4178_v45  ;;  %v4130_v34 = vadd.f32 %v8487_v36, %v4094_v30  ;;  %v4161_v43 = vmax.f32 %v4129_v33, 0.0 }
 0x84c   : > { %v3953_v18 = vadd.f32 %v8477_v28, %v3952_v23  ;;  %v6242_v52 = vpop.f32.mrb[142].mxu0  ;;  %v4128_v51 = vadd.f32 %v8487_v36, %v4092_v55  ;;  %v4159_v54 = vmax.f32 %v4127_v25, 0.0 }
 0x84d   : > { %v8686_v62 = vadd.f32 %v3961_v49, %v8293_v56  ;;  %v3964_v8 = vadd.f32 %v6242_v52, %v8477_v28  ;;  %v3955_v2 = vpop.f32.mrb[143].mxu0  ;;  %v4162_v9 = vmax.f32 %v4130_v34, 0.0  ;;  %v8717_v52 = vld [vmem:[%s9047_s6 + $0x8] ss:$0 sm:$0xff] }
 0x84e   : > { %v8690_v61 = vadd.f32 %v3953_v18, %v8297_v22  ;;  %v3956_v38 = vadd.f32 %v8477_v28, %v3955_v2  ;;  %v4160_v6 = vmax.f32 %v4128_v51, 0.0 }
 0x84f   : > { %v4097_v39 = vmul.f32 %v8481_v14, %v8686_v62  ;;  %v8696_v45 = vadd.f32 %v3964_v8, %v8303_v46  ;;  %v4180_v56 = vpack.c.bf16 %v4162_v9, %v4161_v43 }
 0x850   : > { %v4095_v0 = vmul.f32 %v8481_v14, %v8690_v61  ;;  %v8701_v31 = vadd.f32 %v3956_v38, %v8308_v47  ;;  %v4179_v30 = vpack.c.bf16 %v4160_v6, %v4159_v54 }
 0x851   : > { %v4098_v22 = vmul.f32 %v8481_v14, %v8696_v45  ;;  %v4133_v28 = vadd.f32 %v8487_v36, %v4097_v39 }
 0x852   : > { %v4096_v33 = vmul.f32 %v8481_v14, %v8701_v31  ;;  %6283 = vmatprep.mubr.bf16.mxu1 %v4179_v30  ;;  %v4131_v46 = vadd.f32 %v8487_v36, %v4095_v0  ;;  %v6526_v14 = vld [vmem:[%s9046_s5 + $0x278] sm:$0xff]  }
 0x853   : > { %6284 = vmatmul.mubr.bf16.gmra.mrb[168].mxu1 %v4180_v56  ;;  %v4134_v55 = vadd.f32 %v8487_v36, %v4098_v22  ;;  %v4165_v25 = vmax.f32 %v4133_v28, 0.0  ;;  %6305 = vmatprep.subr.bf16.mxu0 %v6526_v14 }
 0x854   : > { %v4132_v16 = vadd.f32 %v8487_v36, %v4096_v33  ;;  %v4163_v49 = vmax.f32 %v4131_v46, 0.0  ;;  %6306 = vmatpush3.bf16.msra.mxu0 %v6526_v14 }
 0x855   : > { %v4166_v47 = vmax.f32 %v4134_v55, 0.0 }
 0x856   : > { %v4164_v23 = vmax.f32 %v4132_v16, 0.0 }
 0x857   : > { %v4182_v34 = vpack.c.bf16 %v4166_v47, %v4165_v25 }
 0x858   : > { %v4181_v18 = vpack.c.bf16 %v4164_v23, %v4163_v49 }
 0x85a   : > { %6287 = vmatprep.mubr.bf16.mxu1 %v4181_v18 }
 0x85b   : > { %6288 = vmatmul.mubr.bf16.gmra.mrb[172].mxu1 %v4182_v34 }
 0x8f6   : > { %v6261_v36 = vpop.f32.mrb[144].mxu1 }
 0x8f7   : > { %v4299_v51 = vadd.f32 %v6261_v36, %v8717_v52  ;;  %v4290_v8 = vpop.f32.mrb[145].mxu1 }
 0x8f8   : > { %v4291_v2 = vadd.f32 %v8717_v52, %v4290_v8  ;;  %v6262_v43 = vpop.f32.mrb[146].mxu1 }
 0x8f9   : > { %v4423_v9 = vmul.f32 %v6801_v12, %v4299_v51  ;;  %v4302_v38 = vadd.f32 %v6262_v43, %v8717_v52  ;;  %v4293_v54 = vpop.f32.mrb[147].mxu1 }
 0x8fa   : > { %v4421_v6 = vmul.f32 %v6801_v12, %v4291_v2  ;;  %v4294_v39 = vadd.f32 %v8717_v52, %v4293_v54 }
 0x8fb   : > { %v4459_v56 = vadd.f32 %v6804_v13, %v4423_v9  ;;  %v4424_v0 = vmul.f32 %v6801_v12, %v4302_v38 }
 0x8fc   : > { %v4457_v30 = vadd.f32 %v6804_v13, %v4421_v6  ;;  %v4422_v22 = vmul.f32 %v6801_v12, %v4294_v39 }
 0x8fd   : > { %v4460_v28 = vadd.f32 %v6804_v13, %v4424_v0  ;;  %v4491_v55 = vmax.f32 %v4459_v56, 0.0 }
 0x8fe   : > { %v4458_v33 = vadd.f32 %v6804_v13, %v4422_v22  ;;  %v6265_v46 = vpop.f32.mrb[148].mxu1  ;;  %v4489_v49 = vmax.f32 %v4457_v30, 0.0 }
 0x8ff   : > { %v4492_v16 = vmax.f32 %v4460_v28, 0.0  ;;  %v4315_v25 = vadd.f32 %v6265_v46, %v8717_v52  ;;  %v4306_v47 = vpop.f32.mrb[149].mxu1 }
 0x900   : > { %v4490_v23 = vmax.f32 %v4458_v33, 0.0  ;;  %v4307_v34 = vadd.f32 %v8717_v52, %v4306_v47  ;;  %v6266_v18 = vpop.f32.mrb[150].mxu1 }
 0x901   : > { %v4522_v14 = vpack.c.bf16 %v4492_v16, %v4491_v55  ;;  %v4427_v36 = vmul.f32 %v6801_v12, %v4315_v25  ;;  %v4318_v51 = vadd.f32 %v6266_v18, %v8717_v52  ;;  %v4309_v8 = vpop.f32.mrb[151].mxu1 }
 0x902   : > { %v4425_v2 = vmul.f32 %v6801_v12, %v4307_v34  ;;  %v4310_v43 = vadd.f32 %v8717_v52, %v4309_v8  ;;  %v4521_v9 = vpack.c.bf16 %v4490_v23, %v4489_v49 }
 0x903   : > { %v4463_v38 = vadd.f32 %v6804_v13, %v4427_v36  ;;  %v4428_v54 = vmul.f32 %v6801_v12, %v4318_v51 }
 0x904   : > { %v4461_v6 = vadd.f32 %v6804_v13, %v4425_v2  ;;  %v4426_v39 = vmul.f32 %v6801_v12, %v4310_v43  ;;  %6307 = vmatprep.mubr.bf16.mxu0 %v4521_v9 }
 0x905   : > { %v4464_v56 = vadd.f32 %v6804_v13, %v4428_v54  ;;  %6308 = vmatmul.mubr.bf16.vlgmr.msra.gmra.mrb[144].mxu0 %v4522_v14  ;;  %v4495_v22 = vmax.f32 %v4463_v38, 0.0 }
 0x906   : > { %v4462_v0 = vadd.f32 %v6804_v13, %v4426_v39  ;;  %v6269_v30 = vpop.f32.mrb[152].mxu1  ;;  %v4493_v55 = vmax.f32 %v4461_v6, 0.0 }
 0x907   : > { %v4496_v28 = vmax.f32 %v4464_v56, 0.0  ;;  %v4331_v33 = vadd.f32 %v6269_v30, %v8717_v52  ;;  %v4322_v46 = vpop.f32.mrb[153].mxu1 }
 0x908   : > { %v4494_v16 = vmax.f32 %v4462_v0, 0.0  ;;  %v4323_v25 = vadd.f32 %v8717_v52, %v4322_v46  ;;  %v6270_v47 = vpop.f32.mrb[154].mxu1 }
 0x909   : > { %v4431_v49 = vmul.f32 %v6801_v12, %v4331_v33  ;;  %v4334_v23 = vadd.f32 %v6270_v47, %v8717_v52  ;;  %v4325_v34 = vpop.f32.mrb[155].mxu1  ;;  %v4524_v18 = vpack.c.bf16 %v4496_v28, %v4495_v22 }
 0x90a   : > { %v4429_v14 = vmul.f32 %v6801_v12, %v4323_v25  ;;  %v4326_v36 = vadd.f32 %v8717_v52, %v4325_v34  ;;  %v4523_v51 = vpack.c.bf16 %v4494_v16, %v4493_v55 }
 0x90b   : > { %v4467_v8 = vadd.f32 %v6804_v13, %v4431_v49  ;;  %v4432_v2 = vmul.f32 %v6801_v12, %v4334_v23 }
 0x90c   : > { %v4465_v43 = vadd.f32 %v6804_v13, %v4429_v14  ;;  %v4430_v9 = vmul.f32 %v6801_v12, %v4326_v36  ;;  %6311 = vmatprep.mubr.bf16.mxu0 %v4523_v51 }
 0x90d   : > { %v4468_v38 = vadd.f32 %v6804_v13, %v4432_v2  ;;  %6312 = vmatmul.mubr.bf16.gmra.mrb[148].mxu0 %v4524_v18  ;;  %v4499_v39 = vmax.f32 %v4467_v8, 0.0 }
 0x90e   : > { %v4466_v54 = vadd.f32 %v6804_v13, %v4430_v9  ;;  %v6273_v6 = vpop.f32.mrb[156].mxu1  ;;  %v4497_v22 = vmax.f32 %v4465_v43, 0.0 }
 0x90f   : > { %v4500_v56 = vmax.f32 %v4468_v38, 0.0  ;;  %v4347_v0 = vadd.f32 %v6273_v6, %v8717_v52  ;;  %v4338_v30 = vpop.f32.mrb[157].mxu1 }
 0x910   : > { %v4498_v28 = vmax.f32 %v4466_v54, 0.0  ;;  %v4339_v33 = vadd.f32 %v8717_v52, %v4338_v30  ;;  %v6274_v46 = vpop.f32.mrb[158].mxu1 }
 0x911   : > { %v4435_v55 = vmul.f32 %v6801_v12, %v4347_v0  ;;  %v4350_v16 = vadd.f32 %v6274_v46, %v8717_v52  ;;  %v4341_v25 = vpop.f32.mrb[159].mxu1  ;;  %v4526_v47 = vpack.c.bf16 %v4500_v56, %v4499_v39 }
 0x912   : > { %v4433_v49 = vmul.f32 %v6801_v12, %v4339_v33  ;;  %v4342_v23 = vadd.f32 %v8717_v52, %v4341_v25  ;;  %v4525_v34 = vpack.c.bf16 %v4498_v28, %v4497_v22 }
 0x913   : > { %v4471_v18 = vadd.f32 %v6804_v13, %v4435_v55  ;;  %v4436_v14 = vmul.f32 %v6801_v12, %v4350_v16 }
 0x914   : > { %v4469_v36 = vadd.f32 %v6804_v13, %v4433_v49  ;;  %v4434_v51 = vmul.f32 %v6801_v12, %v4342_v23  ;;  %6315 = vmatprep.mubr.bf16.mxu0 %v4525_v34 }
 0x915   : > { %v4472_v8 = vadd.f32 %v6804_v13, %v4436_v14  ;;  %6316 = vmatmul.mubr.bf16.gmra.mrb[152].mxu0 %v4526_v47  ;;  %v4503_v9 = vmax.f32 %v4471_v18, 0.0 }
 0x916   : > { %v4470_v2 = vadd.f32 %v6804_v13, %v4434_v51  ;;  %v6277_v43 = vpop.f32.mrb[160].mxu1  ;;  %v4501_v39 = vmax.f32 %v4469_v36, 0.0 }
 0x917   : > { %v4504_v38 = vmax.f32 %v4472_v8, 0.0  ;;  %v4363_v54 = vadd.f32 %v6277_v43, %v8717_v52  ;;  %v4354_v6 = vpop.f32.mrb[161].mxu1 }
 0x918   : > { %v4502_v56 = vmax.f32 %v4470_v2, 0.0  ;;  %v4355_v0 = vadd.f32 %v8717_v52, %v4354_v6  ;;  %v6278_v30 = vpop.f32.mrb[162].mxu1 }
 0x919   : > { %v4439_v22 = vmul.f32 %v6801_v12, %v4363_v54  ;;  %v4366_v28 = vadd.f32 %v6278_v30, %v8717_v52  ;;  %v4357_v33 = vpop.f32.mrb[163].mxu1  ;;  %v4528_v46 = vpack.c.bf16 %v4504_v38, %v4503_v9 }
 0x91a   : > { %v4437_v55 = vmul.f32 %v6801_v12, %v4355_v0  ;;  %v4358_v16 = vadd.f32 %v8717_v52, %v4357_v33  ;;  %v4527_v25 = vpack.c.bf16 %v4502_v56, %v4501_v39 }
 0x91b   : > { %v4475_v47 = vadd.f32 %v6804_v13, %v4439_v22  ;;  %v4440_v49 = vmul.f32 %v6801_v12, %v4366_v28 }
 0x91c   : > { %v4473_v23 = vadd.f32 %v6804_v13, %v4437_v55  ;;  %v4438_v34 = vmul.f32 %v6801_v12, %v4358_v16  ;;  %6319 = vmatprep.mubr.bf16.mxu0 %v4527_v25 }
 0x91d   : > { %v4476_v18 = vadd.f32 %v6804_v13, %v4440_v49  ;;  %6320 = vmatmul.mubr.bf16.gmra.mrb[156].mxu0 %v4528_v46  ;;  %v4507_v51 = vmax.f32 %v4475_v47, 0.0 }
 0x91e   : > { %v4474_v14 = vadd.f32 %v6804_v13, %v4438_v34  ;;  %v6281_v36 = vpop.f32.mrb[164].mxu1  ;;  %v4505_v9 = vmax.f32 %v4473_v23, 0.0 }
 0x91f   : > { %v4508_v8 = vmax.f32 %v4476_v18, 0.0  ;;  %v4379_v2 = vadd.f32 %v6281_v36, %v8717_v52  ;;  %v4370_v43 = vpop.f32.mrb[165].mxu1 }
 0x920   : > { %v4506_v38 = vmax.f32 %v4474_v14, 0.0  ;;  %v4371_v54 = vadd.f32 %v8717_v52, %v4370_v43  ;;  %v6282_v6 = vpop.f32.mrb[166].mxu1 }
 0x921   : > { %v4443_v39 = vmul.f32 %v6801_v12, %v4379_v2  ;;  %v4382_v56 = vadd.f32 %v6282_v6, %v8717_v52  ;;  %v4373_v0 = vpop.f32.mrb[167].mxu1  ;;  %v4530_v30 = vpack.c.bf16 %v4508_v8, %v4507_v51 }
 0x922   : > { %v4441_v22 = vmul.f32 %v6801_v12, %v4371_v54  ;;  %v4374_v28 = vadd.f32 %v8717_v52, %v4373_v0  ;;  %v4529_v33 = vpack.c.bf16 %v4506_v38, %v4505_v9 }
 0x923   : > { %v4479_v46 = vadd.f32 %v6804_v13, %v4443_v39  ;;  %v4444_v55 = vmul.f32 %v6801_v12, %v4382_v56 }
 0x924   : > { %v4477_v16 = vadd.f32 %v6804_v13, %v4441_v22  ;;  %v4442_v25 = vmul.f32 %v6801_v12, %v4374_v28  ;;  %6323 = vmatprep.mubr.bf16.mxu0 %v4529_v33 }
 0x925   : > { %v4480_v47 = vadd.f32 %v6804_v13, %v4444_v55  ;;  %6324 = vmatmul.mubr.bf16.gmra.mrb[160].mxu0 %v4530_v30  ;;  %v4511_v34 = vmax.f32 %v4479_v46, 0.0 }
 0x926   : > { %v4478_v49 = vadd.f32 %v6804_v13, %v4442_v25  ;;  %v6285_v23 = vpop.f32.mrb[168].mxu1  ;;  %v4509_v51 = vmax.f32 %v4477_v16, 0.0 }
 0x927   : > { %v4512_v18 = vmax.f32 %v4480_v47, 0.0  ;;  %v4395_v14 = vadd.f32 %v6285_v23, %v8717_v52  ;;  %v4386_v36 = vpop.f32.mrb[169].mxu1 }
 0x928   : > { %v4510_v8 = vmax.f32 %v4478_v49, 0.0  ;;  %v4387_v2 = vadd.f32 %v8717_v52, %v4386_v36  ;;  %v6286_v43 = vpop.f32.mrb[170].mxu1 }
 0x929   : > { %v4447_v9 = vmul.f32 %v6801_v12, %v4395_v14  ;;  %v4398_v38 = vadd.f32 %v6286_v43, %v8717_v52  ;;  %v4389_v54 = vpop.f32.mrb[171].mxu1  ;;  %v4532_v6 = vpack.c.bf16 %v4512_v18, %v4511_v34 }
 0x92a   : > { %v4445_v39 = vmul.f32 %v6801_v12, %v4387_v2  ;;  %v4390_v56 = vadd.f32 %v8717_v52, %v4389_v54  ;;  %v4531_v0 = vpack.c.bf16 %v4510_v8, %v4509_v51 }
 0x92b   : > { %v4483_v30 = vadd.f32 %v6804_v13, %v4447_v9  ;;  %v4448_v22 = vmul.f32 %v6801_v12, %v4398_v38 }
 0x92c   : > { %v4481_v28 = vadd.f32 %v6804_v13, %v4445_v39  ;;  %v4446_v33 = vmul.f32 %v6801_v12, %v4390_v56  ;;  %6327 = vmatprep.mubr.bf16.mxu0 %v4531_v0 }
 0x92d   : > { %v4484_v46 = vadd.f32 %v6804_v13, %v4448_v22  ;;  %6328 = vmatmul.mubr.bf16.gmra.mrb[164].mxu0 %v4532_v6  ;;  %v4515_v25 = vmax.f32 %v4483_v30, 0.0 }
 0x92e   : > { %v4482_v55 = vadd.f32 %v6804_v13, %v4446_v33  ;;  %v6289_v16 = vpop.f32.mrb[172].mxu1  ;;  %v4513_v34 = vmax.f32 %v4481_v28, 0.0 }
 0x92f   : > { %v4516_v47 = vmax.f32 %v4484_v46, 0.0  ;;  %v4411_v49 = vadd.f32 %v6289_v16, %v8717_v52  ;;  %v4402_v23 = vpop.f32.mrb[173].mxu1 }
 0x930   : > { %v4514_v18 = vmax.f32 %v4482_v55, 0.0  ;;  %v4403_v14 = vadd.f32 %v8717_v52, %v4402_v23  ;;  %v6290_v36 = vpop.f32.mrb[174].mxu1 }
 0x931   : > { %v4451_v51 = vmul.f32 %v6801_v12, %v4411_v49  ;;  %v4414_v8 = vadd.f32 %v6290_v36, %v8717_v52  ;;  %v4405_v2 = vpop.f32.mrb[175].mxu1  ;;  %v4534_v43 = vpack.c.bf16 %v4516_v47, %v4515_v25  ;;  %v8818_v25 = vld [vmem:[%s9048_s7] sm:$0x1]  ;;  %v6629_v47 = vmov 0  }
 0x932   : > { %v4449_v9 = vmul.f32 %v6801_v12, %v4403_v14  ;;  %v4406_v38 = vadd.f32 %v8717_v52, %v4405_v2  ;;  %v4533_v54 = vpack.c.bf16 %v4514_v18, %v4513_v34  ;;  %5807 = vmatprep.mubr.f32.mxu1 %v8818_v25  ;;  %6446 = vset.pattern.permute.xlu0 %v6629_v47 }
 0x933   : > { %v4487_v6 = vadd.f32 %v6804_v13, %v4451_v51  ;;  %v4452_v39 = vmul.f32 %v6801_v12, %v4414_v8 }
 0x934   : > { %v4485_v56 = vadd.f32 %v6804_v13, %v4449_v9  ;;  %v4450_v0 = vmul.f32 %v6801_v12, %v4406_v38  ;;  %6331 = vmatprep.mubr.bf16.mxu0 %v4533_v54  ;;  %v4972_v12 = vld [vmem:[#allocation3] sm:$0x1] }
 0x935   : > { %v4488_v30 = vadd.f32 %v6804_v13, %v4452_v39  ;;  %6332 = vmatmul.mubr.bf16.gmra.mrb[168].mxu0 %v4534_v43  ;;  %v4519_v28 = vmax.f32 %v4487_v6, 0.0  ;;  %4975 = vperm.xlu0 %6446, %v4972_v12   ;;  %v9060_v39 = vld [vmem:[#allocation8_spill] sm:$0xff] }
 0x936   : > { %v4486_v22 = vadd.f32 %v6804_v13, %v4450_v0  ;;  %v4517_v46 = vmax.f32 %v4485_v56, 0.0  ;;  %v8824_v13 = vld [vmem:[%s9047_s6 + $0x9] ss:$0 sm:$0xff] }
 0x937   : > { %v4520_v33 = vmax.f32 %v4488_v30, 0.0 }
 0x938   : > { %v4518_v55 = vmax.f32 %v4486_v22, 0.0 }
 0x939   : > { %v4536_v52 = vpack.c.bf16 %v4520_v33, %v4519_v28 }
 0x93a   : > { %v4535_v16 = vpack.c.bf16 %v4518_v55, %v4517_v46 }
 0x93c   : > { %6335 = vmatprep.mubr.bf16.mxu0 %v4535_v16 }
 0x93d   : > { %6336 = vmatmul.mubr.bf16.gmra.mrb[172].mxu0 %v4536_v52 }
 0x9d8   : > { %v6309_v49 = vpop.f32.mrb[144].mxu0 }
 0x9d9   : > { %v4653_v23 = vadd.f32 %v6309_v49, %v8824_v13  ;;  %v4644_v34 = vpop.f32.mrb[145].mxu0 }
 0x9da   : > { %v4645_v18 = vadd.f32 %v8824_v13, %v4644_v34  ;;  %v6310_v14 = vpop.f32.mrb[146].mxu0 }
 0x9db   : > { %v4773_v36 = vadd.f32 %v4653_v23, %v8490_v17  ;;  %v4656_v51 = vadd.f32 %v6310_v14, %v8824_v13  ;;  %v4647_v8 = vpop.f32.mrb[147].mxu0 }
 0x9dc   : > { %v4771_v2 = vadd.f32 %v4645_v18, %v8494_v58  ;;  %v4648_v43 = vadd.f32 %v8824_v13, %v4647_v8 }
 0x9dd   : > { %v4873_v9 = vmul.f32 %v6809_v15, %v4773_v36  ;;  %v4774_v38 = vadd.f32 %v4656_v51, %v8500_v21 }
 0x9de   : > { %v4871_v54 = vmul.f32 %v6809_v15, %v4771_v2  ;;  %v4772_v6 = vadd.f32 %v4648_v43, %v8505_v48 }
 0x9df   : > { %v4909_v56 = vadd.f32 %v9060_v39, %v4873_v9  ;;  %v4874_v0 = vmul.f32 %v6809_v15, %v4774_v38 }
 0x9e0   : > { %v4907_v17 = vadd.f32 %v9060_v39, %v4871_v54  ;;  %v4872_v30 = vmul.f32 %v6809_v15, %v4772_v6  ;;  %v6313_v22 = vpop.f32.mrb[148].mxu0 }
 0x9e1   : > { %v4910_v58 = vadd.f32 %v9060_v39, %v4874_v0  ;;  %v4669_v28 = vadd.f32 %v6313_v22, %v8824_v13  ;;  %v4660_v33 = vpop.f32.mrb[149].mxu0  ;;  %v4941_v48 = vmax.f32 %v4909_v56, 0.0 }
 0x9e2   : > { %v4908_v21 = vadd.f32 %v9060_v39, %v4872_v30  ;;  %v4661_v46 = vadd.f32 %v8824_v13, %v4660_v33  ;;  %v6314_v55 = vpop.f32.mrb[150].mxu0  ;;  %v4939_v49 = vmax.f32 %v4907_v17, 0.0 }
 0x9e3   : > { %v4942_v52 = vmax.f32 %v4910_v58, 0.0  ;;  %v4777_v16 = vadd.f32 %v4669_v28, %v8518_v37  ;;  %v4672_v12 = vadd.f32 %v6314_v55, %v8824_v13  ;;  %v4663_v47 = vpop.f32.mrb[151].mxu0 }
 0x9e4   : > { %v4940_v23 = vmax.f32 %v4908_v21, 0.0  ;;  %v4775_v34 = vadd.f32 %v4661_v46, %v8522_v26  ;;  %v4664_v18 = vadd.f32 %v8824_v13, %v4663_v47 }
 0x9e5   : > { %v4877_v14 = vmul.f32 %v6809_v15, %v4777_v16  ;;  %v4778_v36 = vadd.f32 %v4672_v12, %v8528_v40  ;;  %v8850_v51 = vpack.c.bf16 %v4942_v52, %v4941_v48 }
 0x9e6   : > { %v4875_v8 = vmul.f32 %v6809_v15, %v4775_v34  ;;  %v4776_v2 = vadd.f32 %v4664_v18, %v8533_v35  ;;  %v8854_v37 = vpack.c.bf16 %v4940_v23, %v4939_v49 }
 0x9e7   : > { %v4913_v43 = vadd.f32 %v9060_v39, %v4877_v14  ;;  %v4878_v9 = vmul.f32 %v6809_v15, %v4778_v36 }
 0x9e8   : > { %v4911_v26 = vadd.f32 %v9060_v39, %v4875_v8  ;;  %v4876_v38 = vmul.f32 %v6809_v15, %v4776_v2  ;;  %v6317_v54 = vpop.f32.mrb[152].mxu0 }
 0x9e9   : > { %v4914_v6 = vadd.f32 %v9060_v39, %v4878_v9  ;;  %v4685_v40 = vadd.f32 %v6317_v54, %v8824_v13  ;;  %v4676_v56 = vpop.f32.mrb[153].mxu0  ;;  %v4945_v30 = vmax.f32 %v4913_v43, 0.0 }
 0x9ea   : > { %v4912_v0 = vadd.f32 %v9060_v39, %v4876_v38  ;;  %v4677_v35 = vadd.f32 %v8824_v13, %v4676_v56  ;;  %v6318_v17 = vpop.f32.mrb[154].mxu0  ;;  %v4943_v21 = vmax.f32 %v4911_v26, 0.0 }
 0x9eb   : > { %v4946_v22 = vmax.f32 %v4914_v6, 0.0  ;;  %v4781_v58 = vadd.f32 %v4685_v40, %v8546_v53  ;;  %v4688_v28 = vadd.f32 %v6318_v17, %v8824_v13  ;;  %v4679_v33 = vpop.f32.mrb[155].mxu0 }
 0x9ec   : > { %v4944_v46 = vmax.f32 %v4912_v0, 0.0  ;;  %v4779_v55 = vadd.f32 %v4677_v35, %v8550_v63  ;;  %v4680_v48 = vadd.f32 %v8824_v13, %v4679_v33 }
 0x9ed   : > { %v4881_v52 = vmul.f32 %v6809_v15, %v4781_v58  ;;  %v4782_v16 = vadd.f32 %v4688_v28, %v8556_v60  ;;  %v8870_v12 = vpack.c.bf16 %v4946_v22, %v4945_v30 }
 0x9ee   : > { %v4879_v47 = vmul.f32 %v6809_v15, %v4779_v55  ;;  %v4780_v49 = vadd.f32 %v4680_v48, %v8561_v41  ;;  %v8874_v53 = vpack.c.bf16 %v4944_v46, %v4943_v21 }
 0x9ef   : > { %v4917_v23 = vadd.f32 %v9060_v39, %v4881_v52  ;;  %v4882_v34 = vmul.f32 %v6809_v15, %v4782_v16 }
 0x9f0   : > { %v4915_v63 = vadd.f32 %v9060_v39, %v4879_v47  ;;  %v4880_v18 = vmul.f32 %v6809_v15, %v4780_v49  ;;  %v6321_v14 = vpop.f32.mrb[156].mxu0 }
 0x9f1   : > { %v4918_v36 = vadd.f32 %v9060_v39, %v4882_v34  ;;  %v4701_v60 = vadd.f32 %v6321_v14, %v8824_v13  ;;  %v4692_v8 = vpop.f32.mrb[157].mxu0  ;;  %v4949_v9 = vmax.f32 %v4917_v23, 0.0 }
 0x9f2   : > { %v4916_v2 = vadd.f32 %v9060_v39, %v4880_v18  ;;  %v4693_v41 = vadd.f32 %v8824_v13, %v4692_v8  ;;  %v6322_v43 = vpop.f32.mrb[158].mxu0  ;;  %v4947_v40 = vmax.f32 %v4915_v63, 0.0 }
 0x9f3   : > { %v4950_v26 = vmax.f32 %v4918_v36, 0.0  ;;  %v4785_v38 = vadd.f32 %v4701_v60, %v8574_v19  ;;  %v4704_v54 = vadd.f32 %v6322_v43, %v8824_v13  ;;  %v4695_v6 = vpop.f32.mrb[159].mxu0 }
 0x9f4   : > { %v4948_v56 = vmax.f32 %v4916_v2, 0.0  ;;  %v4783_v0 = vadd.f32 %v4693_v41, %v8578_v20  ;;  %v4696_v35 = vadd.f32 %v8824_v13, %v4695_v6 }
 0x9f5   : > { %v4885_v17 = vmul.f32 %v6809_v15, %v4785_v38  ;;  %v4786_v30 = vadd.f32 %v4704_v54, %v8584_v59  ;;  %v8890_v22 = vpack.c.bf16 %v4950_v26, %v4949_v9 }
 0x9f6   : > { %v4883_v58 = vmul.f32 %v6809_v15, %v4783_v0  ;;  %v4784_v28 = vadd.f32 %v4696_v35, %v8589_v5  ;;  %v8894_v19 = vpack.c.bf16 %v4948_v56, %v4947_v40 }
 0x9f7   : > { %v4921_v33 = vadd.f32 %v9060_v39, %v4885_v17  ;;  %v4886_v21 = vmul.f32 %v6809_v15, %v4786_v30 }
 0x9f8   : > { %v4919_v20 = vadd.f32 %v9060_v39, %v4883_v58  ;;  %v4884_v46 = vmul.f32 %v6809_v15, %v4784_v28  ;;  %v6325_v55 = vpop.f32.mrb[160].mxu0 }
 0x9f9   : > { %v4922_v48 = vadd.f32 %v9060_v39, %v4886_v21  ;;  %v4717_v59 = vadd.f32 %v6325_v55, %v8824_v13  ;;  %v4708_v52 = vpop.f32.mrb[161].mxu0  ;;  %v4953_v49 = vmax.f32 %v4921_v33, 0.0 }
 0x9fa   : > { %v4920_v16 = vadd.f32 %v9060_v39, %v4884_v46  ;;  %v4709_v5 = vadd.f32 %v8824_v13, %v4708_v52  ;;  %v6326_v47 = vpop.f32.mrb[162].mxu0  ;;  %v4951_v14 = vmax.f32 %v4919_v20, 0.0 }
 0x9fb   : > { %v4954_v23 = vmax.f32 %v4922_v48, 0.0  ;;  %v4789_v34 = vadd.f32 %v4717_v59, %v8602_v44  ;;  %v4720_v63 = vadd.f32 %v6326_v47, %v8824_v13  ;;  %v4711_v18 = vpop.f32.mrb[163].mxu0 }
 0x9fc   : > { %v4952_v36 = vmax.f32 %v4920_v16, 0.0  ;;  %v4787_v60 = vadd.f32 %v4709_v5, %v8606_v3  ;;  %v4712_v8 = vadd.f32 %v8824_v13, %v4711_v18 }
 0x9fd   : > { %v4889_v2 = vmul.f32 %v6809_v15, %v4789_v34  ;;  %v4790_v41 = vadd.f32 %v4720_v63, %v8612_v7  ;;  %v8910_v43 = vpack.c.bf16 %v4954_v23, %v4953_v49 }
 0x9fe   : > { %v4887_v9 = vmul.f32 %v6809_v15, %v4787_v60  ;;  %v4788_v26 = vadd.f32 %v4712_v8, %v8617_v42  ;;  %v8914_v44 = vpack.c.bf16 %v4952_v36, %v4951_v14 }
 0x9ff   : > { %v4890_v38 = vmul.f32 %v6809_v15, %v4790_v41  ;;  %v4925_v54 = vadd.f32 %v9060_v39, %v4889_v2 }
 0xa00   : > { %v4888_v3 = vmul.f32 %v6809_v15, %v4788_v26  ;;  %v6329_v6 = vpop.f32.mrb[164].mxu0  ;;  %v4923_v40 = vadd.f32 %v9060_v39, %v4887_v9 }
 0xa01   : > { %v4733_v56 = vadd.f32 %v6329_v6, %v8824_v13  ;;  %v4724_v7 = vpop.f32.mrb[165].mxu0  ;;  %v4926_v0 = vadd.f32 %v9060_v39, %v4890_v38  ;;  %v4957_v33 = vmax.f32 %v4925_v54, 0.0 }
 0xa02   : > { %v4725_v35 = vadd.f32 %v8824_v13, %v4724_v7  ;;  %v6330_v17 = vpop.f32.mrb[166].mxu0  ;;  %v4924_v42 = vadd.f32 %v9060_v39, %v4888_v3  ;;  %v4955_v55 = vmax.f32 %v4923_v40, 0.0 }
 0xa03   : > { %v4793_v30 = vadd.f32 %v4733_v56, %v8630_v1  ;;  %v4736_v58 = vadd.f32 %v6330_v17, %v8824_v13  ;;  %v4727_v28 = vpop.f32.mrb[167].mxu0  ;;  %v4958_v21 = vmax.f32 %v4926_v0, 0.0 }
 0xa04   : > { %v4791_v20 = vadd.f32 %v4725_v35, %v8634_v24  ;;  %v4728_v46 = vadd.f32 %v8824_v13, %v4727_v28  ;;  %v4956_v48 = vmax.f32 %v4924_v42, 0.0 }
 0xa05   : > { %v4893_v59 = vmul.f32 %v6809_v15, %v4793_v30  ;;  %v4794_v52 = vadd.f32 %v4736_v58, %v8640_v32  ;;  %v6343_v16 = vpack.c.bf16 %v4958_v21, %v4957_v33 }
 0xa06   : > { %v4891_v5 = vmul.f32 %v6809_v15, %v4791_v20  ;;  %v4792_v1 = vadd.f32 %v4728_v46, %v8645_v50  ;;  %v6339_v47 = vpack.c.bf16 %v4956_v48, %v4955_v55 }
 0xa07   : > { %v4894_v49 = vmul.f32 %v6809_v15, %v4794_v52  ;;  %v4929_v23 = vadd.f32 %v9060_v39, %v4893_v59 }
 0xa08   : > { %v4892_v24 = vmul.f32 %v6809_v15, %v4792_v1  ;;  %v6333_v34 = vpop.f32.mrb[168].mxu0  ;;  %6340 = vmatprep.subr.bf16.mxu1 %v6339_v47  ;;  %v4927_v63 = vadd.f32 %v9060_v39, %v4891_v5 }
 0xa09   : > { %v4749_v18 = vadd.f32 %v6333_v34, %v8824_v13  ;;  %v4740_v14 = vpop.f32.mrb[169].mxu0  ;;  %6342 = vmatpush3.bf16.xpose.msra.mxu1 %v8854_v37  ;;  %v4930_v32 = vadd.f32 %v9060_v39, %v4894_v49  ;;  %v4961_v9 = vmax.f32 %v4929_v23, 0.0 }
 0xa0a   : > { %v4741_v50 = vadd.f32 %v8824_v13, %v4740_v14  ;;  %v6334_v36 = vpop.f32.mrb[170].mxu0  ;;  %6344 = vmatprep.subr.bf16.mxu1 %v6343_v16  ;;  %v4928_v60 = vadd.f32 %v9060_v39, %v4892_v24  ;;  %v4959_v37 = vmax.f32 %v4927_v63, 0.0 }
 0xa0b   : > { %v4797_v8 = vadd.f32 %v4749_v18, %v8658_v10  ;;  %v4752_v2 = vadd.f32 %v6334_v36, %v8824_v13  ;;  %v4743_v41 = vpop.f32.mrb[171].mxu0  ;;  %v4962_v26 = vmax.f32 %v4930_v32, 0.0 }
 0xa0c   : > { %v4795_v38 = vadd.f32 %v4741_v50, %v8662_v11  ;;  %v4744_v54 = vadd.f32 %v8824_v13, %v4743_v41  ;;  %v4960_v3 = vmax.f32 %v4928_v60, 0.0 }
 0xa0d   : > { %v4897_v6 = vmul.f32 %v6809_v15, %v4797_v8  ;;  %v4798_v40 = vadd.f32 %v4752_v2, %v8668_v29  ;;  %v6351_v56 = vpack.c.bf16 %v4962_v26, %v4961_v9  ;;  %v9061_v9 = vlaneseq }
 0xa0e   : > { %v4895_v7 = vmul.f32 %v6809_v15, %v4795_v38  ;;  %v4796_v10 = vadd.f32 %v4744_v54, %v8673_v27  ;;  %v6347_v0 = vpack.c.bf16 %v4960_v3, %v4959_v37 }
 0xa0f   : > { %v4898_v35 = vmul.f32 %v6809_v15, %v4798_v40  ;;  %v4933_v17 = vadd.f32 %v9060_v39, %v4897_v6  ;;  %vm5073_vm1 = vcmp.lt.s32.totalorder %v9061_v9, 256 }
 0xa10   : > { %v4896_v11 = vmul.f32 %v6809_v15, %v4796_v10  ;;  %v6337_v42 = vpop.f32.mrb[172].mxu0  ;;  %v4931_v30 = vadd.f32 %v9060_v39, %v4895_v7 }
 0xa11   : > { %v4765_v58 = vadd.f32 %v6337_v42, %v8824_v13  ;;  %v4756_v28 = vpop.f32.mrb[173].mxu0  ;;  %6346 = vmatpush3.bf16.xpose.msra.mxu1 %v8850_v51  ;;  %v4934_v29 = vadd.f32 %v9060_v39, %v4898_v35  ;;  %v4965_v48 = vmax.f32 %v4933_v17, 0.0 }
 0xa12   : > { %v4757_v33 = vadd.f32 %v8824_v13, %v4756_v28  ;;  %v6338_v27 = vpop.f32.mrb[174].mxu0  ;;  %6348 = vmatprep.subr.bf16.mxu1 %v6347_v0  ;;  %v4932_v21 = vadd.f32 %v9060_v39, %v4896_v11  ;;  %v4963_v51 = vmax.f32 %v4931_v30, 0.0 }
 0xa13   : > { %v4801_v20 = vadd.f32 %v4765_v58, %v8686_v62  ;;  %v4768_v46 = vadd.f32 %v6338_v27, %v8824_v13  ;;  %v4759_v55 = vpop.f32.mrb[175].mxu0  ;;  %v4966_v59 = vmax.f32 %v4934_v29, 0.0 }
 0xa14   : > { %v4799_v52 = vadd.f32 %v4757_v33, %v8690_v61  ;;  %v4760_v16 = vadd.f32 %v8824_v13, %v4759_v55  ;;  %v4964_v5 = vmax.f32 %v4932_v21, 0.0 }
 0xa15   : > { %v4901_v1 = vmul.f32 %v6809_v15, %v4801_v20  ;;  %v4802_v47 = vadd.f32 %v4768_v46, %v8696_v45  ;;  %v6359_v49 = vpack.c.bf16 %v4966_v59, %v4965_v48 }
 0xa16   : > { %v4899_v23 = vmul.f32 %v6809_v15, %v4799_v52  ;;  %v4800_v62 = vadd.f32 %v4760_v16, %v8701_v31  ;;  %v6355_v24 = vpack.c.bf16 %v4964_v5, %v4963_v51 }
 0xa17   : > { %v4902_v34 = vmul.f32 %v6809_v15, %v4802_v47  ;;  %v4937_v63 = vadd.f32 %v9060_v39, %v4901_v1 }
 0xa18   : > { %v4900_v61 = vmul.f32 %v6809_v15, %v4800_v62  ;;  %v4935_v13 = vadd.f32 %v9060_v39, %v4899_v23  ;;  %v4976_v15 = vpop.permute.xlu0 %4975 }
 0xa19   : > { %6350 = vmatpush3.bf16.xpose.msra.mxu1 %v8874_v53  ;;  %v4938_v18 = vadd.f32 %v9060_v39, %v4902_v34  ;;  %v4969_v14 = vmax.f32 %v4937_v63, 0.0 }
 0xa1a   : > { %6352 = vmatprep.subr.bf16.mxu1 %v6351_v56  ;;  %v4936_v45 = vadd.f32 %v9060_v39, %v4900_v61  ;;  %v4967_v50 = vmax.f32 %v4935_v13, 0.0  ;;  %v6630_v39 = vmov 1966171168  }
 0xa1b   : > { %v4970_v32 = vmax.f32 %v4938_v18, 0.0  ;;  %v5057_v53 = vunpack.c.l.s4 %v6630_v39 }
 0xa1c   : > { %v4968_v31 = vmax.f32 %v4936_v45, 0.0 }
 0xa1d   : > { %v6367_v36 = vpack.c.bf16 %v4970_v32, %v4969_v14  ;;  %v5058_v8 = vunpack.c.0.s8 %v5057_v53 }
 0xa1e   : > { %v6363_v60 = vpack.c.bf16 %v4968_v31, %v4967_v50 }
 0xa21   : > { %6354 = vmatpush3.bf16.xpose.msra.mxu1 %v8870_v12  ;;  %v4981_v12 = vrot.slane %v4976_v15, %v6908_v57 }
 0xa22   : > { %6356 = vmatprep.subr.bf16.mxu1 %v6355_v24 }
 0xa29   : > { %6358 = vmatpush3.bf16.xpose.msra.mxu1 %v8894_v19 }
 0xa2a   : > { %6360 = vmatprep.subr.bf16.mxu1 %v6359_v49 }
 0xa31   : > { %6362 = vmatpush3.bf16.xpose.msra.mxu1 %v8890_v22 }
 0xa32   : > { %6364 = vmatprep.subr.bf16.mxu1 %v6363_v60 }
 0xa39   : > { %6366 = vmatpush3.bf16.xpose.msra.mxu1 %v8914_v44  ;;  %v5061_v44 = vsub.s32 %v5058_v8, %v6775_v4 }
 0xa3a   : > { %6368 = vmatprep.subr.bf16.mxu1 %v6367_v36 }
 0xa41   : > { %6370 = vmatpush3.bf16.xpose.msra.mxu1 %v8910_v43 }
 0xa48   : > { %5808 = vmatmul.mubr.f32.vlgmr.msra.gmra.mrb[176].mxu1 %v8818_v25 }
 0xb1b   : > { %v5048_v19 = vpop.f32.mrb[176].mxu1 }
 0xb1c   : > { %v5049_v22 = vadd.f32 %v5048_v19, %v4981_v12  ;;  %v5050_v2 = vpop.f32.mrb[177].mxu1 }
 0xb1d   : > { %v5051_v41 = vadd.f32 %v5050_v2, %v4981_v12 }
 0xb1f   : > { %v5055_v43 = vcombine.low %v5049_v22, %v5051_v41 }
 0xb21   : > { %v5062_v25 = vrot.slane %v5055_v43, %v5061_v44 }
 0xb23   : > { %v5069_v57 = vrot.slane %v5062_v25, %v5061_v44 }
 0xb25   : > { %5075 = vst.msk [vmem:[%s393_s27] sm:$0x3] %vm5073_vm1, %v5069_v57 }
 0xb26   : > { %6546 = shalt.err (!%p6543_p7)
}
 0xb27   : > { %s6547_s21 = scalar_lea.hbm %s8988_s14, 32  ;;  %s6551_s27 = scalar_lea.hbm %s9050_s9, 128 }
 0xb28   : > { %p6548_p9 = scmp.ne.s32.totalorder %s8988_s14, %s6547_s21  ;;  %p6552_p12 = scmp.lt.u32.totalorder %s8988_s14, %s9050_s9 }
 0xb29   : > { %p6553_p13 = scmp.lt.u32.totalorder %s6551_s27, %s6547_s21  ;;  %p6555_p1 = scmp.lt.u32.totalorder %s6547_s21, %s8988_s14 }
 0xb2a   : > { %p6549_p10 = pnand %p6548_p9, %p6736_p3 }
 0xb2b   : > { %p6554_p0 = por %p6553_p13, %p6552_p12 }
 0xb2c   : > { %p6550_p11 = pneg %p6549_p10 }
 0xb2d   : > { %p6556_p2 = por %p6555_p1, %p6554_p0 }
 0xb2f   : > { %p6557_p4 = pnand %p6556_p2, %p6550_p11 }
 0xb31   : > { %6560 = shalt.err (!%p6557_p4)
}
 0xb32   : > { %6373 = dma.vmem_to_hbm [thread:$0]  (%p6736_p3), %s8990_s29, 32, %s8988_s14, %s5077_s15  }
 0xb33 PF: > { %p6379_p5 = scmp.ge.s32.totalorder %s6627_s18, 2  ;;  %s5105_s22 = sand.u32 1, %s6599_s11  }
 0xb34   : > { %s5106_s8 = scalar_lea.sflag [#allocation5], %s5105_s22 }
 0xb35   : > { %p6376_p6 = pnand %p6379_p5, %p6745_p8 }
 0xb37   : > { %6594 = dma.done.wait (!%p6376_p6), %s5106_s8, 32  }
 0xb38   : > { %6596 = vsyncadd (!%p6376_p6), %s5106_s8, 4294967264  ;;  %s24_s18 = sadd.s32 1, %s6627_s18   ;;  %s9062_s23 = sld [smem:[#allocation7_spill]] }
 0xb39   : > { %p21_p7 = scmp.ge.s32.totalorder %s24_s18, 6   ;;  %s9063_s11 = smov %s6603_s12 }
 0xb3a   : > { %s9064_s12 = smov %s6607_s13  ;;  %s9065_s13 = smov %s6754_s28 }
 0xb3b   : > { %s9066_s14 = smov %s6619_s16  ;;  %s9067_s15 = smov %s6623_s17 }
 0xb3c   : > { %s9068_s16 = smov %s9071_s20  ;;  %23 = sbr.rel (!%p21_p7) target bundleno = 8 (0x8), region = 118 }
 0xb3e   : > { %s9069_s17 = smov %s9062_s23 }
 0xb43   :  { %5111 = vsyncpa [#allocation5], 1 }
 0xb44   :  { %5113 = vsyncpa [#allocation5 + $0x1], 1 }

</bundles_post_ra>
